<compile_context>
chip_gen: v7x
topology: tpu7x:2x2x1
jax: 0.10.0
libtpu: 0.0.40
codegen_flags: <defaults>
</compile_context>

<pallas_src>
import math

import jax
import jax.numpy as jnp
from jax.experimental import pallas as pl
from jax.experimental.pallas import tpu as pltpu


# Below this many output elements the pallas_call dispatch + >=0.35us grid-step
# floor dominates; let XLA fuse the trivial elementwise expression instead.
_SMALL_FALLBACK_ELEMS = 1 << 16


def _round_down(x: int, m: int) -> int:
    return (x // m) * m


def _device_kind() -> str:
    try:
        return jax.devices()[0].device_kind.lower()
    except Exception:
        return ""


def _tile_plan(itemsize: int):
    """(max elements per full-size operand block, vmem_limit_bytes) per generation."""
    kind = _device_kind()
    if "v7" in kind:
        per_array = 4 << 20   # 4 arrays x 2 buffers x 4 MiB = 32 MiB (64 MiB physical)
        limit = 40 << 20
    elif "v6" in kind:
        per_array = 4 << 20   # 32 MiB double-buffered (128 MiB physical)
        limit = 48 << 20
    else:                     # v5e / unknown: modest working set, bump scoped limit
        per_array = 2 << 20   # 16 MiB double-buffered
        limit = 32 << 20
    return max(1024, per_array // max(itemsize, 1)), limit


def _actor_loss_kernel(logp_ref, ret_ref, val_ref, out_ref):
    # Cast on the VPU (free in a mem-bound kernel); size-1 block dims of the
    # broadcast operands are expanded in-register, never in HBM.
    logp = logp_ref[...].astype(jnp.float32)
    ret = ret_ref[...].astype(jnp.float32)
    val = val_ref[...].astype(jnp.float32)
    # -logp * (ret - val) == logp * (val - ret): saves the extra negate.
    res = logp * (val - ret)
    out_ref[...] = jnp.broadcast_to(res, out_ref.shape).astype(out_ref.dtype)


def actor_custom_loss(log_prob, returns, value):
    """Computes -log_prob * (returns - value) with PyTorch-style broadcasting."""
    log_prob = jnp.asarray(log_prob)
    returns = jnp.asarray(returns)
    value = jnp.asarray(value)

    out_shape = jnp.broadcast_shapes(log_prob.shape, returns.shape, value.shape)
    out_dtype = jnp.result_type(log_prob.dtype, returns.dtype, value.dtype)
    total = math.prod(out_shape) if out_shape else 1

    if total == 0:
        return jnp.zeros(out_shape, out_dtype)

    if total <= _SMALL_FALLBACK_ELEMS:
        # Tiny inputs: XLA fusion into the producers beats any custom kernel.
        return (log_prob * (value - returns)).astype(out_dtype)

    # ---- Large path: broadcast-aware 2-D Pallas kernel ------------------------

    # Drop trailing size-1 output axes (operands are size-1/absent there too) so
    # the lane axis carries real data.
    work_shape = tuple(out_shape)
    while len(work_shape) > 1 and work_shape[-1] == 1:
        work_shape = work_shape[:-1]
    strip = len(out_shape) - len(work_shape)
    R = len(work_shape)

    # 2-D view of the output: (M, N) with N the lane axis.
    if R == 1:
        n_full = work_shape[0]
        lane = next((l for l in (1024, 512, 256, 128) if n_full % l == 0), None)
        view2d = (n_full // lane, lane) if lane is not None else (1, n_full)
    else:
        view2d = (math.prod(work_shape[:-1]), work_shape[-1])
    M, N = view2d

    def to_2d(x):
        # Drop stripped trailing axes (all size 1 on this operand, if present).
        if strip:
            drop = min(strip, x.ndim)
            x = x.reshape(x.shape[: x.ndim - drop])
        # Right-align to the working rank (metadata-only).
        s = (1,) * (R - x.ndim) + x.shape
        x = x.reshape(s)
        if R == 1:
            if s[0] == work_shape[0]:
                return x.reshape(view2d)           # contiguous: metadata-only
            return x.reshape(1, 1)                 # scalar-like: broadcast in-kernel
        n_i = s[-1]
        lead = s[:-1]
        if all(d == 1 for d in lead):
            return x.reshape(1, n_i)
        if lead == work_shape[:-1]:
            return x.reshape(M, n_i)               # contiguous: metadata-only
        # Mixed leading broadcast (rare): materialize only the leading axes
        # (cheap when n_i == 1); the lane-axis broadcast stays in-kernel.
        return jnp.broadcast_to(x, work_shape[:-1] + (n_i,)).reshape(M, n_i)

    lp2, rt2, vl2 = to_2d(log_prob), to_2d(returns), to_2d(value)

    itemsize = max(
        jnp.dtype(out_dtype).itemsize,
        lp2.dtype.itemsize, rt2.dtype.itemsize, vl2.dtype.itemsize,
    )
    tile_elems, vmem_limit = _tile_plan(itemsize)

    # Tile selection: keep blocks lane-dense; only tile the lane axis when a
    # single row-slab would not fit the per-generation VMEM budget.
    if 8 * N <= tile_elems:
        tn = N
        tm = tile_elems // N
        tm = M if tm >= M else max(8, _round_down(tm, 8))
    else:
        tm = M if M < 8 else 8
        tn = max(128, _round_down(tile_elems // tm, 128))
        if tn >= N:
            tn = N
    grid = (pl.cdiv(M, tm), pl.cdiv(N, tn))

    def spec_for(shape2d):
        m_i, n_i = shape2d
        bm = tm if m_i != 1 else 1
        bn = tn if n_i != 1 else 1
        if m_i != 1 and n_i != 1:
            index_map = lambda i, j: (i, j)
        elif m_i != 1:
            index_map = lambda i, j: (i, 0)
        elif n_i != 1:
            index_map = lambda i, j: (0, j)
        else:
            index_map = lambda i, j: (0, 0)
        return pl.BlockSpec((bm, bn), index_map)

    # On v7x, actually split the row tiles across the two TensorCores.
    sem_m = pltpu.PARALLEL
    if "v7" in _device_kind() and grid[0] >= 2:
        sem_m = pltpu.CORE_PARALLEL

    bytes_accessed = (
        lp2.size * lp2.dtype.itemsize
        + rt2.size * rt2.dtype.itemsize
        + vl2.size * vl2.dtype.itemsize
        + total * jnp.dtype(out_dtype).itemsize
    )

    out2d = pl.pallas_call(
        _actor_loss_kernel,
        out_shape=jax.ShapeDtypeStruct((M, N), out_dtype),
        grid=grid,
        in_specs=[spec_for(lp2.shape), spec_for(rt2.shape), spec_for(vl2.shape)],
        out_specs=pl.BlockSpec((tm, tn), lambda i, j: (i, j)),
        compiler_params=pltpu.CompilerParams(
            dimension_semantics=(sem_m, pltpu.ARBITRARY),
            vmem_limit_bytes=vmem_limit,
        ),
        cost_estimate=pl.CostEstimate(
            flops=2 * total, transcendentals=0, bytes_accessed=bytes_accessed
        ),
    )(lp2, rt2, vl2)

    # Contiguous reshape back to the broadcast output shape (metadata-only).
    return out2d.reshape(out_shape)


if __name__ == "__main__":
    key = jax.random.PRNGKey(0)
    ks = jax.random.split(key, 12)

    def ref_loss(lp, rt, vl):
        return -lp * (rt - vl)

    # Case 1: tiny, same shape -> XLA-fusion fallback path.
    lp = jax.random.normal(ks[0], (8, 128), jnp.float32)
    rt = jax.random.normal(ks[1], (8, 128), jnp.float32)
    vl = jax.random.normal(ks[2], (8, 128), jnp.float32)
    out = actor_custom_loss(lp, rt, vl)
    jax.block_until_ready(out)
    assert out.shape == (8, 128)
    assert jnp.allclose(out, ref_loss(lp, rt, vl), atol=1e-6, rtol=1e-6)

    # Case 2: tiny A2C broadcast (log_prob (B,A), returns/value (B,1)) -> fallback.
    lp = jax.random.normal(ks[3], (64, 2), jnp.float32)
    rt = jax.random.normal(ks[4], (64, 1), jnp.float32)
    vl = jax.random.normal(ks[5], (64, 1), jnp.float32)
    out = actor_custom_loss(lp, rt, vl)
    jax.block_until_ready(out)
    assert out.shape == (64, 2)
    assert jnp.allclose(out, ref_loss(lp, rt, vl), atol=1e-6, rtol=1e-6)

    # Case 3: Pallas path — A2C-style broadcast, un-materialized (B,1) operands,
    # ragged row tiling (M=4100 not a multiple of the row tile).
    lp = jax.random.normal(ks[6], (4100, 256), jnp.float32)
    rt = jax.random.normal(ks[7], (4100, 1), jnp.float32)
    vl = jax.random.normal(ks[8], (4100, 1), jnp.float32)
    out = actor_custom_loss(lp, rt, vl)
    jax.block_until_ready(out)
    assert out.shape == (4100, 256)
    assert jnp.allclose(out, ref_loss(lp, rt, vl), atol=1e-6, rtol=1e-6)

    # Case 4: Pallas path — 1-D input with scalar-like broadcast operands
    # (lane-dense 2-D view of the flat array).
    lp = jax.random.normal(ks[9], (131072,), jnp.float32)
    rt = jax.random.normal(ks[10], (1,), jnp.float32)
    vl = jax.random.normal(ks[11], (1,), jnp.float32)
    out = actor_custom_loss(lp, rt, vl)
    jax.block_until_ready(out)
    assert out.shape == (131072,)
    assert jnp.allclose(out, ref_loss(lp, rt, vl), atol=1e-6, rtol=1e-6)

    print("KERNEL_OK")
</pallas_src>

<mosaic_0001>
module attributes {stable_mosaic.version = 11 : i64} {
  func.func @_actor_loss_kernel(%arg0: i32, %arg1: i32, %arg2: memref<2048x256xf32, #tpu.memory_space<vmem>>, %arg3: memref<2048x1xf32, #tpu.memory_space<vmem>>, %arg4: memref<2048x1xf32, #tpu.memory_space<vmem>>, %arg5: memref<2048x256xf32, #tpu.memory_space<vmem>>) attributes {dimension_semantics = [#tpu.dimension_semantics<parallel>, #tpu.dimension_semantics<arbitrary>], iteration_bounds = array<i64: 3, 1>, scalar_prefetch = 0 : i64, scratch_operands = 0 : i64, tpu.core_type = #tpu.core_type<tc>, window_params = [{transform_indices = @transform_0, window_bounds = array<i64: 2048, 256>}, {transform_indices = @transform_1, window_bounds = array<i64: 2048, 1>}, {transform_indices = @transform_2, window_bounds = array<i64: 2048, 1>}, {transform_indices = @transform_3, window_bounds = array<i64: 2048, 256>}]} {
    %c0 = arith.constant 0 : index
    %c0_0 = arith.constant 0 : index
    %0 = vector.load %arg2[%c0, %c0_0] : memref<2048x256xf32, #tpu.memory_space<vmem>>, vector<2048x256xf32>
    %c0_1 = arith.constant 0 : index
    %c0_2 = arith.constant 0 : index
    %1 = vector.load %arg3[%c0_1, %c0_2] : memref<2048x1xf32, #tpu.memory_space<vmem>>, vector<2048x1xf32>
    %c0_3 = arith.constant 0 : index
    %c0_4 = arith.constant 0 : index
    %2 = vector.load %arg4[%c0_3, %c0_4] : memref<2048x1xf32, #tpu.memory_space<vmem>>, vector<2048x1xf32>
    %3 = arith.subf %2, %1 : vector<2048x1xf32>
    %4 = vector.broadcast %3 : vector<2048x1xf32> to vector<2048x256xf32>
    %5 = arith.mulf %0, %4 : vector<2048x256xf32>
    %c0_5 = arith.constant 0 : index
    %c0_6 = arith.constant 0 : index
    %6 = vector.load %arg5[%c0_5, %c0_6] : memref<2048x256xf32, #tpu.memory_space<vmem>>, vector<2048x256xf32>
    tpu.vector_store %arg5[%c0_5, %c0_6], %5 {strides = array<i32>} : memref<2048x256xf32, #tpu.memory_space<vmem>>, vector<2048x256xf32>,
    return
  }
  func.func @transform_0(%arg0: i32, %arg1: i32) -> (i32, i32) {
    %c0_i32 = arith.constant 0 : i32
    return %arg0, %arg1 : i32, i32
  }
  func.func @transform_1(%arg0: i32, %arg1: i32) -> (i32, i32) {
    %c0_i32 = arith.constant 0 : i32
    %c0_i32_0 = arith.constant 0 : i32
    return %arg0, %c0_i32 : i32, i32
  }
  func.func @transform_2(%arg0: i32, %arg1: i32) -> (i32, i32) {
    %c0_i32 = arith.constant 0 : i32
    %c0_i32_0 = arith.constant 0 : i32
    return %arg0, %c0_i32 : i32, i32
  }
  func.func @transform_3(%arg0: i32, %arg1: i32) -> (i32, i32) {
    %c0_i32 = arith.constant 0 : i32
    return %arg0, %arg1 : i32, i32
  }
}

</mosaic_0001>

<bundles_post_ra>
// kernel: tpu_custom_call.1
= control target key start
LH: loop header
LB: loop body
LE: loop exit
PB: predicated region body
PF: predicated region fallthrough
CT: control target
= control target key end

     0   :  { %8 = vsyncpa [#allocation3], 0  ;;  %s5910_s0 = inlined_call_operand.vmem [shape: f32[4100,256], index: 0, kind: input, shape index: {}]   ;;  %s5911_s1 = inlined_call_operand.vmem [shape: f32[4100,1], index: 1, kind: input, shape index: {}]   ;;  %s5912_s2 = inlined_call_operand.vmem [shape: f32[4100,1], index: 2, kind: input, shape index: {}]   ;;  %s5913_s3 = inlined_call_operand.hbm [shape: f32[4100,256], index: 3, kind: output, shape index: {}]  }
   0x1   :  { %10 = vsyncpa [#allocation3 + $0x1], 0  ;;  %s4222_s12 = smov 0   ;;  %s4224_s13 = smov 0  }
   0x2   :  { %s4226_s14 = smov 0   ;;  %s4228_s15 = smov 0  }
   0x3   :  { %s4230_s16 = smov 0   ;;  %s4232_s17 = smov 0  }
   0x4 LB: > { %s4031_s18 = sadd.s32 4294967295, %s4196_s17   ;;  %s4032_s19 = sadd.s32 4294967294, %s4196_s17   ;;  %s4196_s17 = sphi %s4232_s17, %s16_s17   ;;  %s4192_s16 = sphi %s4230_s16, %s5920_s16   ;;  %s4188_s15 = sphi %s4228_s15, %s5919_s15   ;;  %s4184_s14 = sphi %s4226_s14, %s5918_s14   ;;  %s4180_s13 = sphi %s4224_s13, %s5917_s13   ;;  %s4176_s12 = sphi %s4222_s12, %s5916_s12  }
   0x5   : > { %s28_s20 = sadd.s32 1, %s4192_s16  ;;  %s117_s21 = sadd.s32 1, %s4184_s14 }
   0x6   : > { %p30_p0 = scmp.ge.s32.totalorder %s28_s20, 3  ;;  %p127_p1 = scmp.ne.s32.totalorder %s4184_s14, %s4180_s13 }
   0x7   : > { %p128_p2 = scmp.eq.s32.totalorder %s4031_s18, 2  ;;  %p133_p3 = scmp.ne.s32.totalorder %s4180_s13, %s4176_s12 }
   0x8   : > { %s5922_s20 = smov (%p30_p0, %s28_s20), 0  ;;  %p134_p5 = scmp.eq.s32.totalorder %s4032_s19, 2 }
   0x9   : > { %p4262_p4 = por %p128_p2, %p127_p1  ;;  %s112_s23 = ssub.s32 %s4192_s16, %s5922_s20 }
   0xa   : > { %p4035_p6 = scmp.ge.s32.totalorder %s4196_s17, 1  ;;  %p115_p7 = scmp.eq.s32.totalorder %s112_s23, 0 }
   0xb   : > { %p4269_p8 = por %p134_p5, %p133_p3  ;;  %p211_p9 = scmp.lt.s32.totalorder %s4196_s17, 4 }
   0xc   : > { %s4275_s25 = scalar_select %p115_p7, %s4184_s14, %s117_s21  }
   0xd   : > { %p212_p10 = pnand %p4035_p6, %p211_p9 }
   0xe   : > { %s4278_s26 = sshll.u32 (!%p212_p10), %s4188_s15, 8  ;;  %v4198_v0 = vmov (!%p212_p10), 0   ;;  %s260_s18 = sand.u32 (!%p212_p10), 1, %s4180_s13  }
   0xf   : > { %215 = sbr.rel (%p212_p10) target bundleno = 698 (0x2ba), region = 32  ;;  %4117 = vset.pattern.permute.xlu1 (!%p212_p10), %v4198_v0  ;;  %4116 = vset.pattern.permute.xlu0 (!%p212_p10), %v4198_v0  ;;  %p270_p11 = scmp.lt.s32.totalorder (!%p212_p10), %s4278_s26, 512 }
  0x10   : > { %s4036_s19 = sshll.u32 (!%p212_p10), %s260_s18, 12  ;;  %s5844_s23 = scalar_lea.sflag (!%p212_p10), [#allocation3], %s260_s18 }
  0x11   : > { %s4449_s21 = scalar_lea.vmem (!%p212_p10), [#allocation2], %s4036_s19 }
  0x16   : > { %s4282_s27 = scalar_select %p270_p11, %s4278_s26, 512 }
  0x18   : > { %s4041_s28 = sshll.u32 %s4282_s27, 3  ;;  %s4055_s8 = sshll.u32 %s4282_s27, 4 }
  0x19   : > { %s4288_s4 = scalar_lea.vmem %s5911_s1, %s4041_s28  ;;  %s4293_s7 = scalar_lea.vmem %s5912_s2, %s4041_s28 }
  0x1a   : > { %v834_v1 = vld [vmem:[%s4288_s4 + $0x10] sm:$0xff]  ;;  %v832_v3 = vld [vmem:[%s4288_s4] sm:$0xff]  ;;  %v835_v6 = vld [vmem:[%s4288_s4 + $0x18] sm:$0xff]  ;;  %s4427_s11 = scalar_lea.vmem %s5910_s0, %s4055_s8  ;;  %s3914_s27 = ssub.s32 (%p4262_p4), 513, %s4278_s26 }
  0x1b   : > { %v1090_v2 = vld [vmem:[%s4293_s7 + $0x10] sm:$0xff]  ;;  %v1088_v5 = vld [vmem:[%s4293_s7] sm:$0xff]  ;;  %v1091_v7 = vld [vmem:[%s4293_s7 + $0x18] sm:$0xff]  ;;  %p3915_p12 = scmp.lt.s32.totalorder (%p4262_p4), %s3914_s27, 256 }
  0x1c   : > { %v1346_v4 = vsub.f32 %v1090_v2, %v834_v1  ;;  %v1344_v8 = vsub.f32 %v1088_v5, %v832_v3  ;;  %v833_v9 = vld [vmem:[%s4288_s4 + $0x8] sm:$0xff]  ;;  %v1347_v11 = vsub.f32 %v1091_v7, %v835_v6  ;;  %v836_v15 = vld [vmem:[%s4288_s4 + $0x20] sm:$0xff]  ;;  %v839_v19 = vld [vmem:[%s4288_s4 + $0x38] sm:$0xff] }
  0x1d   : > { %v1089_v10 = vld [vmem:[%s4293_s7 + $0x8] sm:$0xff]  ;;  %v1092_v16 = vld [vmem:[%s4293_s7 + $0x20] sm:$0xff]  ;;  %v1095_v20 = vld [vmem:[%s4293_s7 + $0x38] sm:$0xff] }
  0x1e   : > { %1612 = vperm.xlu1 %4117, %v1346_v4   ;;  %1602 = vperm.xlu0 %4116, %v1344_v8   ;;  %v1345_v12 = vsub.f32 %v1089_v10, %v833_v9  ;;  %v837_v13 = vld [vmem:[%s4288_s4 + $0x28] sm:$0xff]  ;;  %v1348_v18 = vsub.f32 %v1092_v16, %v836_v15  ;;  %v838_v21 = vld [vmem:[%s4288_s4 + $0x30] sm:$0xff]  ;;  %v1351_v23 = vsub.f32 %v1095_v20, %v839_v19  ;;  %v840_v27 = vld [vmem:[%s4288_s4 + $0x40] sm:$0xff] }
  0x1f   : > { %v1093_v14 = vld [vmem:[%s4293_s7 + $0x28] sm:$0xff]  ;;  %v1094_v22 = vld [vmem:[%s4293_s7 + $0x30] sm:$0xff]  ;;  %v1096_v28 = vld [vmem:[%s4293_s7 + $0x40] sm:$0xff] }
  0x20   : > { %v1349_v17 = vsub.f32 %v1093_v14, %v837_v13  ;;  %v1350_v24 = vsub.f32 %v1094_v22, %v838_v21  ;;  %v841_v25 = vld [vmem:[%s4288_s4 + $0x48] sm:$0xff]  ;;  %v1352_v30 = vsub.f32 %v1096_v28, %v840_v27  ;;  %v843_v31 = vld [vmem:[%s4288_s4 + $0x58] sm:$0xff]  ;;  %v842_v33 = vld [vmem:[%s4288_s4 + $0x50] sm:$0xff] }
  0x21   : > { %v1097_v26 = vld [vmem:[%s4293_s7 + $0x48] sm:$0xff]  ;;  %v1099_v32 = vld [vmem:[%s4293_s7 + $0x58] sm:$0xff]  ;;  %v1098_v34 = vld [vmem:[%s4293_s7 + $0x50] sm:$0xff] }
  0x22   : > { %1617 = vperm.xlu1 %4117, %v1347_v11   ;;  %1607 = vperm.xlu0 %4116, %v1345_v12   ;;  %v1353_v29 = vsub.f32 %v1097_v26, %v841_v25  ;;  %v1355_v35 = vsub.f32 %v1099_v32, %v843_v31  ;;  %v1354_v36 = vsub.f32 %v1098_v34, %v842_v33  ;;  %v845_v37 = vld [vmem:[%s4288_s4 + $0x68] sm:$0xff]  ;;  %v844_v39 = vld [vmem:[%s4288_s4 + $0x60] sm:$0xff]  ;;  %v847_v43 = vld [vmem:[%s4288_s4 + $0x78] sm:$0xff] }
  0x23   : > { %v1101_v38 = vld [vmem:[%s4293_s7 + $0x68] sm:$0xff]  ;;  %v1100_v40 = vld [vmem:[%s4293_s7 + $0x60] sm:$0xff]  ;;  %v1103_v44 = vld [vmem:[%s4293_s7 + $0x78] sm:$0xff] }
  0x24   : > { %v1357_v41 = vsub.f32 %v1101_v38, %v845_v37  ;;  %v1356_v42 = vsub.f32 %v1100_v40, %v844_v39  ;;  %v846_v45 = vld [vmem:[%s4288_s4 + $0x70] sm:$0xff]  ;;  %v1359_v47 = vsub.f32 %v1103_v44, %v847_v43  ;;  %v849_v49 = vld [vmem:[%s4288_s4 + $0x88] sm:$0xff]  ;;  %v848_v51 = vld [vmem:[%s4288_s4 + $0x80] sm:$0xff] }
  0x25   : > { %v1102_v46 = vld [vmem:[%s4293_s7 + $0x70] sm:$0xff]  ;;  %v1105_v50 = vld [vmem:[%s4293_s7 + $0x88] sm:$0xff]  ;;  %v1104_v52 = vld [vmem:[%s4293_s7 + $0x80] sm:$0xff] }
  0x26   : > { %1627 = vperm.xlu1 %4117, %v1349_v17   ;;  %1622 = vperm.xlu0 %4116, %v1348_v18   ;;  %v1358_v48 = vsub.f32 %v1102_v46, %v846_v45  ;;  %v1361_v53 = vsub.f32 %v1105_v50, %v849_v49  ;;  %v1360_v54 = vsub.f32 %v1104_v52, %v848_v51  ;;  %v851_v55 = vld [vmem:[%s4288_s4 + $0x98] sm:$0xff]  ;;  %v850_v57 = vld [vmem:[%s4288_s4 + $0x90] sm:$0xff]  ;;  %v853_v61 = vld [vmem:[%s4288_s4 + $0xa8] sm:$0xff] }
  0x27   : > { %v1107_v56 = vld [vmem:[%s4293_s7 + $0x98] sm:$0xff]  ;;  %v1106_v58 = vld [vmem:[%s4293_s7 + $0x90] sm:$0xff]  ;;  %v1109_v62 = vld [vmem:[%s4293_s7 + $0xa8] sm:$0xff] }
  0x28   : > { %v1363_v59 = vsub.f32 %v1107_v56, %v851_v55  ;;  %v1362_v60 = vsub.f32 %v1106_v58, %v850_v57  ;;  %v852_v63 = vld [vmem:[%s4288_s4 + $0xa0] sm:$0xff]  ;;  %v1365_v1 = vsub.f32 %v1109_v62, %v853_v61  ;;  %v855_v3 = vld [vmem:[%s4288_s4 + $0xb8] sm:$0xff]  ;;  %v854_v5 = vld [vmem:[%s4288_s4 + $0xb0] sm:$0xff] }
  0x29   : > { %v1108_v0 = vld [vmem:[%s4293_s7 + $0xa0] sm:$0xff]  ;;  %v1111_v4 = vld [vmem:[%s4293_s7 + $0xb8] sm:$0xff]  ;;  %v1110_v6 = vld [vmem:[%s4293_s7 + $0xb0] sm:$0xff] }
  0x2a   : > { %1637 = vperm.xlu1 %4117, %v1351_v23   ;;  %1632 = vperm.xlu0 %4116, %v1350_v24   ;;  %v1364_v2 = vsub.f32 %v1108_v0, %v852_v63  ;;  %v1367_v7 = vsub.f32 %v1111_v4, %v855_v3  ;;  %v1366_v8 = vsub.f32 %v1110_v6, %v854_v5  ;;  %v857_v9 = vld [vmem:[%s4288_s4 + $0xc8] sm:$0xff]  ;;  %v856_v11 = vld [vmem:[%s4288_s4 + $0xc0] sm:$0xff]  ;;  %v859_v15 = vld [vmem:[%s4288_s4 + $0xd8] sm:$0xff] }
  0x2b   : > { %v1113_v10 = vld [vmem:[%s4293_s7 + $0xc8] sm:$0xff]  ;;  %v1112_v12 = vld [vmem:[%s4293_s7 + $0xc0] sm:$0xff]  ;;  %v1115_v16 = vld [vmem:[%s4293_s7 + $0xd8] sm:$0xff] }
  0x2c   : > { %v1369_v13 = vsub.f32 %v1113_v10, %v857_v9  ;;  %v1368_v14 = vsub.f32 %v1112_v12, %v856_v11  ;;  %v858_v17 = vld [vmem:[%s4288_s4 + $0xd0] sm:$0xff]  ;;  %v1371_v19 = vsub.f32 %v1115_v16, %v859_v15  ;;  %v861_v21 = vld [vmem:[%s4288_s4 + $0xe8] sm:$0xff]  ;;  %v860_v23 = vld [vmem:[%s4288_s4 + $0xe0] sm:$0xff] }
  0x2d   : > { %v1114_v18 = vld [vmem:[%s4293_s7 + $0xd0] sm:$0xff]  ;;  %v1117_v22 = vld [vmem:[%s4293_s7 + $0xe8] sm:$0xff]  ;;  %v1116_v24 = vld [vmem:[%s4293_s7 + $0xe0] sm:$0xff] }
  0x2e   : > { %1647 = vperm.xlu1 %4117, %v1353_v29   ;;  %1642 = vperm.xlu0 %4116, %v1352_v30   ;;  %v1370_v20 = vsub.f32 %v1114_v18, %v858_v17  ;;  %v1373_v25 = vsub.f32 %v1117_v22, %v861_v21  ;;  %v1372_v26 = vsub.f32 %v1116_v24, %v860_v23  ;;  %v863_v27 = vld [vmem:[%s4288_s4 + $0xf8] sm:$0xff]  ;;  %v862_v29 = vld [vmem:[%s4288_s4 + $0xf0] sm:$0xff]  ;;  %v865_v33 = vld [vmem:[%s4288_s4 + $0x108] sm:$0xff] }
  0x2f   : > { %v1119_v28 = vld [vmem:[%s4293_s7 + $0xf8] sm:$0xff]  ;;  %v1118_v30 = vld [vmem:[%s4293_s7 + $0xf0] sm:$0xff]  ;;  %v1121_v34 = vld [vmem:[%s4293_s7 + $0x108] sm:$0xff] }
  0x30   : > { %v1375_v31 = vsub.f32 %v1119_v28, %v863_v27  ;;  %v1374_v32 = vsub.f32 %v1118_v30, %v862_v29  ;;  %v1377_v37 = vsub.f32 %v1121_v34, %v865_v33  ;;  %v867_v39 = vld [vmem:[%s4288_s4 + $0x118] sm:$0xff]  ;;  %v869_v45 = vld [vmem:[%s4288_s4 + $0x128] sm:$0xff] }
  0x31   : > { %v1123_v40 = vld [vmem:[%s4293_s7 + $0x118] sm:$0xff]  ;;  %v1125_v46 = vld [vmem:[%s4293_s7 + $0x128] sm:$0xff] }
  0x32   : > { %1657 = vperm.xlu1 %4117, %v1355_v35   ;;  %1652 = vperm.xlu0 %4116, %v1354_v36   ;;  %v864_v35 = vld [vmem:[%s4288_s4 + $0x100] sm:$0xff]  ;;  %v1379_v43 = vsub.f32 %v1123_v40, %v867_v39  ;;  %v1381_v49 = vsub.f32 %v1125_v46, %v869_v45  ;;  %v871_v51 = vld [vmem:[%s4288_s4 + $0x138] sm:$0xff]  ;;  %v873_v57 = vld [vmem:[%s4288_s4 + $0x148] sm:$0xff] }
  0x33   : > { %v1120_v36 = vld [vmem:[%s4293_s7 + $0x100] sm:$0xff]  ;;  %v1127_v52 = vld [vmem:[%s4293_s7 + $0x138] sm:$0xff]  ;;  %v1129_v58 = vld [vmem:[%s4293_s7 + $0x148] sm:$0xff] }
  0x34   : > { %v1376_v38 = vsub.f32 %v1120_v36, %v864_v35  ;;  %v1383_v55 = vsub.f32 %v1127_v52, %v871_v51  ;;  %v1385_v61 = vsub.f32 %v1129_v58, %v873_v57  ;;  %v875_v63 = vld [vmem:[%s4288_s4 + $0x158] sm:$0xff]  ;;  %v877_v5 = vld [vmem:[%s4288_s4 + $0x168] sm:$0xff] }
  0x35   : > { %v1131_v0 = vld [vmem:[%s4293_s7 + $0x158] sm:$0xff]  ;;  %v1133_v6 = vld [vmem:[%s4293_s7 + $0x168] sm:$0xff] }
  0x36   : > { %1667 = vperm.xlu1 %4117, %v1357_v41   ;;  %1662 = vperm.xlu0 %4116, %v1356_v42   ;;  %v866_v41 = vld [vmem:[%s4288_s4 + $0x110] sm:$0xff]  ;;  %v1387_v3 = vsub.f32 %v1131_v0, %v875_v63  ;;  %v1389_v9 = vsub.f32 %v1133_v6, %v877_v5  ;;  %v879_v11 = vld [vmem:[%s4288_s4 + $0x178] sm:$0xff]  ;;  %v881_v17 = vld [vmem:[%s4288_s4 + $0x188] sm:$0xff] }
  0x37   : > { %v1122_v42 = vld [vmem:[%s4293_s7 + $0x110] sm:$0xff]  ;;  %v1135_v12 = vld [vmem:[%s4293_s7 + $0x178] sm:$0xff]  ;;  %v1137_v18 = vld [vmem:[%s4293_s7 + $0x188] sm:$0xff] }
  0x38   : > { %v1378_v44 = vsub.f32 %v1122_v42, %v866_v41  ;;  %v1391_v15 = vsub.f32 %v1135_v12, %v879_v11  ;;  %v1393_v21 = vsub.f32 %v1137_v18, %v881_v17  ;;  %v883_v23 = vld [vmem:[%s4288_s4 + $0x198] sm:$0xff]  ;;  %v885_v29 = vld [vmem:[%s4288_s4 + $0x1a8] sm:$0xff]  ;;  %v324_v5 = vld [vmem:[%s4427_s11 + $0x20] sm:$0xff] }
  0x39   : > { %v1139_v24 = vld [vmem:[%s4293_s7 + $0x198] sm:$0xff]  ;;  %v1141_v30 = vld [vmem:[%s4293_s7 + $0x1a8] sm:$0xff] }
  0x3a   : > { %1677 = vperm.xlu1 %4117, %v1359_v47   ;;  %1672 = vperm.xlu0 %4116, %v1358_v48   ;;  %v868_v47 = vld [vmem:[%s4288_s4 + $0x120] sm:$0xff]  ;;  %v1395_v27 = vsub.f32 %v1139_v24, %v883_v23  ;;  %v1397_v33 = vsub.f32 %v1141_v30, %v885_v29  ;;  %v887_v35 = vld [vmem:[%s4288_s4 + $0x1b8] sm:$0xff]  ;;  %v889_v41 = vld [vmem:[%s4288_s4 + $0x1c8] sm:$0xff] }
  0x3b   : > { %v1124_v48 = vld [vmem:[%s4293_s7 + $0x120] sm:$0xff]  ;;  %v1143_v36 = vld [vmem:[%s4293_s7 + $0x1b8] sm:$0xff]  ;;  %v1145_v42 = vld [vmem:[%s4293_s7 + $0x1c8] sm:$0xff] }
  0x3c   : > { %v1380_v50 = vsub.f32 %v1124_v48, %v868_v47  ;;  %v1399_v39 = vsub.f32 %v1143_v36, %v887_v35  ;;  %v1401_v45 = vsub.f32 %v1145_v42, %v889_v41  ;;  %v891_v47 = vld [vmem:[%s4288_s4 + $0x1d8] sm:$0xff]  ;;  %v325_v6 = vld [vmem:[%s4427_s11 + $0x28] sm:$0xff]  ;;  %v322_v24 = vld [vmem:[%s4427_s11 + $0x10] sm:$0xff] }
  0x3d   : > { %v1147_v48 = vld [vmem:[%s4293_s7 + $0x1d8] sm:$0xff]  ;;  %v321_v12 = vld [vmem:[%s4427_s11 + $0x8] sm:$0xff]  ;;  %v900_v29 = vld [vmem:[%s4288_s4 + $0x220] sm:$0xff] }
  0x3e   : > { %1687 = vperm.xlu1 %4117, %v1361_v53   ;;  %1682 = vperm.xlu0 %4116, %v1360_v54   ;;  %v870_v53 = vld [vmem:[%s4288_s4 + $0x130] sm:$0xff]  ;;  %v1403_v51 = vsub.f32 %v1147_v48, %v891_v47  ;;  %v1155_v11 = vld [vmem:[%s4293_s7 + $0x218] sm:$0xff]  ;;  %v1156_v30 = vld [vmem:[%s4293_s7 + $0x220] sm:$0xff] }
  0x3f   : > { %v1126_v54 = vld [vmem:[%s4293_s7 + $0x130] sm:$0xff]  ;;  %v331_v36 = vld [vmem:[%s4427_s11 + $0x58] sm:$0xff]  ;;  %v1412_v41 = vsub.f32 %v1156_v30, %v900_v29  ;;  %v908_v29 = vld [vmem:[%s4288_s4 + $0x260] sm:$0xff] }
  0x40   : > { %v1382_v56 = vsub.f32 %v1126_v54, %v870_v53  ;;  %v893_v53 = vld [vmem:[%s4288_s4 + $0x1e8] sm:$0xff]  ;;  %v330_v35 = vld [vmem:[%s4427_s11 + $0x50] sm:$0xff]  ;;  %v903_v42 = vld [vmem:[%s4288_s4 + $0x238] sm:$0xff] }
  0x41   : > { %v1149_v54 = vld [vmem:[%s4293_s7 + $0x1e8] sm:$0xff]  ;;  %v1164_v30 = vld [vmem:[%s4293_s7 + $0x260] sm:$0xff] }
  0x42   : > { %1697 = vperm.xlu1 %4117, %v1363_v59   ;;  %1692 = vperm.xlu0 %4116, %v1362_v60   ;;  %v872_v59 = vld [vmem:[%s4288_s4 + $0x140] sm:$0xff]  ;;  %v1405_v57 = vsub.f32 %v1149_v54, %v893_v53 }
  0x43   : > { %v1128_v60 = vld [vmem:[%s4293_s7 + $0x140] sm:$0xff] }
  0x44   : > { %v1384_v62 = vsub.f32 %v1128_v60, %v872_v59  ;;  %v895_v59 = vld [vmem:[%s4288_s4 + $0x1f8] sm:$0xff] }
  0x45   : > { %v1151_v60 = vld [vmem:[%s4293_s7 + $0x1f8] sm:$0xff] }
  0x46   : > { %1707 = vperm.xlu1 %4117, %v1365_v1   ;;  %1702 = vperm.xlu0 %4116, %v1364_v2   ;;  %v874_v1 = vld [vmem:[%s4288_s4 + $0x150] sm:$0xff]  ;;  %v1407_v63 = vsub.f32 %v1151_v60, %v895_v59  ;;  %v1161_v59 = vld [vmem:[%s4293_s7 + $0x248] sm:$0xff] }
  0x47   : > { %v1130_v2 = vld [vmem:[%s4293_s7 + $0x150] sm:$0xff]  ;;  %v333_v60 = vld [vmem:[%s4427_s11 + $0x68] sm:$0xff] }
  0x48   : > { %v1386_v4 = vsub.f32 %v1130_v2, %v874_v1  ;;  %v897_v1 = vld [vmem:[%s4288_s4 + $0x208] sm:$0xff] }
  0x49   : > { %v1153_v2 = vld [vmem:[%s4293_s7 + $0x208] sm:$0xff] }
  0x4a   : > { %1717 = vperm.xlu1 %4117, %v1367_v7   ;;  %1712 = vperm.xlu0 %4116, %v1366_v8   ;;  %v876_v7 = vld [vmem:[%s4288_s4 + $0x160] sm:$0xff] }
  0x4b   : > { %v1132_v8 = vld [vmem:[%s4293_s7 + $0x160] sm:$0xff] }
  0x4c   : > { %v1388_v10 = vsub.f32 %v1132_v8, %v876_v7  ;;  %v1409_v7 = vsub.f32 %v1153_v2, %v897_v1  ;;  %v320_v8 = vld [vmem:[%s4427_s11] sm:$0xff] }
  0x4e   : > { %1727 = vperm.xlu1 %4117, %v1369_v13   ;;  %1722 = vperm.xlu0 %4116, %v1368_v14   ;;  %v878_v13 = vld [vmem:[%s4288_s4 + $0x170] sm:$0xff] }
  0x4f   : > { %v1134_v14 = vld [vmem:[%s4293_s7 + $0x170] sm:$0xff] }
  0x50   : > { %v1390_v16 = vsub.f32 %v1134_v14, %v878_v13  ;;  %v898_v13 = vld [vmem:[%s4288_s4 + $0x210] sm:$0xff] }
  0x51   : > { %v1154_v14 = vld [vmem:[%s4293_s7 + $0x210] sm:$0xff] }
  0x52   : > { %1737 = vperm.xlu1 %4117, %v1371_v19   ;;  %1732 = vperm.xlu0 %4116, %v1370_v20   ;;  %v880_v19 = vld [vmem:[%s4288_s4 + $0x180] sm:$0xff] }
  0x53   : > { %v1136_v20 = vld [vmem:[%s4293_s7 + $0x180] sm:$0xff] }
  0x54   : > { %v1392_v22 = vsub.f32 %v1136_v20, %v880_v19  ;;  %v326_v19 = vld [vmem:[%s4427_s11 + $0x30] sm:$0xff]  ;;  %v327_v20 = vld [vmem:[%s4427_s11 + $0x38] sm:$0xff] }
  0x56   : > { %1747 = vperm.xlu1 %4117, %v1373_v25   ;;  %1742 = vperm.xlu0 %4116, %v1372_v26   ;;  %v882_v25 = vld [vmem:[%s4288_s4 + $0x190] sm:$0xff] }
  0x57   : > { %v1138_v26 = vld [vmem:[%s4293_s7 + $0x190] sm:$0xff] }
  0x58   : > { %v1394_v28 = vsub.f32 %v1138_v26, %v882_v25  ;;  %v1410_v25 = vsub.f32 %v1154_v14, %v898_v13  ;;  %v901_v26 = vld [vmem:[%s4288_s4 + $0x228] sm:$0xff]  ;;  %v906_v13 = vld [vmem:[%s4288_s4 + $0x250] sm:$0xff] }
  0x59   : > { %v1162_v14 = vld [vmem:[%s4293_s7 + $0x250] sm:$0xff] }
  0x5a   : > { %1757 = vperm.xlu1 %4117, %v1375_v31   ;;  %1752 = vperm.xlu0 %4116, %v1374_v32   ;;  %v884_v31 = vld [vmem:[%s4288_s4 + $0x1a0] sm:$0xff] }
  0x5b   : > { %v1140_v32 = vld [vmem:[%s4293_s7 + $0x1a0] sm:$0xff] }
  0x5c   : > { %v1396_v34 = vsub.f32 %v1140_v32, %v884_v31 }
  0x5e   : > { %1767 = vperm.xlu1 %4117, %v1377_v37   ;;  %1762 = vperm.xlu0 %4116, %v1376_v38   ;;  %v886_v37 = vld [vmem:[%s4288_s4 + $0x1b0] sm:$0xff] }
  0x5f   : > { %v1142_v38 = vld [vmem:[%s4293_s7 + $0x1b0] sm:$0xff] }
  0x60   : > { %v1398_v40 = vsub.f32 %v1142_v38, %v886_v37 }
  0x62   : > { %1777 = vperm.xlu1 %4117, %v1379_v43   ;;  %1772 = vperm.xlu0 %4116, %v1378_v44   ;;  %v888_v43 = vld [vmem:[%s4288_s4 + $0x1c0] sm:$0xff] }
  0x63   : > { %v1144_v44 = vld [vmem:[%s4293_s7 + $0x1c0] sm:$0xff] }
  0x64   : > { %v1400_v46 = vsub.f32 %v1144_v44, %v888_v43  ;;  %v1159_v43 = vld [vmem:[%s4293_s7 + $0x238] sm:$0xff]  ;;  %v329_v44 = vld [vmem:[%s4427_s11 + $0x48] sm:$0xff] }
  0x65   : > { %v1415_v53 = vsub.f32 %v1159_v43, %v903_v42  ;;  %v911_v42 = vld [vmem:[%s4288_s4 + $0x278] sm:$0xff] }
  0x66   : > { %1787 = vperm.xlu1 %4117, %v1381_v49   ;;  %1782 = vperm.xlu0 %4116, %v1380_v50   ;;  %v890_v49 = vld [vmem:[%s4288_s4 + $0x1d0] sm:$0xff]  ;;  %v1167_v43 = vld [vmem:[%s4293_s7 + $0x278] sm:$0xff] }
  0x67   : > { %v1146_v50 = vld [vmem:[%s4293_s7 + $0x1d0] sm:$0xff] }
  0x68   : > { %v1402_v52 = vsub.f32 %v1146_v50, %v890_v49 }
  0x6a   : > { %1797 = vperm.xlu1 %4117, %v1383_v55   ;;  %1792 = vperm.xlu0 %4116, %v1382_v56   ;;  %v892_v55 = vld [vmem:[%s4288_s4 + $0x1e0] sm:$0xff] }
  0x6b   : > { %v1148_v56 = vld [vmem:[%s4293_s7 + $0x1e0] sm:$0xff] }
  0x6c   : > { %v1404_v58 = vsub.f32 %v1148_v56, %v892_v55  ;;  %v332_v56 = vld [vmem:[%s4427_s11 + $0x60] sm:$0xff] }
  0x6e   : > { %1807 = vperm.xlu1 %4117, %v1385_v61   ;;  %1802 = vperm.xlu0 %4116, %v1384_v62   ;;  %v894_v61 = vld [vmem:[%s4288_s4 + $0x1f0] sm:$0xff] }
  0x6f   : > { %v1150_v62 = vld [vmem:[%s4293_s7 + $0x1f0] sm:$0xff] }
  0x70   : > { %v1406_v0 = vsub.f32 %v1150_v62, %v894_v61  ;;  %v904_v61 = vld [vmem:[%s4288_s4 + $0x240] sm:$0xff] }
  0x71   : > { %v1160_v62 = vld [vmem:[%s4293_s7 + $0x240] sm:$0xff] }
  0x72   : > { %1817 = vperm.xlu1 %4117, %v1387_v3   ;;  %1812 = vperm.xlu0 %4116, %v1386_v4   ;;  %v896_v3 = vld [vmem:[%s4288_s4 + $0x200] sm:$0xff] }
  0x73   : > { %v1152_v4 = vld [vmem:[%s4293_s7 + $0x200] sm:$0xff] }
  0x76   : > { %1827 = vperm.xlu1 %4117, %v1389_v9   ;;  %1822 = vperm.xlu0 %4116, %v1388_v10   ;;  %v1408_v9 = vsub.f32 %v1152_v4, %v896_v3  ;;  %v899_v10 = vld [vmem:[%s4288_s4 + $0x218] sm:$0xff]  ;;  %v338_v3 = vld [vmem:[%s4427_s11 + $0x90] sm:$0xff] }
  0x77   : > { %v339_v4 = vld [vmem:[%s4427_s11 + $0x98] sm:$0xff] }
  0x7a   : > { %1837 = vperm.xlu1 %4117, %v1391_v15   ;;  %1832 = vperm.xlu0 %4116, %v1390_v16  }
  0x7e   : > { %1847 = vperm.xlu1 %4117, %v1393_v21   ;;  %1842 = vperm.xlu0 %4116, %v1392_v22   ;;  %v1411_v21 = vsub.f32 %v1155_v11, %v899_v10  ;;  %v907_v10 = vld [vmem:[%s4288_s4 + $0x258] sm:$0xff] }
  0x7f   : > { %v1163_v11 = vld [vmem:[%s4293_s7 + $0x258] sm:$0xff] }
  0x82   : > { %1857 = vperm.xlu1 %4117, %v1395_v27   ;;  %1852 = vperm.xlu0 %4116, %v1394_v28   ;;  %v1157_v27 = vld [vmem:[%s4293_s7 + $0x228] sm:$0xff]  ;;  %v323_v28 = vld [vmem:[%s4427_s11 + $0x18] sm:$0xff] }
  0x83   : > { %v1413_v37 = vsub.f32 %v1157_v27, %v901_v26  ;;  %v909_v26 = vld [vmem:[%s4288_s4 + $0x268] sm:$0xff] }
  0x84   : > { %v1165_v27 = vld [vmem:[%s4293_s7 + $0x268] sm:$0xff] }
  0x86   : > { %1867 = vperm.xlu1 %4117, %v1397_v33   ;;  %1862 = vperm.xlu0 %4116, %v1396_v34  }
  0x8a   : > { %1877 = vperm.xlu1 %4117, %v1399_v39   ;;  %1872 = vperm.xlu0 %4116, %v1398_v40   ;;  %v328_v40 = vld [vmem:[%s4427_s11 + $0x40] sm:$0xff] }
  0x8e   : > { %1887 = vperm.xlu1 %4117, %v1401_v45   ;;  %1882 = vperm.xlu0 %4116, %v1400_v46   ;;  %v902_v45 = vld [vmem:[%s4288_s4 + $0x230] sm:$0xff] }
  0x8f   : > { %v1158_v46 = vld [vmem:[%s4293_s7 + $0x230] sm:$0xff] }
  0x92   : > { %1897 = vperm.xlu1 %4117, %v1403_v51   ;;  %1892 = vperm.xlu0 %4116, %v1402_v52   ;;  %v334_v51 = vld [vmem:[%s4427_s11 + $0x70] sm:$0xff]  ;;  %v335_v52 = vld [vmem:[%s4427_s11 + $0x78] sm:$0xff] }
  0x96   : > { %1907 = vperm.xlu1 %4117, %v1405_v57   ;;  %1902 = vperm.xlu0 %4116, %v1404_v58   ;;  %v1414_v57 = vsub.f32 %v1158_v46, %v902_v45  ;;  %v905_v58 = vld [vmem:[%s4288_s4 + $0x248] sm:$0xff]  ;;  %v910_v45 = vld [vmem:[%s4288_s4 + $0x270] sm:$0xff] }
  0x97   : > { %v1166_v46 = vld [vmem:[%s4293_s7 + $0x270] sm:$0xff] }
  0x9a   : > { %1917 = vperm.xlu1 %4117, %v1407_v63   ;;  %1912 = vperm.xlu0 %4116, %v1406_v0  }
  0x9d   : > { %v1613_v15 = vpop.permute.xlu1 %1612  ;;  %v1603_v18 = vpop.permute.xlu0 %1602 }
  0x9e   : > { %v2884_v16 = vmul.f32 %v1613_v15, %v324_v5  ;;  %v2885_v17 = vmul.f32 %v1613_v15, %v325_v6  ;;  %1927 = vperm.xlu1 %4117, %v1409_v7   ;;  %v2880_v22 = vmul.f32 %v1603_v18, %v320_v8  ;;  %v2881_v23 = vmul.f32 %v1603_v18, %v321_v12  ;;  %v336_v8 = vld [vmem:[%s4427_s11 + $0x80] sm:$0xff]  ;;  %v337_v12 = vld [vmem:[%s4427_s11 + $0x88] sm:$0xff] }
  0x9f   : > { %1922 = vperm.xlu0 %4116, %v1408_v9   ;;  %v1417_v5 = vsub.f32 %v1161_v59, %v905_v58  ;;  %v1416_v9 = vsub.f32 %v1160_v62, %v904_v61  ;;  %v913_v58 = vld [vmem:[%s4288_s4 + $0x288] sm:$0xff]  ;;  %v912_v61 = vld [vmem:[%s4288_s4 + $0x280] sm:$0xff] }
  0xa0   : > { %3396 = vst [vmem:[%s4449_s21 + $0x20] sm:$0xff] %v2884_v16  ;;  %3397 = vst [vmem:[%s4449_s21 + $0x28] sm:$0xff] %v2885_v17  ;;  %v1169_v59 = vld [vmem:[%s4293_s7 + $0x288] sm:$0xff]  ;;  %v1168_v62 = vld [vmem:[%s4293_s7 + $0x280] sm:$0xff] }
  0xa1   : > { %3392 = vst [vmem:[%s4449_s21] sm:$0xff] %v2880_v22  ;;  %3393 = vst [vmem:[%s4449_s21 + $0x8] sm:$0xff] %v2881_v23  ;;  %v1618_v31 = vpop.permute.xlu1 %1617  ;;  %v1608_v34 = vpop.permute.xlu0 %1607 }
  0xa2   : > { %v2886_v32 = vmul.f32 %v1618_v31, %v326_v19  ;;  %v2887_v33 = vmul.f32 %v1618_v31, %v327_v20  ;;  %1937 = vperm.xlu1 %4117, %v1411_v21   ;;  %v2882_v38 = vmul.f32 %v1608_v34, %v322_v24  ;;  %v2883_v39 = vmul.f32 %v1608_v34, %v323_v28  ;;  %v342_v19 = vld [vmem:[%s4427_s11 + $0xb0] sm:$0xff]  ;;  %v343_v20 = vld [vmem:[%s4427_s11 + $0xb8] sm:$0xff]  ;;  %v340_v24 = vld [vmem:[%s4427_s11 + $0xa0] sm:$0xff] }
  0xa3   : > { %1932 = vperm.xlu0 %4116, %v1410_v25   ;;  %v1419_v21 = vsub.f32 %v1163_v11, %v907_v10  ;;  %v1418_v25 = vsub.f32 %v1162_v14, %v906_v13  ;;  %v341_v28 = vld [vmem:[%s4427_s11 + $0xa8] sm:$0xff]  ;;  %v915_v10 = vld [vmem:[%s4288_s4 + $0x298] sm:$0xff]  ;;  %v914_v13 = vld [vmem:[%s4288_s4 + $0x290] sm:$0xff] }
  0xa4   : > { %3398 = vst [vmem:[%s4449_s21 + $0x30] sm:$0xff] %v2886_v32  ;;  %3399 = vst [vmem:[%s4449_s21 + $0x38] sm:$0xff] %v2887_v33  ;;  %v1171_v11 = vld [vmem:[%s4293_s7 + $0x298] sm:$0xff]  ;;  %v1170_v14 = vld [vmem:[%s4293_s7 + $0x290] sm:$0xff] }
  0xa5   : > { %3394 = vst [vmem:[%s4449_s21 + $0x10] sm:$0xff] %v2882_v38  ;;  %3395 = vst [vmem:[%s4449_s21 + $0x18] sm:$0xff] %v2883_v39  ;;  %v1628_v47 = vpop.permute.xlu1 %1627  ;;  %v1623_v50 = vpop.permute.xlu0 %1622 }
  0xa6   : > { %v2890_v48 = vmul.f32 %v1628_v47, %v330_v35  ;;  %v2891_v49 = vmul.f32 %v1628_v47, %v331_v36  ;;  %1947 = vperm.xlu1 %4117, %v1413_v37   ;;  %v2888_v54 = vmul.f32 %v1623_v50, %v328_v40  ;;  %v2889_v55 = vmul.f32 %v1623_v50, %v329_v44  ;;  %v346_v35 = vld [vmem:[%s4427_s11 + $0xd0] sm:$0xff]  ;;  %v347_v36 = vld [vmem:[%s4427_s11 + $0xd8] sm:$0xff]  ;;  %v344_v40 = vld [vmem:[%s4427_s11 + $0xc0] sm:$0xff] }
  0xa7   : > { %1942 = vperm.xlu0 %4116, %v1412_v41   ;;  %v1421_v37 = vsub.f32 %v1165_v27, %v909_v26  ;;  %v1420_v41 = vsub.f32 %v1164_v30, %v908_v29  ;;  %v345_v44 = vld [vmem:[%s4427_s11 + $0xc8] sm:$0xff]  ;;  %v916_v29 = vld [vmem:[%s4288_s4 + $0x2a0] sm:$0xff] }
  0xa8   : > { %3402 = vst [vmem:[%s4449_s21 + $0x50] sm:$0xff] %v2890_v48  ;;  %3403 = vst [vmem:[%s4449_s21 + $0x58] sm:$0xff] %v2891_v49  ;;  %v917_v26 = vld [vmem:[%s4288_s4 + $0x2a8] sm:$0xff]  ;;  %v1172_v30 = vld [vmem:[%s4293_s7 + $0x2a0] sm:$0xff] }
  0xa9   : > { %3400 = vst [vmem:[%s4449_s21 + $0x40] sm:$0xff] %v2888_v54  ;;  %3401 = vst [vmem:[%s4449_s21 + $0x48] sm:$0xff] %v2889_v55  ;;  %v1638_v63 = vpop.permute.xlu1 %1637  ;;  %v1633_v2 = vpop.permute.xlu0 %1632  ;;  %v1173_v27 = vld [vmem:[%s4293_s7 + $0x2a8] sm:$0xff] }
  0xaa   : > { %v2894_v0 = vmul.f32 %v1638_v63, %v334_v51  ;;  %v2895_v1 = vmul.f32 %v1638_v63, %v335_v52  ;;  %1957 = vperm.xlu1 %4117, %v1415_v53   ;;  %v2892_v6 = vmul.f32 %v1633_v2, %v332_v56  ;;  %v2893_v7 = vmul.f32 %v1633_v2, %v333_v60  ;;  %v350_v51 = vld [vmem:[%s4427_s11 + $0xf0] sm:$0xff]  ;;  %v351_v52 = vld [vmem:[%s4427_s11 + $0xf8] sm:$0xff]  ;;  %v348_v56 = vld [vmem:[%s4427_s11 + $0xe0] sm:$0xff] }
  0xab   : > { %1952 = vperm.xlu0 %4116, %v1414_v57   ;;  %v1423_v53 = vsub.f32 %v1167_v43, %v911_v42  ;;  %v1422_v57 = vsub.f32 %v1166_v46, %v910_v45  ;;  %v349_v60 = vld [vmem:[%s4427_s11 + $0xe8] sm:$0xff]  ;;  %v919_v42 = vld [vmem:[%s4288_s4 + $0x2b8] sm:$0xff]  ;;  %v918_v45 = vld [vmem:[%s4288_s4 + $0x2b0] sm:$0xff] }
  0xac   : > { %3406 = vst [vmem:[%s4449_s21 + $0x70] sm:$0xff] %v2894_v0  ;;  %3407 = vst [vmem:[%s4449_s21 + $0x78] sm:$0xff] %v2895_v1  ;;  %v1175_v43 = vld [vmem:[%s4293_s7 + $0x2b8] sm:$0xff]  ;;  %v1174_v46 = vld [vmem:[%s4293_s7 + $0x2b0] sm:$0xff] }
  0xad   : > { %3404 = vst [vmem:[%s4449_s21 + $0x60] sm:$0xff] %v2892_v6  ;;  %3405 = vst [vmem:[%s4449_s21 + $0x68] sm:$0xff] %v2893_v7  ;;  %v1648_v15 = vpop.permute.xlu1 %1647  ;;  %v1643_v18 = vpop.permute.xlu0 %1642 }
  0xae   : > { %v2898_v16 = vmul.f32 %v1648_v15, %v338_v3  ;;  %v2899_v17 = vmul.f32 %v1648_v15, %v339_v4  ;;  %1967 = vperm.xlu1 %4117, %v1417_v5   ;;  %v2896_v22 = vmul.f32 %v1643_v18, %v336_v8  ;;  %v2897_v23 = vmul.f32 %v1643_v18, %v337_v12  ;;  %v354_v3 = vld [vmem:[%s4427_s11 + $0x110] sm:$0xff]  ;;  %v355_v4 = vld [vmem:[%s4427_s11 + $0x118] sm:$0xff]  ;;  %v352_v8 = vld [vmem:[%s4427_s11 + $0x100] sm:$0xff] }
  0xaf   : > { %1962 = vperm.xlu0 %4116, %v1416_v9   ;;  %v1425_v5 = vsub.f32 %v1169_v59, %v913_v58  ;;  %v1424_v9 = vsub.f32 %v1168_v62, %v912_v61  ;;  %v353_v12 = vld [vmem:[%s4427_s11 + $0x108] sm:$0xff]  ;;  %v920_v61 = vld [vmem:[%s4288_s4 + $0x2c0] sm:$0xff] }
  0xb0   : > { %3410 = vst [vmem:[%s4449_s21 + $0x90] sm:$0xff] %v2898_v16  ;;  %3411 = vst [vmem:[%s4449_s21 + $0x98] sm:$0xff] %v2899_v17  ;;  %v921_v58 = vld [vmem:[%s4288_s4 + $0x2c8] sm:$0xff]  ;;  %v1176_v62 = vld [vmem:[%s4293_s7 + $0x2c0] sm:$0xff] }
  0xb1   : > { %3408 = vst [vmem:[%s4449_s21 + $0x80] sm:$0xff] %v2896_v22  ;;  %3409 = vst [vmem:[%s4449_s21 + $0x88] sm:$0xff] %v2897_v23  ;;  %v1658_v31 = vpop.permute.xlu1 %1657  ;;  %v1653_v34 = vpop.permute.xlu0 %1652  ;;  %v1177_v59 = vld [vmem:[%s4293_s7 + $0x2c8] sm:$0xff] }
  0xb2   : > { %v2902_v32 = vmul.f32 %v1658_v31, %v342_v19  ;;  %v2903_v33 = vmul.f32 %v1658_v31, %v343_v20  ;;  %1977 = vperm.xlu1 %4117, %v1419_v21   ;;  %v2900_v38 = vmul.f32 %v1653_v34, %v340_v24  ;;  %v2901_v39 = vmul.f32 %v1653_v34, %v341_v28  ;;  %v358_v19 = vld [vmem:[%s4427_s11 + $0x130] sm:$0xff]  ;;  %v359_v20 = vld [vmem:[%s4427_s11 + $0x138] sm:$0xff]  ;;  %v356_v24 = vld [vmem:[%s4427_s11 + $0x120] sm:$0xff] }
  0xb3   : > { %1972 = vperm.xlu0 %4116, %v1418_v25   ;;  %v1427_v21 = vsub.f32 %v1171_v11, %v915_v10  ;;  %v1426_v25 = vsub.f32 %v1170_v14, %v914_v13  ;;  %v357_v28 = vld [vmem:[%s4427_s11 + $0x128] sm:$0xff]  ;;  %v923_v10 = vld [vmem:[%s4288_s4 + $0x2d8] sm:$0xff]  ;;  %v922_v13 = vld [vmem:[%s4288_s4 + $0x2d0] sm:$0xff] }
  0xb4   : > { %3414 = vst [vmem:[%s4449_s21 + $0xb0] sm:$0xff] %v2902_v32  ;;  %3415 = vst [vmem:[%s4449_s21 + $0xb8] sm:$0xff] %v2903_v33  ;;  %v1179_v11 = vld [vmem:[%s4293_s7 + $0x2d8] sm:$0xff]  ;;  %v1178_v14 = vld [vmem:[%s4293_s7 + $0x2d0] sm:$0xff] }
  0xb5   : > { %3412 = vst [vmem:[%s4449_s21 + $0xa0] sm:$0xff] %v2900_v38  ;;  %3413 = vst [vmem:[%s4449_s21 + $0xa8] sm:$0xff] %v2901_v39  ;;  %v1668_v47 = vpop.permute.xlu1 %1667  ;;  %v1663_v50 = vpop.permute.xlu0 %1662 }
  0xb6   : > { %v2906_v48 = vmul.f32 %v1668_v47, %v346_v35  ;;  %v2907_v49 = vmul.f32 %v1668_v47, %v347_v36  ;;  %1987 = vperm.xlu1 %4117, %v1421_v37   ;;  %v2904_v54 = vmul.f32 %v1663_v50, %v344_v40  ;;  %v2905_v55 = vmul.f32 %v1663_v50, %v345_v44  ;;  %v362_v35 = vld [vmem:[%s4427_s11 + $0x150] sm:$0xff]  ;;  %v363_v36 = vld [vmem:[%s4427_s11 + $0x158] sm:$0xff]  ;;  %v360_v40 = vld [vmem:[%s4427_s11 + $0x140] sm:$0xff] }
  0xb7   : > { %1982 = vperm.xlu0 %4116, %v1420_v41   ;;  %v1429_v37 = vsub.f32 %v1173_v27, %v917_v26  ;;  %v1428_v41 = vsub.f32 %v1172_v30, %v916_v29  ;;  %v361_v44 = vld [vmem:[%s4427_s11 + $0x148] sm:$0xff]  ;;  %v924_v29 = vld [vmem:[%s4288_s4 + $0x2e0] sm:$0xff] }
  0xb8   : > { %3418 = vst [vmem:[%s4449_s21 + $0xd0] sm:$0xff] %v2906_v48  ;;  %3419 = vst [vmem:[%s4449_s21 + $0xd8] sm:$0xff] %v2907_v49  ;;  %v925_v26 = vld [vmem:[%s4288_s4 + $0x2e8] sm:$0xff]  ;;  %v1180_v30 = vld [vmem:[%s4293_s7 + $0x2e0] sm:$0xff] }
  0xb9   : > { %3416 = vst [vmem:[%s4449_s21 + $0xc0] sm:$0xff] %v2904_v54  ;;  %3417 = vst [vmem:[%s4449_s21 + $0xc8] sm:$0xff] %v2905_v55  ;;  %v1678_v63 = vpop.permute.xlu1 %1677  ;;  %v1673_v2 = vpop.permute.xlu0 %1672  ;;  %v1181_v27 = vld [vmem:[%s4293_s7 + $0x2e8] sm:$0xff] }
  0xba   : > { %v2910_v0 = vmul.f32 %v1678_v63, %v350_v51  ;;  %v2911_v1 = vmul.f32 %v1678_v63, %v351_v52  ;;  %1997 = vperm.xlu1 %4117, %v1423_v53   ;;  %v2908_v6 = vmul.f32 %v1673_v2, %v348_v56  ;;  %v2909_v7 = vmul.f32 %v1673_v2, %v349_v60  ;;  %v366_v51 = vld [vmem:[%s4427_s11 + $0x170] sm:$0xff]  ;;  %v367_v52 = vld [vmem:[%s4427_s11 + $0x178] sm:$0xff]  ;;  %v364_v56 = vld [vmem:[%s4427_s11 + $0x160] sm:$0xff] }
  0xbb   : > { %1992 = vperm.xlu0 %4116, %v1422_v57   ;;  %v1431_v53 = vsub.f32 %v1175_v43, %v919_v42  ;;  %v1430_v57 = vsub.f32 %v1174_v46, %v918_v45  ;;  %v365_v60 = vld [vmem:[%s4427_s11 + $0x168] sm:$0xff]  ;;  %v927_v42 = vld [vmem:[%s4288_s4 + $0x2f8] sm:$0xff]  ;;  %v926_v45 = vld [vmem:[%s4288_s4 + $0x2f0] sm:$0xff] }
  0xbc   : > { %3422 = vst [vmem:[%s4449_s21 + $0xf0] sm:$0xff] %v2910_v0  ;;  %3423 = vst [vmem:[%s4449_s21 + $0xf8] sm:$0xff] %v2911_v1  ;;  %v1183_v43 = vld [vmem:[%s4293_s7 + $0x2f8] sm:$0xff]  ;;  %v1182_v46 = vld [vmem:[%s4293_s7 + $0x2f0] sm:$0xff] }
  0xbd   : > { %3420 = vst [vmem:[%s4449_s21 + $0xe0] sm:$0xff] %v2908_v6  ;;  %3421 = vst [vmem:[%s4449_s21 + $0xe8] sm:$0xff] %v2909_v7  ;;  %v1688_v15 = vpop.permute.xlu1 %1687  ;;  %v1683_v18 = vpop.permute.xlu0 %1682 }
  0xbe   : > { %v2914_v16 = vmul.f32 %v1688_v15, %v354_v3  ;;  %v2915_v17 = vmul.f32 %v1688_v15, %v355_v4  ;;  %2007 = vperm.xlu1 %4117, %v1425_v5   ;;  %v2912_v22 = vmul.f32 %v1683_v18, %v352_v8  ;;  %v2913_v23 = vmul.f32 %v1683_v18, %v353_v12  ;;  %v370_v3 = vld [vmem:[%s4427_s11 + $0x190] sm:$0xff]  ;;  %v371_v4 = vld [vmem:[%s4427_s11 + $0x198] sm:$0xff]  ;;  %v368_v8 = vld [vmem:[%s4427_s11 + $0x180] sm:$0xff] }
  0xbf   : > { %2002 = vperm.xlu0 %4116, %v1424_v9   ;;  %v1433_v5 = vsub.f32 %v1177_v59, %v921_v58  ;;  %v1432_v9 = vsub.f32 %v1176_v62, %v920_v61  ;;  %v369_v12 = vld [vmem:[%s4427_s11 + $0x188] sm:$0xff]  ;;  %v928_v61 = vld [vmem:[%s4288_s4 + $0x300] sm:$0xff] }
  0xc0   : > { %3426 = vst [vmem:[%s4449_s21 + $0x110] sm:$0xff] %v2914_v16  ;;  %3427 = vst [vmem:[%s4449_s21 + $0x118] sm:$0xff] %v2915_v17  ;;  %v929_v58 = vld [vmem:[%s4288_s4 + $0x308] sm:$0xff]  ;;  %v1184_v62 = vld [vmem:[%s4293_s7 + $0x300] sm:$0xff] }
  0xc1   : > { %3424 = vst [vmem:[%s4449_s21 + $0x100] sm:$0xff] %v2912_v22  ;;  %3425 = vst [vmem:[%s4449_s21 + $0x108] sm:$0xff] %v2913_v23  ;;  %v1698_v31 = vpop.permute.xlu1 %1697  ;;  %v1693_v34 = vpop.permute.xlu0 %1692  ;;  %v1185_v59 = vld [vmem:[%s4293_s7 + $0x308] sm:$0xff] }
  0xc2   : > { %v2918_v32 = vmul.f32 %v1698_v31, %v358_v19  ;;  %v2919_v33 = vmul.f32 %v1698_v31, %v359_v20  ;;  %2017 = vperm.xlu1 %4117, %v1427_v21   ;;  %v2916_v38 = vmul.f32 %v1693_v34, %v356_v24  ;;  %v2917_v39 = vmul.f32 %v1693_v34, %v357_v28  ;;  %v374_v19 = vld [vmem:[%s4427_s11 + $0x1b0] sm:$0xff]  ;;  %v375_v20 = vld [vmem:[%s4427_s11 + $0x1b8] sm:$0xff]  ;;  %v372_v24 = vld [vmem:[%s4427_s11 + $0x1a0] sm:$0xff] }
  0xc3   : > { %2012 = vperm.xlu0 %4116, %v1426_v25   ;;  %v1435_v21 = vsub.f32 %v1179_v11, %v923_v10  ;;  %v1434_v25 = vsub.f32 %v1178_v14, %v922_v13  ;;  %v373_v28 = vld [vmem:[%s4427_s11 + $0x1a8] sm:$0xff]  ;;  %v931_v10 = vld [vmem:[%s4288_s4 + $0x318] sm:$0xff]  ;;  %v930_v13 = vld [vmem:[%s4288_s4 + $0x310] sm:$0xff] }
  0xc4   : > { %3430 = vst [vmem:[%s4449_s21 + $0x130] sm:$0xff] %v2918_v32  ;;  %3431 = vst [vmem:[%s4449_s21 + $0x138] sm:$0xff] %v2919_v33  ;;  %v1187_v11 = vld [vmem:[%s4293_s7 + $0x318] sm:$0xff]  ;;  %v1186_v14 = vld [vmem:[%s4293_s7 + $0x310] sm:$0xff] }
  0xc5   : > { %3428 = vst [vmem:[%s4449_s21 + $0x120] sm:$0xff] %v2916_v38  ;;  %3429 = vst [vmem:[%s4449_s21 + $0x128] sm:$0xff] %v2917_v39  ;;  %v1708_v47 = vpop.permute.xlu1 %1707  ;;  %v1703_v50 = vpop.permute.xlu0 %1702 }
  0xc6   : > { %v2922_v48 = vmul.f32 %v1708_v47, %v362_v35  ;;  %v2923_v49 = vmul.f32 %v1708_v47, %v363_v36  ;;  %2027 = vperm.xlu1 %4117, %v1429_v37   ;;  %v2920_v54 = vmul.f32 %v1703_v50, %v360_v40  ;;  %v2921_v55 = vmul.f32 %v1703_v50, %v361_v44  ;;  %v378_v35 = vld [vmem:[%s4427_s11 + $0x1d0] sm:$0xff]  ;;  %v379_v36 = vld [vmem:[%s4427_s11 + $0x1d8] sm:$0xff]  ;;  %v376_v40 = vld [vmem:[%s4427_s11 + $0x1c0] sm:$0xff] }
  0xc7   : > { %2022 = vperm.xlu0 %4116, %v1428_v41   ;;  %v1437_v37 = vsub.f32 %v1181_v27, %v925_v26  ;;  %v1436_v41 = vsub.f32 %v1180_v30, %v924_v29  ;;  %v377_v44 = vld [vmem:[%s4427_s11 + $0x1c8] sm:$0xff]  ;;  %v932_v29 = vld [vmem:[%s4288_s4 + $0x320] sm:$0xff] }
  0xc8   : > { %3434 = vst [vmem:[%s4449_s21 + $0x150] sm:$0xff] %v2922_v48  ;;  %3435 = vst [vmem:[%s4449_s21 + $0x158] sm:$0xff] %v2923_v49  ;;  %v933_v26 = vld [vmem:[%s4288_s4 + $0x328] sm:$0xff]  ;;  %v1188_v30 = vld [vmem:[%s4293_s7 + $0x320] sm:$0xff] }
  0xc9   : > { %3432 = vst [vmem:[%s4449_s21 + $0x140] sm:$0xff] %v2920_v54  ;;  %3433 = vst [vmem:[%s4449_s21 + $0x148] sm:$0xff] %v2921_v55  ;;  %v1718_v63 = vpop.permute.xlu1 %1717  ;;  %v1713_v2 = vpop.permute.xlu0 %1712  ;;  %v1189_v27 = vld [vmem:[%s4293_s7 + $0x328] sm:$0xff] }
  0xca   : > { %v2926_v0 = vmul.f32 %v1718_v63, %v366_v51  ;;  %v2927_v1 = vmul.f32 %v1718_v63, %v367_v52  ;;  %2037 = vperm.xlu1 %4117, %v1431_v53   ;;  %v2924_v6 = vmul.f32 %v1713_v2, %v364_v56  ;;  %v2925_v7 = vmul.f32 %v1713_v2, %v365_v60  ;;  %v382_v51 = vld [vmem:[%s4427_s11 + $0x1f0] sm:$0xff]  ;;  %v383_v52 = vld [vmem:[%s4427_s11 + $0x1f8] sm:$0xff]  ;;  %v380_v56 = vld [vmem:[%s4427_s11 + $0x1e0] sm:$0xff] }
  0xcb   : > { %2032 = vperm.xlu0 %4116, %v1430_v57   ;;  %v1439_v53 = vsub.f32 %v1183_v43, %v927_v42  ;;  %v1438_v57 = vsub.f32 %v1182_v46, %v926_v45  ;;  %v381_v60 = vld [vmem:[%s4427_s11 + $0x1e8] sm:$0xff]  ;;  %v935_v42 = vld [vmem:[%s4288_s4 + $0x338] sm:$0xff]  ;;  %v934_v45 = vld [vmem:[%s4288_s4 + $0x330] sm:$0xff] }
  0xcc   : > { %3438 = vst [vmem:[%s4449_s21 + $0x170] sm:$0xff] %v2926_v0  ;;  %3439 = vst [vmem:[%s4449_s21 + $0x178] sm:$0xff] %v2927_v1  ;;  %v1191_v43 = vld [vmem:[%s4293_s7 + $0x338] sm:$0xff]  ;;  %v1190_v46 = vld [vmem:[%s4293_s7 + $0x330] sm:$0xff] }
  0xcd   : > { %3436 = vst [vmem:[%s4449_s21 + $0x160] sm:$0xff] %v2924_v6  ;;  %3437 = vst [vmem:[%s4449_s21 + $0x168] sm:$0xff] %v2925_v7  ;;  %v1728_v15 = vpop.permute.xlu1 %1727  ;;  %v1723_v18 = vpop.permute.xlu0 %1722 }
  0xce   : > { %v2930_v16 = vmul.f32 %v1728_v15, %v370_v3  ;;  %v2931_v17 = vmul.f32 %v1728_v15, %v371_v4  ;;  %2047 = vperm.xlu1 %4117, %v1433_v5   ;;  %v2928_v22 = vmul.f32 %v1723_v18, %v368_v8  ;;  %v2929_v23 = vmul.f32 %v1723_v18, %v369_v12  ;;  %v386_v3 = vld [vmem:[%s4427_s11 + $0x210] sm:$0xff]  ;;  %v387_v4 = vld [vmem:[%s4427_s11 + $0x218] sm:$0xff]  ;;  %v384_v8 = vld [vmem:[%s4427_s11 + $0x200] sm:$0xff] }
  0xcf   : > { %2042 = vperm.xlu0 %4116, %v1432_v9   ;;  %v1441_v5 = vsub.f32 %v1185_v59, %v929_v58  ;;  %v1440_v9 = vsub.f32 %v1184_v62, %v928_v61  ;;  %v385_v12 = vld [vmem:[%s4427_s11 + $0x208] sm:$0xff]  ;;  %v936_v61 = vld [vmem:[%s4288_s4 + $0x340] sm:$0xff] }
  0xd0   : > { %3442 = vst [vmem:[%s4449_s21 + $0x190] sm:$0xff] %v2930_v16  ;;  %3443 = vst [vmem:[%s4449_s21 + $0x198] sm:$0xff] %v2931_v17  ;;  %v937_v58 = vld [vmem:[%s4288_s4 + $0x348] sm:$0xff]  ;;  %v1192_v62 = vld [vmem:[%s4293_s7 + $0x340] sm:$0xff] }
  0xd1   : > { %3440 = vst [vmem:[%s4449_s21 + $0x180] sm:$0xff] %v2928_v22  ;;  %3441 = vst [vmem:[%s4449_s21 + $0x188] sm:$0xff] %v2929_v23  ;;  %v1738_v31 = vpop.permute.xlu1 %1737  ;;  %v1733_v34 = vpop.permute.xlu0 %1732  ;;  %v1193_v59 = vld [vmem:[%s4293_s7 + $0x348] sm:$0xff] }
  0xd2   : > { %v2934_v32 = vmul.f32 %v1738_v31, %v374_v19  ;;  %v2935_v33 = vmul.f32 %v1738_v31, %v375_v20  ;;  %2057 = vperm.xlu1 %4117, %v1435_v21   ;;  %v2932_v38 = vmul.f32 %v1733_v34, %v372_v24  ;;  %v2933_v39 = vmul.f32 %v1733_v34, %v373_v28  ;;  %v390_v19 = vld [vmem:[%s4427_s11 + $0x230] sm:$0xff]  ;;  %v391_v20 = vld [vmem:[%s4427_s11 + $0x238] sm:$0xff]  ;;  %v388_v24 = vld [vmem:[%s4427_s11 + $0x220] sm:$0xff] }
  0xd3   : > { %2052 = vperm.xlu0 %4116, %v1434_v25   ;;  %v1443_v21 = vsub.f32 %v1187_v11, %v931_v10  ;;  %v1442_v25 = vsub.f32 %v1186_v14, %v930_v13  ;;  %v389_v28 = vld [vmem:[%s4427_s11 + $0x228] sm:$0xff]  ;;  %v939_v10 = vld [vmem:[%s4288_s4 + $0x358] sm:$0xff]  ;;  %v938_v13 = vld [vmem:[%s4288_s4 + $0x350] sm:$0xff] }
  0xd4   : > { %3446 = vst [vmem:[%s4449_s21 + $0x1b0] sm:$0xff] %v2934_v32  ;;  %3447 = vst [vmem:[%s4449_s21 + $0x1b8] sm:$0xff] %v2935_v33  ;;  %v1195_v11 = vld [vmem:[%s4293_s7 + $0x358] sm:$0xff]  ;;  %v1194_v14 = vld [vmem:[%s4293_s7 + $0x350] sm:$0xff] }
  0xd5   : > { %3444 = vst [vmem:[%s4449_s21 + $0x1a0] sm:$0xff] %v2932_v38  ;;  %3445 = vst [vmem:[%s4449_s21 + $0x1a8] sm:$0xff] %v2933_v39  ;;  %v1748_v47 = vpop.permute.xlu1 %1747  ;;  %v1743_v50 = vpop.permute.xlu0 %1742 }
  0xd6   : > { %v2938_v48 = vmul.f32 %v1748_v47, %v378_v35  ;;  %v2939_v49 = vmul.f32 %v1748_v47, %v379_v36  ;;  %2067 = vperm.xlu1 %4117, %v1437_v37   ;;  %v2936_v54 = vmul.f32 %v1743_v50, %v376_v40  ;;  %v2937_v55 = vmul.f32 %v1743_v50, %v377_v44  ;;  %v394_v35 = vld [vmem:[%s4427_s11 + $0x250] sm:$0xff]  ;;  %v395_v36 = vld [vmem:[%s4427_s11 + $0x258] sm:$0xff]  ;;  %v392_v40 = vld [vmem:[%s4427_s11 + $0x240] sm:$0xff] }
  0xd7   : > { %2062 = vperm.xlu0 %4116, %v1436_v41   ;;  %v1445_v37 = vsub.f32 %v1189_v27, %v933_v26  ;;  %v1444_v41 = vsub.f32 %v1188_v30, %v932_v29  ;;  %v393_v44 = vld [vmem:[%s4427_s11 + $0x248] sm:$0xff]  ;;  %v940_v29 = vld [vmem:[%s4288_s4 + $0x360] sm:$0xff] }
  0xd8   : > { %3450 = vst [vmem:[%s4449_s21 + $0x1d0] sm:$0xff] %v2938_v48  ;;  %3451 = vst [vmem:[%s4449_s21 + $0x1d8] sm:$0xff] %v2939_v49  ;;  %v941_v26 = vld [vmem:[%s4288_s4 + $0x368] sm:$0xff]  ;;  %v1196_v30 = vld [vmem:[%s4293_s7 + $0x360] sm:$0xff] }
  0xd9   : > { %3448 = vst [vmem:[%s4449_s21 + $0x1c0] sm:$0xff] %v2936_v54  ;;  %3449 = vst [vmem:[%s4449_s21 + $0x1c8] sm:$0xff] %v2937_v55  ;;  %v1758_v63 = vpop.permute.xlu1 %1757  ;;  %v1753_v2 = vpop.permute.xlu0 %1752  ;;  %v1197_v27 = vld [vmem:[%s4293_s7 + $0x368] sm:$0xff] }
  0xda   : > { %v2942_v0 = vmul.f32 %v1758_v63, %v382_v51  ;;  %v2943_v1 = vmul.f32 %v1758_v63, %v383_v52  ;;  %2077 = vperm.xlu1 %4117, %v1439_v53   ;;  %v2940_v6 = vmul.f32 %v1753_v2, %v380_v56  ;;  %v2941_v7 = vmul.f32 %v1753_v2, %v381_v60  ;;  %v398_v51 = vld [vmem:[%s4427_s11 + $0x270] sm:$0xff]  ;;  %v399_v52 = vld [vmem:[%s4427_s11 + $0x278] sm:$0xff]  ;;  %v396_v56 = vld [vmem:[%s4427_s11 + $0x260] sm:$0xff] }
  0xdb   : > { %2072 = vperm.xlu0 %4116, %v1438_v57   ;;  %v1447_v53 = vsub.f32 %v1191_v43, %v935_v42  ;;  %v1446_v57 = vsub.f32 %v1190_v46, %v934_v45  ;;  %v397_v60 = vld [vmem:[%s4427_s11 + $0x268] sm:$0xff]  ;;  %v943_v42 = vld [vmem:[%s4288_s4 + $0x378] sm:$0xff]  ;;  %v942_v45 = vld [vmem:[%s4288_s4 + $0x370] sm:$0xff] }
  0xdc   : > { %3454 = vst [vmem:[%s4449_s21 + $0x1f0] sm:$0xff] %v2942_v0  ;;  %3455 = vst [vmem:[%s4449_s21 + $0x1f8] sm:$0xff] %v2943_v1  ;;  %v1199_v43 = vld [vmem:[%s4293_s7 + $0x378] sm:$0xff]  ;;  %v1198_v46 = vld [vmem:[%s4293_s7 + $0x370] sm:$0xff] }
  0xdd   : > { %3452 = vst [vmem:[%s4449_s21 + $0x1e0] sm:$0xff] %v2940_v6  ;;  %3453 = vst [vmem:[%s4449_s21 + $0x1e8] sm:$0xff] %v2941_v7  ;;  %v1768_v15 = vpop.permute.xlu1 %1767  ;;  %v1763_v18 = vpop.permute.xlu0 %1762 }
  0xde   : > { %v2946_v16 = vmul.f32 %v1768_v15, %v386_v3  ;;  %v2947_v17 = vmul.f32 %v1768_v15, %v387_v4  ;;  %2087 = vperm.xlu1 %4117, %v1441_v5   ;;  %v2944_v22 = vmul.f32 %v1763_v18, %v384_v8  ;;  %v2945_v23 = vmul.f32 %v1763_v18, %v385_v12  ;;  %v402_v3 = vld [vmem:[%s4427_s11 + $0x290] sm:$0xff]  ;;  %v403_v4 = vld [vmem:[%s4427_s11 + $0x298] sm:$0xff]  ;;  %v400_v8 = vld [vmem:[%s4427_s11 + $0x280] sm:$0xff] }
  0xdf   : > { %2082 = vperm.xlu0 %4116, %v1440_v9   ;;  %v1449_v5 = vsub.f32 %v1193_v59, %v937_v58  ;;  %v1448_v9 = vsub.f32 %v1192_v62, %v936_v61  ;;  %v401_v12 = vld [vmem:[%s4427_s11 + $0x288] sm:$0xff]  ;;  %v944_v61 = vld [vmem:[%s4288_s4 + $0x380] sm:$0xff] }
  0xe0   : > { %3458 = vst [vmem:[%s4449_s21 + $0x210] sm:$0xff] %v2946_v16  ;;  %3459 = vst [vmem:[%s4449_s21 + $0x218] sm:$0xff] %v2947_v17  ;;  %v945_v58 = vld [vmem:[%s4288_s4 + $0x388] sm:$0xff]  ;;  %v1200_v62 = vld [vmem:[%s4293_s7 + $0x380] sm:$0xff] }
  0xe1   : > { %3456 = vst [vmem:[%s4449_s21 + $0x200] sm:$0xff] %v2944_v22  ;;  %3457 = vst [vmem:[%s4449_s21 + $0x208] sm:$0xff] %v2945_v23  ;;  %v1778_v31 = vpop.permute.xlu1 %1777  ;;  %v1773_v34 = vpop.permute.xlu0 %1772  ;;  %v1201_v59 = vld [vmem:[%s4293_s7 + $0x388] sm:$0xff] }
  0xe2   : > { %v2950_v32 = vmul.f32 %v1778_v31, %v390_v19  ;;  %v2951_v33 = vmul.f32 %v1778_v31, %v391_v20  ;;  %2097 = vperm.xlu1 %4117, %v1443_v21   ;;  %v2948_v38 = vmul.f32 %v1773_v34, %v388_v24  ;;  %v2949_v39 = vmul.f32 %v1773_v34, %v389_v28  ;;  %v406_v19 = vld [vmem:[%s4427_s11 + $0x2b0] sm:$0xff]  ;;  %v407_v20 = vld [vmem:[%s4427_s11 + $0x2b8] sm:$0xff]  ;;  %v404_v24 = vld [vmem:[%s4427_s11 + $0x2a0] sm:$0xff] }
  0xe3   : > { %2092 = vperm.xlu0 %4116, %v1442_v25   ;;  %v1451_v21 = vsub.f32 %v1195_v11, %v939_v10  ;;  %v1450_v25 = vsub.f32 %v1194_v14, %v938_v13  ;;  %v405_v28 = vld [vmem:[%s4427_s11 + $0x2a8] sm:$0xff]  ;;  %v947_v10 = vld [vmem:[%s4288_s4 + $0x398] sm:$0xff]  ;;  %v946_v13 = vld [vmem:[%s4288_s4 + $0x390] sm:$0xff] }
  0xe4   : > { %3462 = vst [vmem:[%s4449_s21 + $0x230] sm:$0xff] %v2950_v32  ;;  %3463 = vst [vmem:[%s4449_s21 + $0x238] sm:$0xff] %v2951_v33  ;;  %v1203_v11 = vld [vmem:[%s4293_s7 + $0x398] sm:$0xff]  ;;  %v1202_v14 = vld [vmem:[%s4293_s7 + $0x390] sm:$0xff] }
  0xe5   : > { %3460 = vst [vmem:[%s4449_s21 + $0x220] sm:$0xff] %v2948_v38  ;;  %3461 = vst [vmem:[%s4449_s21 + $0x228] sm:$0xff] %v2949_v39  ;;  %v1788_v47 = vpop.permute.xlu1 %1787  ;;  %v1783_v50 = vpop.permute.xlu0 %1782 }
  0xe6   : > { %v2954_v48 = vmul.f32 %v1788_v47, %v394_v35  ;;  %v2955_v49 = vmul.f32 %v1788_v47, %v395_v36  ;;  %2107 = vperm.xlu1 %4117, %v1445_v37   ;;  %v2952_v54 = vmul.f32 %v1783_v50, %v392_v40  ;;  %v2953_v55 = vmul.f32 %v1783_v50, %v393_v44  ;;  %v410_v35 = vld [vmem:[%s4427_s11 + $0x2d0] sm:$0xff]  ;;  %v411_v36 = vld [vmem:[%s4427_s11 + $0x2d8] sm:$0xff]  ;;  %v408_v40 = vld [vmem:[%s4427_s11 + $0x2c0] sm:$0xff] }
  0xe7   : > { %2102 = vperm.xlu0 %4116, %v1444_v41   ;;  %v1453_v37 = vsub.f32 %v1197_v27, %v941_v26  ;;  %v1452_v41 = vsub.f32 %v1196_v30, %v940_v29  ;;  %v409_v44 = vld [vmem:[%s4427_s11 + $0x2c8] sm:$0xff]  ;;  %v948_v29 = vld [vmem:[%s4288_s4 + $0x3a0] sm:$0xff] }
  0xe8   : > { %3466 = vst [vmem:[%s4449_s21 + $0x250] sm:$0xff] %v2954_v48  ;;  %3467 = vst [vmem:[%s4449_s21 + $0x258] sm:$0xff] %v2955_v49  ;;  %v949_v26 = vld [vmem:[%s4288_s4 + $0x3a8] sm:$0xff]  ;;  %v1204_v30 = vld [vmem:[%s4293_s7 + $0x3a0] sm:$0xff] }
  0xe9   : > { %3464 = vst [vmem:[%s4449_s21 + $0x240] sm:$0xff] %v2952_v54  ;;  %3465 = vst [vmem:[%s4449_s21 + $0x248] sm:$0xff] %v2953_v55  ;;  %v1798_v63 = vpop.permute.xlu1 %1797  ;;  %v1793_v2 = vpop.permute.xlu0 %1792  ;;  %v1205_v27 = vld [vmem:[%s4293_s7 + $0x3a8] sm:$0xff] }
  0xea   : > { %v2958_v0 = vmul.f32 %v1798_v63, %v398_v51  ;;  %v2959_v1 = vmul.f32 %v1798_v63, %v399_v52  ;;  %2117 = vperm.xlu1 %4117, %v1447_v53   ;;  %v2956_v6 = vmul.f32 %v1793_v2, %v396_v56  ;;  %v2957_v7 = vmul.f32 %v1793_v2, %v397_v60  ;;  %v414_v51 = vld [vmem:[%s4427_s11 + $0x2f0] sm:$0xff]  ;;  %v415_v52 = vld [vmem:[%s4427_s11 + $0x2f8] sm:$0xff]  ;;  %v412_v56 = vld [vmem:[%s4427_s11 + $0x2e0] sm:$0xff] }
  0xeb   : > { %2112 = vperm.xlu0 %4116, %v1446_v57   ;;  %v1455_v53 = vsub.f32 %v1199_v43, %v943_v42  ;;  %v1454_v57 = vsub.f32 %v1198_v46, %v942_v45  ;;  %v413_v60 = vld [vmem:[%s4427_s11 + $0x2e8] sm:$0xff]  ;;  %v951_v42 = vld [vmem:[%s4288_s4 + $0x3b8] sm:$0xff]  ;;  %v950_v45 = vld [vmem:[%s4288_s4 + $0x3b0] sm:$0xff] }
  0xec   : > { %3470 = vst [vmem:[%s4449_s21 + $0x270] sm:$0xff] %v2958_v0  ;;  %3471 = vst [vmem:[%s4449_s21 + $0x278] sm:$0xff] %v2959_v1  ;;  %v1207_v43 = vld [vmem:[%s4293_s7 + $0x3b8] sm:$0xff]  ;;  %v1206_v46 = vld [vmem:[%s4293_s7 + $0x3b0] sm:$0xff] }
  0xed   : > { %3468 = vst [vmem:[%s4449_s21 + $0x260] sm:$0xff] %v2956_v6  ;;  %3469 = vst [vmem:[%s4449_s21 + $0x268] sm:$0xff] %v2957_v7  ;;  %v1808_v15 = vpop.permute.xlu1 %1807  ;;  %v1803_v18 = vpop.permute.xlu0 %1802 }
  0xee   : > { %v2962_v16 = vmul.f32 %v1808_v15, %v402_v3  ;;  %v2963_v17 = vmul.f32 %v1808_v15, %v403_v4  ;;  %2127 = vperm.xlu1 %4117, %v1449_v5   ;;  %v2960_v22 = vmul.f32 %v1803_v18, %v400_v8  ;;  %v2961_v23 = vmul.f32 %v1803_v18, %v401_v12  ;;  %v418_v3 = vld [vmem:[%s4427_s11 + $0x310] sm:$0xff]  ;;  %v419_v4 = vld [vmem:[%s4427_s11 + $0x318] sm:$0xff]  ;;  %v416_v8 = vld [vmem:[%s4427_s11 + $0x300] sm:$0xff] }
  0xef   : > { %2122 = vperm.xlu0 %4116, %v1448_v9   ;;  %v1457_v5 = vsub.f32 %v1201_v59, %v945_v58  ;;  %v1456_v9 = vsub.f32 %v1200_v62, %v944_v61  ;;  %v417_v12 = vld [vmem:[%s4427_s11 + $0x308] sm:$0xff]  ;;  %v952_v61 = vld [vmem:[%s4288_s4 + $0x3c0] sm:$0xff] }
  0xf0   : > { %3474 = vst [vmem:[%s4449_s21 + $0x290] sm:$0xff] %v2962_v16  ;;  %3475 = vst [vmem:[%s4449_s21 + $0x298] sm:$0xff] %v2963_v17  ;;  %v953_v58 = vld [vmem:[%s4288_s4 + $0x3c8] sm:$0xff]  ;;  %v1208_v62 = vld [vmem:[%s4293_s7 + $0x3c0] sm:$0xff] }
  0xf1   : > { %3472 = vst [vmem:[%s4449_s21 + $0x280] sm:$0xff] %v2960_v22  ;;  %3473 = vst [vmem:[%s4449_s21 + $0x288] sm:$0xff] %v2961_v23  ;;  %v1818_v31 = vpop.permute.xlu1 %1817  ;;  %v1813_v34 = vpop.permute.xlu0 %1812  ;;  %v1209_v59 = vld [vmem:[%s4293_s7 + $0x3c8] sm:$0xff] }
  0xf2   : > { %v2966_v32 = vmul.f32 %v1818_v31, %v406_v19  ;;  %v2967_v33 = vmul.f32 %v1818_v31, %v407_v20  ;;  %2137 = vperm.xlu1 %4117, %v1451_v21   ;;  %v2964_v38 = vmul.f32 %v1813_v34, %v404_v24  ;;  %v2965_v39 = vmul.f32 %v1813_v34, %v405_v28  ;;  %v422_v19 = vld [vmem:[%s4427_s11 + $0x330] sm:$0xff]  ;;  %v423_v20 = vld [vmem:[%s4427_s11 + $0x338] sm:$0xff]  ;;  %v420_v24 = vld [vmem:[%s4427_s11 + $0x320] sm:$0xff] }
  0xf3   : > { %2132 = vperm.xlu0 %4116, %v1450_v25   ;;  %v1459_v21 = vsub.f32 %v1203_v11, %v947_v10  ;;  %v1458_v25 = vsub.f32 %v1202_v14, %v946_v13  ;;  %v421_v28 = vld [vmem:[%s4427_s11 + $0x328] sm:$0xff]  ;;  %v955_v10 = vld [vmem:[%s4288_s4 + $0x3d8] sm:$0xff]  ;;  %v954_v13 = vld [vmem:[%s4288_s4 + $0x3d0] sm:$0xff] }
  0xf4   : > { %3478 = vst [vmem:[%s4449_s21 + $0x2b0] sm:$0xff] %v2966_v32  ;;  %3479 = vst [vmem:[%s4449_s21 + $0x2b8] sm:$0xff] %v2967_v33  ;;  %v1211_v11 = vld [vmem:[%s4293_s7 + $0x3d8] sm:$0xff]  ;;  %v1210_v14 = vld [vmem:[%s4293_s7 + $0x3d0] sm:$0xff] }
  0xf5   : > { %3476 = vst [vmem:[%s4449_s21 + $0x2a0] sm:$0xff] %v2964_v38  ;;  %3477 = vst [vmem:[%s4449_s21 + $0x2a8] sm:$0xff] %v2965_v39  ;;  %v1828_v47 = vpop.permute.xlu1 %1827  ;;  %v1823_v50 = vpop.permute.xlu0 %1822 }
  0xf6   : > { %v2970_v48 = vmul.f32 %v1828_v47, %v410_v35  ;;  %v2971_v49 = vmul.f32 %v1828_v47, %v411_v36  ;;  %2147 = vperm.xlu1 %4117, %v1453_v37   ;;  %v2968_v54 = vmul.f32 %v1823_v50, %v408_v40  ;;  %v2969_v55 = vmul.f32 %v1823_v50, %v409_v44  ;;  %v426_v35 = vld [vmem:[%s4427_s11 + $0x350] sm:$0xff]  ;;  %v427_v36 = vld [vmem:[%s4427_s11 + $0x358] sm:$0xff]  ;;  %v424_v40 = vld [vmem:[%s4427_s11 + $0x340] sm:$0xff] }
  0xf7   : > { %2142 = vperm.xlu0 %4116, %v1452_v41   ;;  %v1461_v37 = vsub.f32 %v1205_v27, %v949_v26  ;;  %v1460_v41 = vsub.f32 %v1204_v30, %v948_v29  ;;  %v425_v44 = vld [vmem:[%s4427_s11 + $0x348] sm:$0xff]  ;;  %v956_v29 = vld [vmem:[%s4288_s4 + $0x3e0] sm:$0xff] }
  0xf8   : > { %3482 = vst [vmem:[%s4449_s21 + $0x2d0] sm:$0xff] %v2970_v48  ;;  %3483 = vst [vmem:[%s4449_s21 + $0x2d8] sm:$0xff] %v2971_v49  ;;  %v957_v26 = vld [vmem:[%s4288_s4 + $0x3e8] sm:$0xff]  ;;  %v1212_v30 = vld [vmem:[%s4293_s7 + $0x3e0] sm:$0xff] }
  0xf9   : > { %3480 = vst [vmem:[%s4449_s21 + $0x2c0] sm:$0xff] %v2968_v54  ;;  %3481 = vst [vmem:[%s4449_s21 + $0x2c8] sm:$0xff] %v2969_v55  ;;  %v1838_v63 = vpop.permute.xlu1 %1837  ;;  %v1833_v2 = vpop.permute.xlu0 %1832  ;;  %v1213_v27 = vld [vmem:[%s4293_s7 + $0x3e8] sm:$0xff] }
  0xfa   : > { %v2974_v0 = vmul.f32 %v1838_v63, %v414_v51  ;;  %v2975_v1 = vmul.f32 %v1838_v63, %v415_v52  ;;  %2157 = vperm.xlu1 %4117, %v1455_v53   ;;  %v2972_v6 = vmul.f32 %v1833_v2, %v412_v56  ;;  %v2973_v7 = vmul.f32 %v1833_v2, %v413_v60  ;;  %v430_v51 = vld [vmem:[%s4427_s11 + $0x370] sm:$0xff]  ;;  %v431_v52 = vld [vmem:[%s4427_s11 + $0x378] sm:$0xff]  ;;  %v428_v56 = vld [vmem:[%s4427_s11 + $0x360] sm:$0xff] }
  0xfb   : > { %2152 = vperm.xlu0 %4116, %v1454_v57   ;;  %v1463_v53 = vsub.f32 %v1207_v43, %v951_v42  ;;  %v1462_v57 = vsub.f32 %v1206_v46, %v950_v45  ;;  %v429_v60 = vld [vmem:[%s4427_s11 + $0x368] sm:$0xff]  ;;  %v959_v42 = vld [vmem:[%s4288_s4 + $0x3f8] sm:$0xff]  ;;  %v958_v45 = vld [vmem:[%s4288_s4 + $0x3f0] sm:$0xff] }
  0xfc   : > { %3486 = vst [vmem:[%s4449_s21 + $0x2f0] sm:$0xff] %v2974_v0  ;;  %3487 = vst [vmem:[%s4449_s21 + $0x2f8] sm:$0xff] %v2975_v1  ;;  %v1215_v43 = vld [vmem:[%s4293_s7 + $0x3f8] sm:$0xff]  ;;  %v1214_v46 = vld [vmem:[%s4293_s7 + $0x3f0] sm:$0xff] }
  0xfd   : > { %3484 = vst [vmem:[%s4449_s21 + $0x2e0] sm:$0xff] %v2972_v6  ;;  %3485 = vst [vmem:[%s4449_s21 + $0x2e8] sm:$0xff] %v2973_v7  ;;  %v1848_v15 = vpop.permute.xlu1 %1847  ;;  %v1843_v18 = vpop.permute.xlu0 %1842 }
  0xfe   : > { %v2978_v16 = vmul.f32 %v1848_v15, %v418_v3  ;;  %v2979_v17 = vmul.f32 %v1848_v15, %v419_v4  ;;  %2167 = vperm.xlu1 %4117, %v1457_v5   ;;  %v2976_v22 = vmul.f32 %v1843_v18, %v416_v8  ;;  %v2977_v23 = vmul.f32 %v1843_v18, %v417_v12  ;;  %v434_v3 = vld [vmem:[%s4427_s11 + $0x390] sm:$0xff]  ;;  %v435_v4 = vld [vmem:[%s4427_s11 + $0x398] sm:$0xff]  ;;  %v432_v8 = vld [vmem:[%s4427_s11 + $0x380] sm:$0xff] }
  0xff   : > { %2162 = vperm.xlu0 %4116, %v1456_v9   ;;  %v1465_v5 = vsub.f32 %v1209_v59, %v953_v58  ;;  %v1464_v9 = vsub.f32 %v1208_v62, %v952_v61  ;;  %v433_v12 = vld [vmem:[%s4427_s11 + $0x388] sm:$0xff]  ;;  %v960_v61 = vld [vmem:[%s4288_s4 + $0x400] sm:$0xff] }
 0x100   : > { %3490 = vst [vmem:[%s4449_s21 + $0x310] sm:$0xff] %v2978_v16  ;;  %3491 = vst [vmem:[%s4449_s21 + $0x318] sm:$0xff] %v2979_v17  ;;  %v961_v58 = vld [vmem:[%s4288_s4 + $0x408] sm:$0xff]  ;;  %v1216_v62 = vld [vmem:[%s4293_s7 + $0x400] sm:$0xff] }
 0x101   : > { %3488 = vst [vmem:[%s4449_s21 + $0x300] sm:$0xff] %v2976_v22  ;;  %3489 = vst [vmem:[%s4449_s21 + $0x308] sm:$0xff] %v2977_v23  ;;  %v1858_v31 = vpop.permute.xlu1 %1857  ;;  %v1853_v34 = vpop.permute.xlu0 %1852  ;;  %v1217_v59 = vld [vmem:[%s4293_s7 + $0x408] sm:$0xff] }
 0x102   : > { %v2982_v32 = vmul.f32 %v1858_v31, %v422_v19  ;;  %v2983_v33 = vmul.f32 %v1858_v31, %v423_v20  ;;  %2177 = vperm.xlu1 %4117, %v1459_v21   ;;  %v2980_v38 = vmul.f32 %v1853_v34, %v420_v24  ;;  %v2981_v39 = vmul.f32 %v1853_v34, %v421_v28  ;;  %v438_v19 = vld [vmem:[%s4427_s11 + $0x3b0] sm:$0xff]  ;;  %v439_v20 = vld [vmem:[%s4427_s11 + $0x3b8] sm:$0xff]  ;;  %v436_v24 = vld [vmem:[%s4427_s11 + $0x3a0] sm:$0xff] }
 0x103   : > { %2172 = vperm.xlu0 %4116, %v1458_v25   ;;  %v1467_v21 = vsub.f32 %v1211_v11, %v955_v10  ;;  %v1466_v25 = vsub.f32 %v1210_v14, %v954_v13  ;;  %v437_v28 = vld [vmem:[%s4427_s11 + $0x3a8] sm:$0xff]  ;;  %v963_v10 = vld [vmem:[%s4288_s4 + $0x418] sm:$0xff]  ;;  %v962_v13 = vld [vmem:[%s4288_s4 + $0x410] sm:$0xff] }
 0x104   : > { %3494 = vst [vmem:[%s4449_s21 + $0x330] sm:$0xff] %v2982_v32  ;;  %3495 = vst [vmem:[%s4449_s21 + $0x338] sm:$0xff] %v2983_v33  ;;  %v1219_v11 = vld [vmem:[%s4293_s7 + $0x418] sm:$0xff]  ;;  %v1218_v14 = vld [vmem:[%s4293_s7 + $0x410] sm:$0xff] }
 0x105   : > { %3492 = vst [vmem:[%s4449_s21 + $0x320] sm:$0xff] %v2980_v38  ;;  %3493 = vst [vmem:[%s4449_s21 + $0x328] sm:$0xff] %v2981_v39  ;;  %v1868_v47 = vpop.permute.xlu1 %1867  ;;  %v1863_v50 = vpop.permute.xlu0 %1862 }
 0x106   : > { %v2986_v48 = vmul.f32 %v1868_v47, %v426_v35  ;;  %v2987_v49 = vmul.f32 %v1868_v47, %v427_v36  ;;  %2187 = vperm.xlu1 %4117, %v1461_v37   ;;  %v2984_v54 = vmul.f32 %v1863_v50, %v424_v40  ;;  %v2985_v55 = vmul.f32 %v1863_v50, %v425_v44  ;;  %v442_v35 = vld [vmem:[%s4427_s11 + $0x3d0] sm:$0xff]  ;;  %v443_v36 = vld [vmem:[%s4427_s11 + $0x3d8] sm:$0xff]  ;;  %v440_v40 = vld [vmem:[%s4427_s11 + $0x3c0] sm:$0xff] }
 0x107   : > { %2182 = vperm.xlu0 %4116, %v1460_v41   ;;  %v1469_v37 = vsub.f32 %v1213_v27, %v957_v26  ;;  %v1468_v41 = vsub.f32 %v1212_v30, %v956_v29  ;;  %v441_v44 = vld [vmem:[%s4427_s11 + $0x3c8] sm:$0xff]  ;;  %v964_v29 = vld [vmem:[%s4288_s4 + $0x420] sm:$0xff] }
 0x108   : > { %3498 = vst [vmem:[%s4449_s21 + $0x350] sm:$0xff] %v2986_v48  ;;  %3499 = vst [vmem:[%s4449_s21 + $0x358] sm:$0xff] %v2987_v49  ;;  %v965_v26 = vld [vmem:[%s4288_s4 + $0x428] sm:$0xff]  ;;  %v1220_v30 = vld [vmem:[%s4293_s7 + $0x420] sm:$0xff] }
 0x109   : > { %3496 = vst [vmem:[%s4449_s21 + $0x340] sm:$0xff] %v2984_v54  ;;  %3497 = vst [vmem:[%s4449_s21 + $0x348] sm:$0xff] %v2985_v55  ;;  %v1878_v63 = vpop.permute.xlu1 %1877  ;;  %v1873_v2 = vpop.permute.xlu0 %1872  ;;  %v1221_v27 = vld [vmem:[%s4293_s7 + $0x428] sm:$0xff] }
 0x10a   : > { %v2990_v0 = vmul.f32 %v1878_v63, %v430_v51  ;;  %v2991_v1 = vmul.f32 %v1878_v63, %v431_v52  ;;  %2197 = vperm.xlu1 %4117, %v1463_v53   ;;  %v2988_v6 = vmul.f32 %v1873_v2, %v428_v56  ;;  %v2989_v7 = vmul.f32 %v1873_v2, %v429_v60  ;;  %v446_v51 = vld [vmem:[%s4427_s11 + $0x3f0] sm:$0xff]  ;;  %v447_v52 = vld [vmem:[%s4427_s11 + $0x3f8] sm:$0xff]  ;;  %v444_v56 = vld [vmem:[%s4427_s11 + $0x3e0] sm:$0xff] }
 0x10b   : > { %2192 = vperm.xlu0 %4116, %v1462_v57   ;;  %v1471_v53 = vsub.f32 %v1215_v43, %v959_v42  ;;  %v1470_v57 = vsub.f32 %v1214_v46, %v958_v45  ;;  %v445_v60 = vld [vmem:[%s4427_s11 + $0x3e8] sm:$0xff]  ;;  %v967_v42 = vld [vmem:[%s4288_s4 + $0x438] sm:$0xff]  ;;  %v966_v45 = vld [vmem:[%s4288_s4 + $0x430] sm:$0xff] }
 0x10c   : > { %3502 = vst [vmem:[%s4449_s21 + $0x370] sm:$0xff] %v2990_v0  ;;  %3503 = vst [vmem:[%s4449_s21 + $0x378] sm:$0xff] %v2991_v1  ;;  %v1223_v43 = vld [vmem:[%s4293_s7 + $0x438] sm:$0xff]  ;;  %v1222_v46 = vld [vmem:[%s4293_s7 + $0x430] sm:$0xff] }
 0x10d   : > { %3500 = vst [vmem:[%s4449_s21 + $0x360] sm:$0xff] %v2988_v6  ;;  %3501 = vst [vmem:[%s4449_s21 + $0x368] sm:$0xff] %v2989_v7  ;;  %v1888_v15 = vpop.permute.xlu1 %1887  ;;  %v1883_v18 = vpop.permute.xlu0 %1882 }
 0x10e   : > { %v2994_v16 = vmul.f32 %v1888_v15, %v434_v3  ;;  %v2995_v17 = vmul.f32 %v1888_v15, %v435_v4  ;;  %2207 = vperm.xlu1 %4117, %v1465_v5   ;;  %v2992_v22 = vmul.f32 %v1883_v18, %v432_v8  ;;  %v2993_v23 = vmul.f32 %v1883_v18, %v433_v12  ;;  %v450_v3 = vld [vmem:[%s4427_s11 + $0x410] sm:$0xff]  ;;  %v451_v4 = vld [vmem:[%s4427_s11 + $0x418] sm:$0xff]  ;;  %v448_v8 = vld [vmem:[%s4427_s11 + $0x400] sm:$0xff] }
 0x10f   : > { %2202 = vperm.xlu0 %4116, %v1464_v9   ;;  %v1473_v5 = vsub.f32 %v1217_v59, %v961_v58  ;;  %v1472_v9 = vsub.f32 %v1216_v62, %v960_v61  ;;  %v449_v12 = vld [vmem:[%s4427_s11 + $0x408] sm:$0xff]  ;;  %v968_v61 = vld [vmem:[%s4288_s4 + $0x440] sm:$0xff] }
 0x110   : > { %3506 = vst [vmem:[%s4449_s21 + $0x390] sm:$0xff] %v2994_v16  ;;  %3507 = vst [vmem:[%s4449_s21 + $0x398] sm:$0xff] %v2995_v17  ;;  %v969_v58 = vld [vmem:[%s4288_s4 + $0x448] sm:$0xff]  ;;  %v1224_v62 = vld [vmem:[%s4293_s7 + $0x440] sm:$0xff] }
 0x111   : > { %3504 = vst [vmem:[%s4449_s21 + $0x380] sm:$0xff] %v2992_v22  ;;  %3505 = vst [vmem:[%s4449_s21 + $0x388] sm:$0xff] %v2993_v23  ;;  %v1898_v31 = vpop.permute.xlu1 %1897  ;;  %v1893_v34 = vpop.permute.xlu0 %1892  ;;  %v1225_v59 = vld [vmem:[%s4293_s7 + $0x448] sm:$0xff] }
 0x112   : > { %v2998_v32 = vmul.f32 %v1898_v31, %v438_v19  ;;  %v2999_v33 = vmul.f32 %v1898_v31, %v439_v20  ;;  %2217 = vperm.xlu1 %4117, %v1467_v21   ;;  %v2996_v38 = vmul.f32 %v1893_v34, %v436_v24  ;;  %v2997_v39 = vmul.f32 %v1893_v34, %v437_v28  ;;  %v454_v19 = vld [vmem:[%s4427_s11 + $0x430] sm:$0xff]  ;;  %v455_v20 = vld [vmem:[%s4427_s11 + $0x438] sm:$0xff]  ;;  %v452_v24 = vld [vmem:[%s4427_s11 + $0x420] sm:$0xff] }
 0x113   : > { %2212 = vperm.xlu0 %4116, %v1466_v25   ;;  %v1475_v21 = vsub.f32 %v1219_v11, %v963_v10  ;;  %v1474_v25 = vsub.f32 %v1218_v14, %v962_v13  ;;  %v453_v28 = vld [vmem:[%s4427_s11 + $0x428] sm:$0xff]  ;;  %v971_v10 = vld [vmem:[%s4288_s4 + $0x458] sm:$0xff]  ;;  %v970_v13 = vld [vmem:[%s4288_s4 + $0x450] sm:$0xff] }
 0x114   : > { %3510 = vst [vmem:[%s4449_s21 + $0x3b0] sm:$0xff] %v2998_v32  ;;  %3511 = vst [vmem:[%s4449_s21 + $0x3b8] sm:$0xff] %v2999_v33  ;;  %v1227_v11 = vld [vmem:[%s4293_s7 + $0x458] sm:$0xff]  ;;  %v1226_v14 = vld [vmem:[%s4293_s7 + $0x450] sm:$0xff] }
 0x115   : > { %3508 = vst [vmem:[%s4449_s21 + $0x3a0] sm:$0xff] %v2996_v38  ;;  %3509 = vst [vmem:[%s4449_s21 + $0x3a8] sm:$0xff] %v2997_v39  ;;  %v1908_v47 = vpop.permute.xlu1 %1907  ;;  %v1903_v50 = vpop.permute.xlu0 %1902 }
 0x116   : > { %v3002_v48 = vmul.f32 %v1908_v47, %v442_v35  ;;  %v3003_v49 = vmul.f32 %v1908_v47, %v443_v36  ;;  %2227 = vperm.xlu1 %4117, %v1469_v37   ;;  %v3000_v54 = vmul.f32 %v1903_v50, %v440_v40  ;;  %v3001_v55 = vmul.f32 %v1903_v50, %v441_v44  ;;  %v458_v35 = vld [vmem:[%s4427_s11 + $0x450] sm:$0xff]  ;;  %v459_v36 = vld [vmem:[%s4427_s11 + $0x458] sm:$0xff]  ;;  %v456_v40 = vld [vmem:[%s4427_s11 + $0x440] sm:$0xff] }
 0x117   : > { %2222 = vperm.xlu0 %4116, %v1468_v41   ;;  %v1477_v37 = vsub.f32 %v1221_v27, %v965_v26  ;;  %v1476_v41 = vsub.f32 %v1220_v30, %v964_v29  ;;  %v457_v44 = vld [vmem:[%s4427_s11 + $0x448] sm:$0xff]  ;;  %v972_v29 = vld [vmem:[%s4288_s4 + $0x460] sm:$0xff] }
 0x118   : > { %3514 = vst [vmem:[%s4449_s21 + $0x3d0] sm:$0xff] %v3002_v48  ;;  %3515 = vst [vmem:[%s4449_s21 + $0x3d8] sm:$0xff] %v3003_v49  ;;  %v973_v26 = vld [vmem:[%s4288_s4 + $0x468] sm:$0xff]  ;;  %v1228_v30 = vld [vmem:[%s4293_s7 + $0x460] sm:$0xff] }
 0x119   : > { %3512 = vst [vmem:[%s4449_s21 + $0x3c0] sm:$0xff] %v3000_v54  ;;  %3513 = vst [vmem:[%s4449_s21 + $0x3c8] sm:$0xff] %v3001_v55  ;;  %v1918_v63 = vpop.permute.xlu1 %1917  ;;  %v1913_v2 = vpop.permute.xlu0 %1912  ;;  %v1229_v27 = vld [vmem:[%s4293_s7 + $0x468] sm:$0xff] }
 0x11a   : > { %v3006_v0 = vmul.f32 %v1918_v63, %v446_v51  ;;  %v3007_v1 = vmul.f32 %v1918_v63, %v447_v52  ;;  %2237 = vperm.xlu1 %4117, %v1471_v53   ;;  %v3004_v6 = vmul.f32 %v1913_v2, %v444_v56  ;;  %v3005_v7 = vmul.f32 %v1913_v2, %v445_v60  ;;  %v462_v51 = vld [vmem:[%s4427_s11 + $0x470] sm:$0xff]  ;;  %v463_v52 = vld [vmem:[%s4427_s11 + $0x478] sm:$0xff]  ;;  %v460_v56 = vld [vmem:[%s4427_s11 + $0x460] sm:$0xff] }
 0x11b   : > { %2232 = vperm.xlu0 %4116, %v1470_v57   ;;  %v1479_v53 = vsub.f32 %v1223_v43, %v967_v42  ;;  %v1478_v57 = vsub.f32 %v1222_v46, %v966_v45  ;;  %v461_v60 = vld [vmem:[%s4427_s11 + $0x468] sm:$0xff]  ;;  %v975_v42 = vld [vmem:[%s4288_s4 + $0x478] sm:$0xff]  ;;  %v974_v45 = vld [vmem:[%s4288_s4 + $0x470] sm:$0xff] }
 0x11c   : > { %3518 = vst [vmem:[%s4449_s21 + $0x3f0] sm:$0xff] %v3006_v0  ;;  %3519 = vst [vmem:[%s4449_s21 + $0x3f8] sm:$0xff] %v3007_v1  ;;  %v1231_v43 = vld [vmem:[%s4293_s7 + $0x478] sm:$0xff]  ;;  %v1230_v46 = vld [vmem:[%s4293_s7 + $0x470] sm:$0xff] }
 0x11d   : > { %3516 = vst [vmem:[%s4449_s21 + $0x3e0] sm:$0xff] %v3004_v6  ;;  %3517 = vst [vmem:[%s4449_s21 + $0x3e8] sm:$0xff] %v3005_v7  ;;  %v1928_v15 = vpop.permute.xlu1 %1927 }
 0x11e   : > { %v3010_v16 = vmul.f32 %v1928_v15, %v450_v3  ;;  %v3011_v17 = vmul.f32 %v1928_v15, %v451_v4  ;;  %v1923_v18 = vpop.permute.xlu0 %1922  ;;  %2247 = vperm.xlu1 %4117, %v1473_v5   ;;  %v466_v3 = vld [vmem:[%s4427_s11 + $0x490] sm:$0xff]  ;;  %v467_v4 = vld [vmem:[%s4427_s11 + $0x498] sm:$0xff]  ;;  %v1481_v5 = vsub.f32 %v1225_v59, %v969_v58  ;;  %v977_v58 = vld [vmem:[%s4288_s4 + $0x488] sm:$0xff] }
 0x11f   : > { %v3008_v22 = vmul.f32 %v1923_v18, %v448_v8  ;;  %v3009_v23 = vmul.f32 %v1923_v18, %v449_v12  ;;  %2242 = vperm.xlu0 %4116, %v1472_v9   ;;  %v464_v8 = vld [vmem:[%s4427_s11 + $0x480] sm:$0xff]  ;;  %v1480_v9 = vsub.f32 %v1224_v62, %v968_v61  ;;  %v465_v12 = vld [vmem:[%s4427_s11 + $0x488] sm:$0xff] }
 0x120   : > { %3522 = vst [vmem:[%s4449_s21 + $0x410] sm:$0xff] %v3010_v16  ;;  %3523 = vst [vmem:[%s4449_s21 + $0x418] sm:$0xff] %v3011_v17  ;;  %v1233_v59 = vld [vmem:[%s4293_s7 + $0x488] sm:$0xff]  ;;  %v976_v61 = vld [vmem:[%s4288_s4 + $0x480] sm:$0xff] }
 0x121   : > { %3520 = vst [vmem:[%s4449_s21 + $0x400] sm:$0xff] %v3008_v22  ;;  %3521 = vst [vmem:[%s4449_s21 + $0x408] sm:$0xff] %v3009_v23  ;;  %v1938_v31 = vpop.permute.xlu1 %1937  ;;  %v1232_v62 = vld [vmem:[%s4293_s7 + $0x480] sm:$0xff] }
 0x122   : > { %v3014_v32 = vmul.f32 %v1938_v31, %v454_v19  ;;  %v3015_v33 = vmul.f32 %v1938_v31, %v455_v20  ;;  %v1933_v34 = vpop.permute.xlu0 %1932  ;;  %2257 = vperm.xlu1 %4117, %v1475_v21   ;;  %v470_v19 = vld [vmem:[%s4427_s11 + $0x4b0] sm:$0xff]  ;;  %v471_v20 = vld [vmem:[%s4427_s11 + $0x4b8] sm:$0xff]  ;;  %v1483_v21 = vsub.f32 %v1227_v11, %v971_v10 }
 0x123   : > { %v3012_v38 = vmul.f32 %v1933_v34, %v452_v24  ;;  %v3013_v39 = vmul.f32 %v1933_v34, %v453_v28  ;;  %2252 = vperm.xlu0 %4116, %v1474_v25   ;;  %v468_v24 = vld [vmem:[%s4427_s11 + $0x4a0] sm:$0xff]  ;;  %v1482_v25 = vsub.f32 %v1226_v14, %v970_v13  ;;  %v469_v28 = vld [vmem:[%s4427_s11 + $0x4a8] sm:$0xff]  ;;  %v979_v10 = vld [vmem:[%s4288_s4 + $0x498] sm:$0xff] }
 0x124   : > { %3526 = vst [vmem:[%s4449_s21 + $0x430] sm:$0xff] %v3014_v32  ;;  %3527 = vst [vmem:[%s4449_s21 + $0x438] sm:$0xff] %v3015_v33  ;;  %v1235_v11 = vld [vmem:[%s4293_s7 + $0x498] sm:$0xff]  ;;  %v978_v13 = vld [vmem:[%s4288_s4 + $0x490] sm:$0xff] }
 0x125   : > { %3524 = vst [vmem:[%s4449_s21 + $0x420] sm:$0xff] %v3012_v38  ;;  %3525 = vst [vmem:[%s4449_s21 + $0x428] sm:$0xff] %v3013_v39  ;;  %v1948_v47 = vpop.permute.xlu1 %1947  ;;  %v1234_v14 = vld [vmem:[%s4293_s7 + $0x490] sm:$0xff] }
 0x126   : > { %v3018_v48 = vmul.f32 %v1948_v47, %v458_v35  ;;  %v3019_v49 = vmul.f32 %v1948_v47, %v459_v36  ;;  %v1943_v50 = vpop.permute.xlu0 %1942  ;;  %2267 = vperm.xlu1 %4117, %v1477_v37   ;;  %v474_v35 = vld [vmem:[%s4427_s11 + $0x4d0] sm:$0xff]  ;;  %v475_v36 = vld [vmem:[%s4427_s11 + $0x4d8] sm:$0xff]  ;;  %v1485_v37 = vsub.f32 %v1229_v27, %v973_v26  ;;  %v981_v26 = vld [vmem:[%s4288_s4 + $0x4a8] sm:$0xff] }
 0x127   : > { %v3016_v54 = vmul.f32 %v1943_v50, %v456_v40  ;;  %v3017_v55 = vmul.f32 %v1943_v50, %v457_v44  ;;  %2262 = vperm.xlu0 %4116, %v1476_v41   ;;  %v472_v40 = vld [vmem:[%s4427_s11 + $0x4c0] sm:$0xff]  ;;  %v1484_v41 = vsub.f32 %v1228_v30, %v972_v29  ;;  %v473_v44 = vld [vmem:[%s4427_s11 + $0x4c8] sm:$0xff] }
 0x128   : > { %3530 = vst [vmem:[%s4449_s21 + $0x450] sm:$0xff] %v3018_v48  ;;  %3531 = vst [vmem:[%s4449_s21 + $0x458] sm:$0xff] %v3019_v49  ;;  %v1237_v27 = vld [vmem:[%s4293_s7 + $0x4a8] sm:$0xff]  ;;  %v980_v29 = vld [vmem:[%s4288_s4 + $0x4a0] sm:$0xff] }
 0x129   : > { %3528 = vst [vmem:[%s4449_s21 + $0x440] sm:$0xff] %v3016_v54  ;;  %3529 = vst [vmem:[%s4449_s21 + $0x448] sm:$0xff] %v3017_v55  ;;  %v1958_v63 = vpop.permute.xlu1 %1957  ;;  %v1236_v30 = vld [vmem:[%s4293_s7 + $0x4a0] sm:$0xff] }
 0x12a   : > { %v3022_v0 = vmul.f32 %v1958_v63, %v462_v51  ;;  %v3023_v1 = vmul.f32 %v1958_v63, %v463_v52  ;;  %v1953_v2 = vpop.permute.xlu0 %1952  ;;  %2277 = vperm.xlu1 %4117, %v1479_v53   ;;  %v478_v51 = vld [vmem:[%s4427_s11 + $0x4f0] sm:$0xff]  ;;  %v479_v52 = vld [vmem:[%s4427_s11 + $0x4f8] sm:$0xff]  ;;  %v1487_v53 = vsub.f32 %v1231_v43, %v975_v42 }
 0x12b   : > { %v3020_v6 = vmul.f32 %v1953_v2, %v460_v56  ;;  %v3021_v7 = vmul.f32 %v1953_v2, %v461_v60  ;;  %2272 = vperm.xlu0 %4116, %v1478_v57   ;;  %v476_v56 = vld [vmem:[%s4427_s11 + $0x4e0] sm:$0xff]  ;;  %v1486_v57 = vsub.f32 %v1230_v46, %v974_v45  ;;  %v477_v60 = vld [vmem:[%s4427_s11 + $0x4e8] sm:$0xff]  ;;  %v983_v42 = vld [vmem:[%s4288_s4 + $0x4b8] sm:$0xff] }
 0x12c   : > { %3534 = vst [vmem:[%s4449_s21 + $0x470] sm:$0xff] %v3022_v0  ;;  %3535 = vst [vmem:[%s4449_s21 + $0x478] sm:$0xff] %v3023_v1  ;;  %v1239_v43 = vld [vmem:[%s4293_s7 + $0x4b8] sm:$0xff]  ;;  %v982_v45 = vld [vmem:[%s4288_s4 + $0x4b0] sm:$0xff] }
 0x12d   : > { %3532 = vst [vmem:[%s4449_s21 + $0x460] sm:$0xff] %v3020_v6  ;;  %3533 = vst [vmem:[%s4449_s21 + $0x468] sm:$0xff] %v3021_v7  ;;  %v1968_v15 = vpop.permute.xlu1 %1967  ;;  %v1238_v46 = vld [vmem:[%s4293_s7 + $0x4b0] sm:$0xff] }
 0x12e   : > { %v3026_v16 = vmul.f32 %v1968_v15, %v466_v3  ;;  %v3027_v17 = vmul.f32 %v1968_v15, %v467_v4  ;;  %v1963_v18 = vpop.permute.xlu0 %1962  ;;  %2287 = vperm.xlu1 %4117, %v1481_v5   ;;  %v482_v3 = vld [vmem:[%s4427_s11 + $0x510] sm:$0xff]  ;;  %v483_v4 = vld [vmem:[%s4427_s11 + $0x518] sm:$0xff]  ;;  %v1489_v5 = vsub.f32 %v1233_v59, %v977_v58  ;;  %v985_v58 = vld [vmem:[%s4288_s4 + $0x4c8] sm:$0xff] }
 0x12f   : > { %v3024_v22 = vmul.f32 %v1963_v18, %v464_v8  ;;  %v3025_v23 = vmul.f32 %v1963_v18, %v465_v12  ;;  %2282 = vperm.xlu0 %4116, %v1480_v9   ;;  %v480_v8 = vld [vmem:[%s4427_s11 + $0x500] sm:$0xff]  ;;  %v1488_v9 = vsub.f32 %v1232_v62, %v976_v61  ;;  %v481_v12 = vld [vmem:[%s4427_s11 + $0x508] sm:$0xff] }
 0x130   : > { %3538 = vst [vmem:[%s4449_s21 + $0x490] sm:$0xff] %v3026_v16  ;;  %3539 = vst [vmem:[%s4449_s21 + $0x498] sm:$0xff] %v3027_v17  ;;  %v1241_v59 = vld [vmem:[%s4293_s7 + $0x4c8] sm:$0xff]  ;;  %v984_v61 = vld [vmem:[%s4288_s4 + $0x4c0] sm:$0xff] }
 0x131   : > { %3536 = vst [vmem:[%s4449_s21 + $0x480] sm:$0xff] %v3024_v22  ;;  %3537 = vst [vmem:[%s4449_s21 + $0x488] sm:$0xff] %v3025_v23  ;;  %v1978_v31 = vpop.permute.xlu1 %1977  ;;  %v1240_v62 = vld [vmem:[%s4293_s7 + $0x4c0] sm:$0xff] }
 0x132   : > { %v3030_v32 = vmul.f32 %v1978_v31, %v470_v19  ;;  %v3031_v33 = vmul.f32 %v1978_v31, %v471_v20  ;;  %v1973_v34 = vpop.permute.xlu0 %1972  ;;  %2297 = vperm.xlu1 %4117, %v1483_v21   ;;  %v486_v19 = vld [vmem:[%s4427_s11 + $0x530] sm:$0xff]  ;;  %v487_v20 = vld [vmem:[%s4427_s11 + $0x538] sm:$0xff]  ;;  %v1491_v21 = vsub.f32 %v1235_v11, %v979_v10 }
 0x133   : > { %v3028_v38 = vmul.f32 %v1973_v34, %v468_v24  ;;  %v3029_v39 = vmul.f32 %v1973_v34, %v469_v28  ;;  %2292 = vperm.xlu0 %4116, %v1482_v25   ;;  %v484_v24 = vld [vmem:[%s4427_s11 + $0x520] sm:$0xff]  ;;  %v1490_v25 = vsub.f32 %v1234_v14, %v978_v13  ;;  %v485_v28 = vld [vmem:[%s4427_s11 + $0x528] sm:$0xff]  ;;  %v987_v10 = vld [vmem:[%s4288_s4 + $0x4d8] sm:$0xff] }
 0x134   : > { %3542 = vst [vmem:[%s4449_s21 + $0x4b0] sm:$0xff] %v3030_v32  ;;  %3543 = vst [vmem:[%s4449_s21 + $0x4b8] sm:$0xff] %v3031_v33  ;;  %v1243_v11 = vld [vmem:[%s4293_s7 + $0x4d8] sm:$0xff]  ;;  %v986_v13 = vld [vmem:[%s4288_s4 + $0x4d0] sm:$0xff] }
 0x135   : > { %3540 = vst [vmem:[%s4449_s21 + $0x4a0] sm:$0xff] %v3028_v38  ;;  %3541 = vst [vmem:[%s4449_s21 + $0x4a8] sm:$0xff] %v3029_v39  ;;  %v1988_v47 = vpop.permute.xlu1 %1987  ;;  %v1242_v14 = vld [vmem:[%s4293_s7 + $0x4d0] sm:$0xff] }
 0x136   : > { %v3034_v48 = vmul.f32 %v1988_v47, %v474_v35  ;;  %v3035_v49 = vmul.f32 %v1988_v47, %v475_v36  ;;  %v1983_v50 = vpop.permute.xlu0 %1982  ;;  %2307 = vperm.xlu1 %4117, %v1485_v37   ;;  %v490_v35 = vld [vmem:[%s4427_s11 + $0x550] sm:$0xff]  ;;  %v491_v36 = vld [vmem:[%s4427_s11 + $0x558] sm:$0xff]  ;;  %v1493_v37 = vsub.f32 %v1237_v27, %v981_v26  ;;  %v989_v26 = vld [vmem:[%s4288_s4 + $0x4e8] sm:$0xff] }
 0x137   : > { %v3032_v54 = vmul.f32 %v1983_v50, %v472_v40  ;;  %v3033_v55 = vmul.f32 %v1983_v50, %v473_v44  ;;  %2302 = vperm.xlu0 %4116, %v1484_v41   ;;  %v488_v40 = vld [vmem:[%s4427_s11 + $0x540] sm:$0xff]  ;;  %v1492_v41 = vsub.f32 %v1236_v30, %v980_v29  ;;  %v489_v44 = vld [vmem:[%s4427_s11 + $0x548] sm:$0xff] }
 0x138   : > { %3546 = vst [vmem:[%s4449_s21 + $0x4d0] sm:$0xff] %v3034_v48  ;;  %3547 = vst [vmem:[%s4449_s21 + $0x4d8] sm:$0xff] %v3035_v49  ;;  %v1245_v27 = vld [vmem:[%s4293_s7 + $0x4e8] sm:$0xff]  ;;  %v988_v29 = vld [vmem:[%s4288_s4 + $0x4e0] sm:$0xff] }
 0x139   : > { %3544 = vst [vmem:[%s4449_s21 + $0x4c0] sm:$0xff] %v3032_v54  ;;  %3545 = vst [vmem:[%s4449_s21 + $0x4c8] sm:$0xff] %v3033_v55  ;;  %v1998_v63 = vpop.permute.xlu1 %1997  ;;  %v1244_v30 = vld [vmem:[%s4293_s7 + $0x4e0] sm:$0xff] }
 0x13a   : > { %v3038_v0 = vmul.f32 %v1998_v63, %v478_v51  ;;  %v3039_v1 = vmul.f32 %v1998_v63, %v479_v52  ;;  %v1993_v2 = vpop.permute.xlu0 %1992  ;;  %2317 = vperm.xlu1 %4117, %v1487_v53   ;;  %v494_v51 = vld [vmem:[%s4427_s11 + $0x570] sm:$0xff]  ;;  %v495_v52 = vld [vmem:[%s4427_s11 + $0x578] sm:$0xff]  ;;  %v1495_v53 = vsub.f32 %v1239_v43, %v983_v42 }
 0x13b   : > { %v3036_v6 = vmul.f32 %v1993_v2, %v476_v56  ;;  %v3037_v7 = vmul.f32 %v1993_v2, %v477_v60  ;;  %2312 = vperm.xlu0 %4116, %v1486_v57   ;;  %v492_v56 = vld [vmem:[%s4427_s11 + $0x560] sm:$0xff]  ;;  %v1494_v57 = vsub.f32 %v1238_v46, %v982_v45  ;;  %v493_v60 = vld [vmem:[%s4427_s11 + $0x568] sm:$0xff]  ;;  %v991_v42 = vld [vmem:[%s4288_s4 + $0x4f8] sm:$0xff] }
 0x13c   : > { %3550 = vst [vmem:[%s4449_s21 + $0x4f0] sm:$0xff] %v3038_v0  ;;  %3551 = vst [vmem:[%s4449_s21 + $0x4f8] sm:$0xff] %v3039_v1  ;;  %v1247_v43 = vld [vmem:[%s4293_s7 + $0x4f8] sm:$0xff]  ;;  %v990_v45 = vld [vmem:[%s4288_s4 + $0x4f0] sm:$0xff] }
 0x13d   : > { %3548 = vst [vmem:[%s4449_s21 + $0x4e0] sm:$0xff] %v3036_v6  ;;  %3549 = vst [vmem:[%s4449_s21 + $0x4e8] sm:$0xff] %v3037_v7  ;;  %v2008_v15 = vpop.permute.xlu1 %2007  ;;  %v1246_v46 = vld [vmem:[%s4293_s7 + $0x4f0] sm:$0xff] }
 0x13e   : > { %v3042_v16 = vmul.f32 %v2008_v15, %v482_v3  ;;  %v3043_v17 = vmul.f32 %v2008_v15, %v483_v4  ;;  %v2003_v18 = vpop.permute.xlu0 %2002  ;;  %2327 = vperm.xlu1 %4117, %v1489_v5   ;;  %v498_v3 = vld [vmem:[%s4427_s11 + $0x590] sm:$0xff]  ;;  %v499_v4 = vld [vmem:[%s4427_s11 + $0x598] sm:$0xff]  ;;  %v1497_v5 = vsub.f32 %v1241_v59, %v985_v58  ;;  %v993_v58 = vld [vmem:[%s4288_s4 + $0x508] sm:$0xff] }
 0x13f   : > { %v3040_v22 = vmul.f32 %v2003_v18, %v480_v8  ;;  %v3041_v23 = vmul.f32 %v2003_v18, %v481_v12  ;;  %2322 = vperm.xlu0 %4116, %v1488_v9   ;;  %v496_v8 = vld [vmem:[%s4427_s11 + $0x580] sm:$0xff]  ;;  %v1496_v9 = vsub.f32 %v1240_v62, %v984_v61  ;;  %v497_v12 = vld [vmem:[%s4427_s11 + $0x588] sm:$0xff] }
 0x140   : > { %3554 = vst [vmem:[%s4449_s21 + $0x510] sm:$0xff] %v3042_v16  ;;  %3555 = vst [vmem:[%s4449_s21 + $0x518] sm:$0xff] %v3043_v17  ;;  %v1249_v59 = vld [vmem:[%s4293_s7 + $0x508] sm:$0xff]  ;;  %v992_v61 = vld [vmem:[%s4288_s4 + $0x500] sm:$0xff] }
 0x141   : > { %3552 = vst [vmem:[%s4449_s21 + $0x500] sm:$0xff] %v3040_v22  ;;  %3553 = vst [vmem:[%s4449_s21 + $0x508] sm:$0xff] %v3041_v23  ;;  %v2018_v31 = vpop.permute.xlu1 %2017  ;;  %v1248_v62 = vld [vmem:[%s4293_s7 + $0x500] sm:$0xff] }
 0x142   : > { %v3046_v32 = vmul.f32 %v2018_v31, %v486_v19  ;;  %v3047_v33 = vmul.f32 %v2018_v31, %v487_v20  ;;  %v2013_v34 = vpop.permute.xlu0 %2012  ;;  %2337 = vperm.xlu1 %4117, %v1491_v21   ;;  %v502_v19 = vld [vmem:[%s4427_s11 + $0x5b0] sm:$0xff]  ;;  %v503_v20 = vld [vmem:[%s4427_s11 + $0x5b8] sm:$0xff]  ;;  %v1499_v21 = vsub.f32 %v1243_v11, %v987_v10 }
 0x143   : > { %v3044_v38 = vmul.f32 %v2013_v34, %v484_v24  ;;  %v3045_v39 = vmul.f32 %v2013_v34, %v485_v28  ;;  %2332 = vperm.xlu0 %4116, %v1490_v25   ;;  %v500_v24 = vld [vmem:[%s4427_s11 + $0x5a0] sm:$0xff]  ;;  %v1498_v25 = vsub.f32 %v1242_v14, %v986_v13  ;;  %v501_v28 = vld [vmem:[%s4427_s11 + $0x5a8] sm:$0xff]  ;;  %v995_v10 = vld [vmem:[%s4288_s4 + $0x518] sm:$0xff] }
 0x144   : > { %3558 = vst [vmem:[%s4449_s21 + $0x530] sm:$0xff] %v3046_v32  ;;  %3559 = vst [vmem:[%s4449_s21 + $0x538] sm:$0xff] %v3047_v33  ;;  %v1251_v11 = vld [vmem:[%s4293_s7 + $0x518] sm:$0xff]  ;;  %v994_v13 = vld [vmem:[%s4288_s4 + $0x510] sm:$0xff] }
 0x145   : > { %3556 = vst [vmem:[%s4449_s21 + $0x520] sm:$0xff] %v3044_v38  ;;  %3557 = vst [vmem:[%s4449_s21 + $0x528] sm:$0xff] %v3045_v39  ;;  %v2028_v47 = vpop.permute.xlu1 %2027  ;;  %v1250_v14 = vld [vmem:[%s4293_s7 + $0x510] sm:$0xff] }
 0x146   : > { %v3050_v48 = vmul.f32 %v2028_v47, %v490_v35  ;;  %v3051_v49 = vmul.f32 %v2028_v47, %v491_v36  ;;  %v2023_v50 = vpop.permute.xlu0 %2022  ;;  %2347 = vperm.xlu1 %4117, %v1493_v37   ;;  %v506_v35 = vld [vmem:[%s4427_s11 + $0x5d0] sm:$0xff]  ;;  %v507_v36 = vld [vmem:[%s4427_s11 + $0x5d8] sm:$0xff]  ;;  %v1501_v37 = vsub.f32 %v1245_v27, %v989_v26  ;;  %v997_v26 = vld [vmem:[%s4288_s4 + $0x528] sm:$0xff] }
 0x147   : > { %v3048_v54 = vmul.f32 %v2023_v50, %v488_v40  ;;  %v3049_v55 = vmul.f32 %v2023_v50, %v489_v44  ;;  %2342 = vperm.xlu0 %4116, %v1492_v41   ;;  %v504_v40 = vld [vmem:[%s4427_s11 + $0x5c0] sm:$0xff]  ;;  %v1500_v41 = vsub.f32 %v1244_v30, %v988_v29  ;;  %v505_v44 = vld [vmem:[%s4427_s11 + $0x5c8] sm:$0xff] }
 0x148   : > { %3562 = vst [vmem:[%s4449_s21 + $0x550] sm:$0xff] %v3050_v48  ;;  %3563 = vst [vmem:[%s4449_s21 + $0x558] sm:$0xff] %v3051_v49  ;;  %v1253_v27 = vld [vmem:[%s4293_s7 + $0x528] sm:$0xff]  ;;  %v996_v29 = vld [vmem:[%s4288_s4 + $0x520] sm:$0xff] }
 0x149   : > { %3560 = vst [vmem:[%s4449_s21 + $0x540] sm:$0xff] %v3048_v54  ;;  %3561 = vst [vmem:[%s4449_s21 + $0x548] sm:$0xff] %v3049_v55  ;;  %v2038_v63 = vpop.permute.xlu1 %2037  ;;  %v1252_v30 = vld [vmem:[%s4293_s7 + $0x520] sm:$0xff] }
 0x14a   : > { %v3054_v0 = vmul.f32 %v2038_v63, %v494_v51  ;;  %v3055_v1 = vmul.f32 %v2038_v63, %v495_v52  ;;  %v2033_v2 = vpop.permute.xlu0 %2032  ;;  %2357 = vperm.xlu1 %4117, %v1495_v53   ;;  %v510_v51 = vld [vmem:[%s4427_s11 + $0x5f0] sm:$0xff]  ;;  %v511_v52 = vld [vmem:[%s4427_s11 + $0x5f8] sm:$0xff]  ;;  %v1503_v53 = vsub.f32 %v1247_v43, %v991_v42 }
 0x14b   : > { %v3052_v6 = vmul.f32 %v2033_v2, %v492_v56  ;;  %v3053_v7 = vmul.f32 %v2033_v2, %v493_v60  ;;  %2352 = vperm.xlu0 %4116, %v1494_v57   ;;  %v508_v56 = vld [vmem:[%s4427_s11 + $0x5e0] sm:$0xff]  ;;  %v1502_v57 = vsub.f32 %v1246_v46, %v990_v45  ;;  %v509_v60 = vld [vmem:[%s4427_s11 + $0x5e8] sm:$0xff]  ;;  %v999_v42 = vld [vmem:[%s4288_s4 + $0x538] sm:$0xff] }
 0x14c   : > { %3566 = vst [vmem:[%s4449_s21 + $0x570] sm:$0xff] %v3054_v0  ;;  %3567 = vst [vmem:[%s4449_s21 + $0x578] sm:$0xff] %v3055_v1  ;;  %v1255_v43 = vld [vmem:[%s4293_s7 + $0x538] sm:$0xff]  ;;  %v998_v45 = vld [vmem:[%s4288_s4 + $0x530] sm:$0xff] }
 0x14d   : > { %3564 = vst [vmem:[%s4449_s21 + $0x560] sm:$0xff] %v3052_v6  ;;  %3565 = vst [vmem:[%s4449_s21 + $0x568] sm:$0xff] %v3053_v7  ;;  %v2048_v15 = vpop.permute.xlu1 %2047  ;;  %v1254_v46 = vld [vmem:[%s4293_s7 + $0x530] sm:$0xff] }
 0x14e   : > { %v3058_v16 = vmul.f32 %v2048_v15, %v498_v3  ;;  %v3059_v17 = vmul.f32 %v2048_v15, %v499_v4  ;;  %v2043_v18 = vpop.permute.xlu0 %2042  ;;  %2367 = vperm.xlu1 %4117, %v1497_v5   ;;  %v514_v3 = vld [vmem:[%s4427_s11 + $0x610] sm:$0xff]  ;;  %v515_v4 = vld [vmem:[%s4427_s11 + $0x618] sm:$0xff]  ;;  %v1505_v5 = vsub.f32 %v1249_v59, %v993_v58  ;;  %v1001_v58 = vld [vmem:[%s4288_s4 + $0x548] sm:$0xff] }
 0x14f   : > { %v3056_v22 = vmul.f32 %v2043_v18, %v496_v8  ;;  %v3057_v23 = vmul.f32 %v2043_v18, %v497_v12  ;;  %2362 = vperm.xlu0 %4116, %v1496_v9   ;;  %v512_v8 = vld [vmem:[%s4427_s11 + $0x600] sm:$0xff]  ;;  %v1504_v9 = vsub.f32 %v1248_v62, %v992_v61  ;;  %v513_v12 = vld [vmem:[%s4427_s11 + $0x608] sm:$0xff] }
 0x150   : > { %3570 = vst [vmem:[%s4449_s21 + $0x590] sm:$0xff] %v3058_v16  ;;  %3571 = vst [vmem:[%s4449_s21 + $0x598] sm:$0xff] %v3059_v17  ;;  %v1257_v59 = vld [vmem:[%s4293_s7 + $0x548] sm:$0xff]  ;;  %v1000_v61 = vld [vmem:[%s4288_s4 + $0x540] sm:$0xff] }
 0x151   : > { %3568 = vst [vmem:[%s4449_s21 + $0x580] sm:$0xff] %v3056_v22  ;;  %3569 = vst [vmem:[%s4449_s21 + $0x588] sm:$0xff] %v3057_v23  ;;  %v2058_v31 = vpop.permute.xlu1 %2057  ;;  %v1256_v62 = vld [vmem:[%s4293_s7 + $0x540] sm:$0xff] }
 0x152   : > { %v3062_v32 = vmul.f32 %v2058_v31, %v502_v19  ;;  %v3063_v33 = vmul.f32 %v2058_v31, %v503_v20  ;;  %v2053_v34 = vpop.permute.xlu0 %2052  ;;  %2377 = vperm.xlu1 %4117, %v1499_v21   ;;  %v518_v19 = vld [vmem:[%s4427_s11 + $0x630] sm:$0xff]  ;;  %v519_v20 = vld [vmem:[%s4427_s11 + $0x638] sm:$0xff]  ;;  %v1507_v21 = vsub.f32 %v1251_v11, %v995_v10 }
 0x153   : > { %v3060_v38 = vmul.f32 %v2053_v34, %v500_v24  ;;  %v3061_v39 = vmul.f32 %v2053_v34, %v501_v28  ;;  %2372 = vperm.xlu0 %4116, %v1498_v25   ;;  %v516_v24 = vld [vmem:[%s4427_s11 + $0x620] sm:$0xff]  ;;  %v1506_v25 = vsub.f32 %v1250_v14, %v994_v13  ;;  %v517_v28 = vld [vmem:[%s4427_s11 + $0x628] sm:$0xff]  ;;  %v1003_v10 = vld [vmem:[%s4288_s4 + $0x558] sm:$0xff] }
 0x154   : > { %3574 = vst [vmem:[%s4449_s21 + $0x5b0] sm:$0xff] %v3062_v32  ;;  %3575 = vst [vmem:[%s4449_s21 + $0x5b8] sm:$0xff] %v3063_v33  ;;  %v1259_v11 = vld [vmem:[%s4293_s7 + $0x558] sm:$0xff]  ;;  %v1002_v13 = vld [vmem:[%s4288_s4 + $0x550] sm:$0xff] }
 0x155   : > { %3572 = vst [vmem:[%s4449_s21 + $0x5a0] sm:$0xff] %v3060_v38  ;;  %3573 = vst [vmem:[%s4449_s21 + $0x5a8] sm:$0xff] %v3061_v39  ;;  %v2068_v47 = vpop.permute.xlu1 %2067  ;;  %v1258_v14 = vld [vmem:[%s4293_s7 + $0x550] sm:$0xff] }
 0x156   : > { %v3066_v48 = vmul.f32 %v2068_v47, %v506_v35  ;;  %v3067_v49 = vmul.f32 %v2068_v47, %v507_v36  ;;  %v2063_v50 = vpop.permute.xlu0 %2062  ;;  %2387 = vperm.xlu1 %4117, %v1501_v37   ;;  %v522_v35 = vld [vmem:[%s4427_s11 + $0x650] sm:$0xff]  ;;  %v523_v36 = vld [vmem:[%s4427_s11 + $0x658] sm:$0xff]  ;;  %v1509_v37 = vsub.f32 %v1253_v27, %v997_v26  ;;  %v1005_v26 = vld [vmem:[%s4288_s4 + $0x568] sm:$0xff] }
 0x157   : > { %v3064_v54 = vmul.f32 %v2063_v50, %v504_v40  ;;  %v3065_v55 = vmul.f32 %v2063_v50, %v505_v44  ;;  %2382 = vperm.xlu0 %4116, %v1500_v41   ;;  %v520_v40 = vld [vmem:[%s4427_s11 + $0x640] sm:$0xff]  ;;  %v1508_v41 = vsub.f32 %v1252_v30, %v996_v29  ;;  %v521_v44 = vld [vmem:[%s4427_s11 + $0x648] sm:$0xff] }
 0x158   : > { %3578 = vst [vmem:[%s4449_s21 + $0x5d0] sm:$0xff] %v3066_v48  ;;  %3579 = vst [vmem:[%s4449_s21 + $0x5d8] sm:$0xff] %v3067_v49  ;;  %v1261_v27 = vld [vmem:[%s4293_s7 + $0x568] sm:$0xff]  ;;  %v1004_v29 = vld [vmem:[%s4288_s4 + $0x560] sm:$0xff] }
 0x159   : > { %3576 = vst [vmem:[%s4449_s21 + $0x5c0] sm:$0xff] %v3064_v54  ;;  %3577 = vst [vmem:[%s4449_s21 + $0x5c8] sm:$0xff] %v3065_v55  ;;  %v2078_v63 = vpop.permute.xlu1 %2077  ;;  %v1260_v30 = vld [vmem:[%s4293_s7 + $0x560] sm:$0xff] }
 0x15a   : > { %v3070_v0 = vmul.f32 %v2078_v63, %v510_v51  ;;  %v3071_v1 = vmul.f32 %v2078_v63, %v511_v52  ;;  %v2073_v2 = vpop.permute.xlu0 %2072  ;;  %2397 = vperm.xlu1 %4117, %v1503_v53   ;;  %v526_v51 = vld [vmem:[%s4427_s11 + $0x670] sm:$0xff]  ;;  %v527_v52 = vld [vmem:[%s4427_s11 + $0x678] sm:$0xff]  ;;  %v1511_v53 = vsub.f32 %v1255_v43, %v999_v42 }
 0x15b   : > { %v3068_v6 = vmul.f32 %v2073_v2, %v508_v56  ;;  %v3069_v7 = vmul.f32 %v2073_v2, %v509_v60  ;;  %2392 = vperm.xlu0 %4116, %v1502_v57   ;;  %v524_v56 = vld [vmem:[%s4427_s11 + $0x660] sm:$0xff]  ;;  %v1510_v57 = vsub.f32 %v1254_v46, %v998_v45  ;;  %v525_v60 = vld [vmem:[%s4427_s11 + $0x668] sm:$0xff]  ;;  %v1007_v42 = vld [vmem:[%s4288_s4 + $0x578] sm:$0xff] }
 0x15c   : > { %3582 = vst [vmem:[%s4449_s21 + $0x5f0] sm:$0xff] %v3070_v0  ;;  %3583 = vst [vmem:[%s4449_s21 + $0x5f8] sm:$0xff] %v3071_v1  ;;  %v1263_v43 = vld [vmem:[%s4293_s7 + $0x578] sm:$0xff]  ;;  %v1006_v45 = vld [vmem:[%s4288_s4 + $0x570] sm:$0xff] }
 0x15d   : > { %3580 = vst [vmem:[%s4449_s21 + $0x5e0] sm:$0xff] %v3068_v6  ;;  %3581 = vst [vmem:[%s4449_s21 + $0x5e8] sm:$0xff] %v3069_v7  ;;  %v2088_v15 = vpop.permute.xlu1 %2087  ;;  %v1262_v46 = vld [vmem:[%s4293_s7 + $0x570] sm:$0xff] }
 0x15e   : > { %v3074_v16 = vmul.f32 %v2088_v15, %v514_v3  ;;  %v3075_v17 = vmul.f32 %v2088_v15, %v515_v4  ;;  %v2083_v18 = vpop.permute.xlu0 %2082  ;;  %2407 = vperm.xlu1 %4117, %v1505_v5   ;;  %v530_v3 = vld [vmem:[%s4427_s11 + $0x690] sm:$0xff]  ;;  %v531_v4 = vld [vmem:[%s4427_s11 + $0x698] sm:$0xff]  ;;  %v1513_v5 = vsub.f32 %v1257_v59, %v1001_v58  ;;  %v1009_v58 = vld [vmem:[%s4288_s4 + $0x588] sm:$0xff] }
 0x15f   : > { %v3072_v22 = vmul.f32 %v2083_v18, %v512_v8  ;;  %v3073_v23 = vmul.f32 %v2083_v18, %v513_v12  ;;  %2402 = vperm.xlu0 %4116, %v1504_v9   ;;  %v528_v8 = vld [vmem:[%s4427_s11 + $0x680] sm:$0xff]  ;;  %v1512_v9 = vsub.f32 %v1256_v62, %v1000_v61  ;;  %v529_v12 = vld [vmem:[%s4427_s11 + $0x688] sm:$0xff] }
 0x160   : > { %3586 = vst [vmem:[%s4449_s21 + $0x610] sm:$0xff] %v3074_v16  ;;  %3587 = vst [vmem:[%s4449_s21 + $0x618] sm:$0xff] %v3075_v17  ;;  %v1265_v59 = vld [vmem:[%s4293_s7 + $0x588] sm:$0xff]  ;;  %v1008_v61 = vld [vmem:[%s4288_s4 + $0x580] sm:$0xff] }
 0x161   : > { %3584 = vst [vmem:[%s4449_s21 + $0x600] sm:$0xff] %v3072_v22  ;;  %3585 = vst [vmem:[%s4449_s21 + $0x608] sm:$0xff] %v3073_v23  ;;  %v2098_v31 = vpop.permute.xlu1 %2097  ;;  %v1264_v62 = vld [vmem:[%s4293_s7 + $0x580] sm:$0xff] }
 0x162   : > { %v3078_v32 = vmul.f32 %v2098_v31, %v518_v19  ;;  %v3079_v33 = vmul.f32 %v2098_v31, %v519_v20  ;;  %v2093_v34 = vpop.permute.xlu0 %2092  ;;  %2417 = vperm.xlu1 %4117, %v1507_v21   ;;  %v534_v19 = vld [vmem:[%s4427_s11 + $0x6b0] sm:$0xff]  ;;  %v535_v20 = vld [vmem:[%s4427_s11 + $0x6b8] sm:$0xff]  ;;  %v1515_v21 = vsub.f32 %v1259_v11, %v1003_v10 }
 0x163   : > { %v3076_v38 = vmul.f32 %v2093_v34, %v516_v24  ;;  %v3077_v39 = vmul.f32 %v2093_v34, %v517_v28  ;;  %2412 = vperm.xlu0 %4116, %v1506_v25   ;;  %v532_v24 = vld [vmem:[%s4427_s11 + $0x6a0] sm:$0xff]  ;;  %v1514_v25 = vsub.f32 %v1258_v14, %v1002_v13  ;;  %v533_v28 = vld [vmem:[%s4427_s11 + $0x6a8] sm:$0xff]  ;;  %v1011_v10 = vld [vmem:[%s4288_s4 + $0x598] sm:$0xff] }
 0x164   : > { %3590 = vst [vmem:[%s4449_s21 + $0x630] sm:$0xff] %v3078_v32  ;;  %3591 = vst [vmem:[%s4449_s21 + $0x638] sm:$0xff] %v3079_v33  ;;  %v1267_v11 = vld [vmem:[%s4293_s7 + $0x598] sm:$0xff]  ;;  %v1010_v13 = vld [vmem:[%s4288_s4 + $0x590] sm:$0xff] }
 0x165   : > { %3588 = vst [vmem:[%s4449_s21 + $0x620] sm:$0xff] %v3076_v38  ;;  %3589 = vst [vmem:[%s4449_s21 + $0x628] sm:$0xff] %v3077_v39  ;;  %v2108_v47 = vpop.permute.xlu1 %2107  ;;  %v1266_v14 = vld [vmem:[%s4293_s7 + $0x590] sm:$0xff] }
 0x166   : > { %v3082_v48 = vmul.f32 %v2108_v47, %v522_v35  ;;  %v3083_v49 = vmul.f32 %v2108_v47, %v523_v36  ;;  %v2103_v50 = vpop.permute.xlu0 %2102  ;;  %2427 = vperm.xlu1 %4117, %v1509_v37   ;;  %v538_v35 = vld [vmem:[%s4427_s11 + $0x6d0] sm:$0xff]  ;;  %v539_v36 = vld [vmem:[%s4427_s11 + $0x6d8] sm:$0xff]  ;;  %v1517_v37 = vsub.f32 %v1261_v27, %v1005_v26  ;;  %v1013_v26 = vld [vmem:[%s4288_s4 + $0x5a8] sm:$0xff] }
 0x167   : > { %v3080_v54 = vmul.f32 %v2103_v50, %v520_v40  ;;  %v3081_v55 = vmul.f32 %v2103_v50, %v521_v44  ;;  %2422 = vperm.xlu0 %4116, %v1508_v41   ;;  %v536_v40 = vld [vmem:[%s4427_s11 + $0x6c0] sm:$0xff]  ;;  %v1516_v41 = vsub.f32 %v1260_v30, %v1004_v29  ;;  %v537_v44 = vld [vmem:[%s4427_s11 + $0x6c8] sm:$0xff] }
 0x168   : > { %3594 = vst [vmem:[%s4449_s21 + $0x650] sm:$0xff] %v3082_v48  ;;  %3595 = vst [vmem:[%s4449_s21 + $0x658] sm:$0xff] %v3083_v49  ;;  %v1269_v27 = vld [vmem:[%s4293_s7 + $0x5a8] sm:$0xff]  ;;  %v1012_v29 = vld [vmem:[%s4288_s4 + $0x5a0] sm:$0xff] }
 0x169   : > { %3592 = vst [vmem:[%s4449_s21 + $0x640] sm:$0xff] %v3080_v54  ;;  %3593 = vst [vmem:[%s4449_s21 + $0x648] sm:$0xff] %v3081_v55  ;;  %v2118_v63 = vpop.permute.xlu1 %2117  ;;  %v1268_v30 = vld [vmem:[%s4293_s7 + $0x5a0] sm:$0xff] }
 0x16a   : > { %v3086_v0 = vmul.f32 %v2118_v63, %v526_v51  ;;  %v3087_v1 = vmul.f32 %v2118_v63, %v527_v52  ;;  %v2113_v2 = vpop.permute.xlu0 %2112  ;;  %2437 = vperm.xlu1 %4117, %v1511_v53   ;;  %v542_v51 = vld [vmem:[%s4427_s11 + $0x6f0] sm:$0xff]  ;;  %v543_v52 = vld [vmem:[%s4427_s11 + $0x6f8] sm:$0xff]  ;;  %v1519_v53 = vsub.f32 %v1263_v43, %v1007_v42 }
 0x16b   : > { %v3084_v6 = vmul.f32 %v2113_v2, %v524_v56  ;;  %v3085_v7 = vmul.f32 %v2113_v2, %v525_v60  ;;  %2432 = vperm.xlu0 %4116, %v1510_v57   ;;  %v540_v56 = vld [vmem:[%s4427_s11 + $0x6e0] sm:$0xff]  ;;  %v1518_v57 = vsub.f32 %v1262_v46, %v1006_v45  ;;  %v541_v60 = vld [vmem:[%s4427_s11 + $0x6e8] sm:$0xff]  ;;  %v1015_v42 = vld [vmem:[%s4288_s4 + $0x5b8] sm:$0xff] }
 0x16c   : > { %3598 = vst [vmem:[%s4449_s21 + $0x670] sm:$0xff] %v3086_v0  ;;  %3599 = vst [vmem:[%s4449_s21 + $0x678] sm:$0xff] %v3087_v1  ;;  %v1271_v43 = vld [vmem:[%s4293_s7 + $0x5b8] sm:$0xff]  ;;  %v1014_v45 = vld [vmem:[%s4288_s4 + $0x5b0] sm:$0xff] }
 0x16d   : > { %3596 = vst [vmem:[%s4449_s21 + $0x660] sm:$0xff] %v3084_v6  ;;  %3597 = vst [vmem:[%s4449_s21 + $0x668] sm:$0xff] %v3085_v7  ;;  %v2128_v15 = vpop.permute.xlu1 %2127  ;;  %v1270_v46 = vld [vmem:[%s4293_s7 + $0x5b0] sm:$0xff] }
 0x16e   : > { %v3090_v16 = vmul.f32 %v2128_v15, %v530_v3  ;;  %v3091_v17 = vmul.f32 %v2128_v15, %v531_v4  ;;  %v2123_v18 = vpop.permute.xlu0 %2122  ;;  %2447 = vperm.xlu1 %4117, %v1513_v5   ;;  %v546_v3 = vld [vmem:[%s4427_s11 + $0x710] sm:$0xff]  ;;  %v547_v4 = vld [vmem:[%s4427_s11 + $0x718] sm:$0xff]  ;;  %v1521_v5 = vsub.f32 %v1265_v59, %v1009_v58  ;;  %v1017_v58 = vld [vmem:[%s4288_s4 + $0x5c8] sm:$0xff] }
 0x16f   : > { %v3088_v22 = vmul.f32 %v2123_v18, %v528_v8  ;;  %v3089_v23 = vmul.f32 %v2123_v18, %v529_v12  ;;  %2442 = vperm.xlu0 %4116, %v1512_v9   ;;  %v544_v8 = vld [vmem:[%s4427_s11 + $0x700] sm:$0xff]  ;;  %v1520_v9 = vsub.f32 %v1264_v62, %v1008_v61  ;;  %v545_v12 = vld [vmem:[%s4427_s11 + $0x708] sm:$0xff] }
 0x170   : > { %3602 = vst [vmem:[%s4449_s21 + $0x690] sm:$0xff] %v3090_v16  ;;  %3603 = vst [vmem:[%s4449_s21 + $0x698] sm:$0xff] %v3091_v17  ;;  %v1273_v59 = vld [vmem:[%s4293_s7 + $0x5c8] sm:$0xff]  ;;  %v1016_v61 = vld [vmem:[%s4288_s4 + $0x5c0] sm:$0xff] }
 0x171   : > { %3600 = vst [vmem:[%s4449_s21 + $0x680] sm:$0xff] %v3088_v22  ;;  %3601 = vst [vmem:[%s4449_s21 + $0x688] sm:$0xff] %v3089_v23  ;;  %v2138_v31 = vpop.permute.xlu1 %2137  ;;  %v1272_v62 = vld [vmem:[%s4293_s7 + $0x5c0] sm:$0xff] }
 0x172   : > { %v3094_v32 = vmul.f32 %v2138_v31, %v534_v19  ;;  %v3095_v33 = vmul.f32 %v2138_v31, %v535_v20  ;;  %v2133_v34 = vpop.permute.xlu0 %2132  ;;  %2457 = vperm.xlu1 %4117, %v1515_v21   ;;  %v550_v19 = vld [vmem:[%s4427_s11 + $0x730] sm:$0xff]  ;;  %v551_v20 = vld [vmem:[%s4427_s11 + $0x738] sm:$0xff]  ;;  %v1523_v21 = vsub.f32 %v1267_v11, %v1011_v10 }
 0x173   : > { %v3092_v38 = vmul.f32 %v2133_v34, %v532_v24  ;;  %v3093_v39 = vmul.f32 %v2133_v34, %v533_v28  ;;  %2452 = vperm.xlu0 %4116, %v1514_v25   ;;  %v548_v24 = vld [vmem:[%s4427_s11 + $0x720] sm:$0xff]  ;;  %v1522_v25 = vsub.f32 %v1266_v14, %v1010_v13  ;;  %v549_v28 = vld [vmem:[%s4427_s11 + $0x728] sm:$0xff]  ;;  %v1019_v10 = vld [vmem:[%s4288_s4 + $0x5d8] sm:$0xff] }
 0x174   : > { %3606 = vst [vmem:[%s4449_s21 + $0x6b0] sm:$0xff] %v3094_v32  ;;  %3607 = vst [vmem:[%s4449_s21 + $0x6b8] sm:$0xff] %v3095_v33  ;;  %v1275_v11 = vld [vmem:[%s4293_s7 + $0x5d8] sm:$0xff]  ;;  %v1018_v13 = vld [vmem:[%s4288_s4 + $0x5d0] sm:$0xff] }
 0x175   : > { %3604 = vst [vmem:[%s4449_s21 + $0x6a0] sm:$0xff] %v3092_v38  ;;  %3605 = vst [vmem:[%s4449_s21 + $0x6a8] sm:$0xff] %v3093_v39  ;;  %v2148_v47 = vpop.permute.xlu1 %2147  ;;  %v1274_v14 = vld [vmem:[%s4293_s7 + $0x5d0] sm:$0xff] }
 0x176   : > { %v3098_v48 = vmul.f32 %v2148_v47, %v538_v35  ;;  %v3099_v49 = vmul.f32 %v2148_v47, %v539_v36  ;;  %v2143_v50 = vpop.permute.xlu0 %2142  ;;  %2467 = vperm.xlu1 %4117, %v1517_v37   ;;  %v554_v35 = vld [vmem:[%s4427_s11 + $0x750] sm:$0xff]  ;;  %v555_v36 = vld [vmem:[%s4427_s11 + $0x758] sm:$0xff]  ;;  %v1525_v37 = vsub.f32 %v1269_v27, %v1013_v26  ;;  %v1021_v26 = vld [vmem:[%s4288_s4 + $0x5e8] sm:$0xff] }
 0x177   : > { %v3096_v54 = vmul.f32 %v2143_v50, %v536_v40  ;;  %v3097_v55 = vmul.f32 %v2143_v50, %v537_v44  ;;  %2462 = vperm.xlu0 %4116, %v1516_v41   ;;  %v552_v40 = vld [vmem:[%s4427_s11 + $0x740] sm:$0xff]  ;;  %v1524_v41 = vsub.f32 %v1268_v30, %v1012_v29  ;;  %v553_v44 = vld [vmem:[%s4427_s11 + $0x748] sm:$0xff] }
 0x178   : > { %3610 = vst [vmem:[%s4449_s21 + $0x6d0] sm:$0xff] %v3098_v48  ;;  %3611 = vst [vmem:[%s4449_s21 + $0x6d8] sm:$0xff] %v3099_v49  ;;  %v1277_v27 = vld [vmem:[%s4293_s7 + $0x5e8] sm:$0xff]  ;;  %v1020_v29 = vld [vmem:[%s4288_s4 + $0x5e0] sm:$0xff] }
 0x179   : > { %3608 = vst [vmem:[%s4449_s21 + $0x6c0] sm:$0xff] %v3096_v54  ;;  %3609 = vst [vmem:[%s4449_s21 + $0x6c8] sm:$0xff] %v3097_v55  ;;  %v2158_v63 = vpop.permute.xlu1 %2157  ;;  %v1276_v30 = vld [vmem:[%s4293_s7 + $0x5e0] sm:$0xff] }
 0x17a   : > { %v3102_v0 = vmul.f32 %v2158_v63, %v542_v51  ;;  %v3103_v1 = vmul.f32 %v2158_v63, %v543_v52  ;;  %v2153_v2 = vpop.permute.xlu0 %2152  ;;  %2477 = vperm.xlu1 %4117, %v1519_v53   ;;  %v558_v51 = vld [vmem:[%s4427_s11 + $0x770] sm:$0xff]  ;;  %v559_v52 = vld [vmem:[%s4427_s11 + $0x778] sm:$0xff]  ;;  %v1527_v53 = vsub.f32 %v1271_v43, %v1015_v42 }
 0x17b   : > { %v3100_v6 = vmul.f32 %v2153_v2, %v540_v56  ;;  %v3101_v7 = vmul.f32 %v2153_v2, %v541_v60  ;;  %2472 = vperm.xlu0 %4116, %v1518_v57   ;;  %v556_v56 = vld [vmem:[%s4427_s11 + $0x760] sm:$0xff]  ;;  %v1526_v57 = vsub.f32 %v1270_v46, %v1014_v45  ;;  %v557_v60 = vld [vmem:[%s4427_s11 + $0x768] sm:$0xff]  ;;  %v1023_v42 = vld [vmem:[%s4288_s4 + $0x5f8] sm:$0xff] }
 0x17c   : > { %3614 = vst [vmem:[%s4449_s21 + $0x6f0] sm:$0xff] %v3102_v0  ;;  %3615 = vst [vmem:[%s4449_s21 + $0x6f8] sm:$0xff] %v3103_v1  ;;  %v1279_v43 = vld [vmem:[%s4293_s7 + $0x5f8] sm:$0xff]  ;;  %v1022_v45 = vld [vmem:[%s4288_s4 + $0x5f0] sm:$0xff] }
 0x17d   : > { %3612 = vst [vmem:[%s4449_s21 + $0x6e0] sm:$0xff] %v3100_v6  ;;  %3613 = vst [vmem:[%s4449_s21 + $0x6e8] sm:$0xff] %v3101_v7  ;;  %v2168_v15 = vpop.permute.xlu1 %2167  ;;  %v1278_v46 = vld [vmem:[%s4293_s7 + $0x5f0] sm:$0xff] }
 0x17e   : > { %v3106_v16 = vmul.f32 %v2168_v15, %v546_v3  ;;  %v3107_v17 = vmul.f32 %v2168_v15, %v547_v4  ;;  %v2163_v18 = vpop.permute.xlu0 %2162  ;;  %2487 = vperm.xlu1 %4117, %v1521_v5   ;;  %v562_v3 = vld [vmem:[%s4427_s11 + $0x790] sm:$0xff]  ;;  %v563_v4 = vld [vmem:[%s4427_s11 + $0x798] sm:$0xff]  ;;  %v1529_v5 = vsub.f32 %v1273_v59, %v1017_v58  ;;  %v1025_v58 = vld [vmem:[%s4288_s4 + $0x608] sm:$0xff] }
 0x17f   : > { %v3104_v22 = vmul.f32 %v2163_v18, %v544_v8  ;;  %v3105_v23 = vmul.f32 %v2163_v18, %v545_v12  ;;  %2482 = vperm.xlu0 %4116, %v1520_v9   ;;  %v560_v8 = vld [vmem:[%s4427_s11 + $0x780] sm:$0xff]  ;;  %v1528_v9 = vsub.f32 %v1272_v62, %v1016_v61  ;;  %v561_v12 = vld [vmem:[%s4427_s11 + $0x788] sm:$0xff] }
 0x180   : > { %3618 = vst [vmem:[%s4449_s21 + $0x710] sm:$0xff] %v3106_v16  ;;  %3619 = vst [vmem:[%s4449_s21 + $0x718] sm:$0xff] %v3107_v17  ;;  %v1281_v59 = vld [vmem:[%s4293_s7 + $0x608] sm:$0xff]  ;;  %v1024_v61 = vld [vmem:[%s4288_s4 + $0x600] sm:$0xff] }
 0x181   : > { %3616 = vst [vmem:[%s4449_s21 + $0x700] sm:$0xff] %v3104_v22  ;;  %3617 = vst [vmem:[%s4449_s21 + $0x708] sm:$0xff] %v3105_v23  ;;  %v2178_v31 = vpop.permute.xlu1 %2177  ;;  %v1280_v62 = vld [vmem:[%s4293_s7 + $0x600] sm:$0xff] }
 0x182   : > { %v3110_v32 = vmul.f32 %v2178_v31, %v550_v19  ;;  %v3111_v33 = vmul.f32 %v2178_v31, %v551_v20  ;;  %v2173_v34 = vpop.permute.xlu0 %2172  ;;  %2497 = vperm.xlu1 %4117, %v1523_v21   ;;  %v566_v19 = vld [vmem:[%s4427_s11 + $0x7b0] sm:$0xff]  ;;  %v567_v20 = vld [vmem:[%s4427_s11 + $0x7b8] sm:$0xff]  ;;  %v1531_v21 = vsub.f32 %v1275_v11, %v1019_v10 }
 0x183   : > { %v3108_v38 = vmul.f32 %v2173_v34, %v548_v24  ;;  %v3109_v39 = vmul.f32 %v2173_v34, %v549_v28  ;;  %2492 = vperm.xlu0 %4116, %v1522_v25   ;;  %v564_v24 = vld [vmem:[%s4427_s11 + $0x7a0] sm:$0xff]  ;;  %v1530_v25 = vsub.f32 %v1274_v14, %v1018_v13  ;;  %v565_v28 = vld [vmem:[%s4427_s11 + $0x7a8] sm:$0xff]  ;;  %v1027_v10 = vld [vmem:[%s4288_s4 + $0x618] sm:$0xff] }
 0x184   : > { %3622 = vst [vmem:[%s4449_s21 + $0x730] sm:$0xff] %v3110_v32  ;;  %3623 = vst [vmem:[%s4449_s21 + $0x738] sm:$0xff] %v3111_v33  ;;  %v1283_v11 = vld [vmem:[%s4293_s7 + $0x618] sm:$0xff]  ;;  %v1026_v13 = vld [vmem:[%s4288_s4 + $0x610] sm:$0xff] }
 0x185   : > { %3620 = vst [vmem:[%s4449_s21 + $0x720] sm:$0xff] %v3108_v38  ;;  %3621 = vst [vmem:[%s4449_s21 + $0x728] sm:$0xff] %v3109_v39  ;;  %v2188_v47 = vpop.permute.xlu1 %2187  ;;  %v1282_v14 = vld [vmem:[%s4293_s7 + $0x610] sm:$0xff] }
 0x186   : > { %v3114_v48 = vmul.f32 %v2188_v47, %v554_v35  ;;  %v3115_v49 = vmul.f32 %v2188_v47, %v555_v36  ;;  %v2183_v50 = vpop.permute.xlu0 %2182  ;;  %2507 = vperm.xlu1 %4117, %v1525_v37   ;;  %v570_v35 = vld [vmem:[%s4427_s11 + $0x7d0] sm:$0xff]  ;;  %v571_v36 = vld [vmem:[%s4427_s11 + $0x7d8] sm:$0xff]  ;;  %v1533_v37 = vsub.f32 %v1277_v27, %v1021_v26  ;;  %v1029_v26 = vld [vmem:[%s4288_s4 + $0x628] sm:$0xff] }
 0x187   : > { %v3112_v54 = vmul.f32 %v2183_v50, %v552_v40  ;;  %v3113_v55 = vmul.f32 %v2183_v50, %v553_v44  ;;  %2502 = vperm.xlu0 %4116, %v1524_v41   ;;  %v568_v40 = vld [vmem:[%s4427_s11 + $0x7c0] sm:$0xff]  ;;  %v1532_v41 = vsub.f32 %v1276_v30, %v1020_v29  ;;  %v569_v44 = vld [vmem:[%s4427_s11 + $0x7c8] sm:$0xff] }
 0x188   : > { %3626 = vst [vmem:[%s4449_s21 + $0x750] sm:$0xff] %v3114_v48  ;;  %3627 = vst [vmem:[%s4449_s21 + $0x758] sm:$0xff] %v3115_v49  ;;  %v1285_v27 = vld [vmem:[%s4293_s7 + $0x628] sm:$0xff]  ;;  %v1028_v29 = vld [vmem:[%s4288_s4 + $0x620] sm:$0xff] }
 0x189   : > { %3624 = vst [vmem:[%s4449_s21 + $0x740] sm:$0xff] %v3112_v54  ;;  %3625 = vst [vmem:[%s4449_s21 + $0x748] sm:$0xff] %v3113_v55  ;;  %v2198_v63 = vpop.permute.xlu1 %2197  ;;  %v1284_v30 = vld [vmem:[%s4293_s7 + $0x620] sm:$0xff] }
 0x18a   : > { %v3118_v0 = vmul.f32 %v2198_v63, %v558_v51  ;;  %v3119_v1 = vmul.f32 %v2198_v63, %v559_v52  ;;  %v2193_v2 = vpop.permute.xlu0 %2192  ;;  %2517 = vperm.xlu1 %4117, %v1527_v53   ;;  %v574_v51 = vld [vmem:[%s4427_s11 + $0x7f0] sm:$0xff]  ;;  %v575_v52 = vld [vmem:[%s4427_s11 + $0x7f8] sm:$0xff]  ;;  %v1535_v53 = vsub.f32 %v1279_v43, %v1023_v42 }
 0x18b   : > { %v3116_v6 = vmul.f32 %v2193_v2, %v556_v56  ;;  %v3117_v7 = vmul.f32 %v2193_v2, %v557_v60  ;;  %2512 = vperm.xlu0 %4116, %v1526_v57   ;;  %v572_v56 = vld [vmem:[%s4427_s11 + $0x7e0] sm:$0xff]  ;;  %v1534_v57 = vsub.f32 %v1278_v46, %v1022_v45  ;;  %v573_v60 = vld [vmem:[%s4427_s11 + $0x7e8] sm:$0xff]  ;;  %v1031_v42 = vld [vmem:[%s4288_s4 + $0x638] sm:$0xff] }
 0x18c   : > { %3630 = vst [vmem:[%s4449_s21 + $0x770] sm:$0xff] %v3118_v0  ;;  %3631 = vst [vmem:[%s4449_s21 + $0x778] sm:$0xff] %v3119_v1  ;;  %v1287_v43 = vld [vmem:[%s4293_s7 + $0x638] sm:$0xff]  ;;  %v1030_v45 = vld [vmem:[%s4288_s4 + $0x630] sm:$0xff] }
 0x18d   : > { %3628 = vst [vmem:[%s4449_s21 + $0x760] sm:$0xff] %v3116_v6  ;;  %3629 = vst [vmem:[%s4449_s21 + $0x768] sm:$0xff] %v3117_v7  ;;  %v2208_v15 = vpop.permute.xlu1 %2207  ;;  %v1286_v46 = vld [vmem:[%s4293_s7 + $0x630] sm:$0xff] }
 0x18e   : > { %v3122_v16 = vmul.f32 %v2208_v15, %v562_v3  ;;  %v3123_v17 = vmul.f32 %v2208_v15, %v563_v4  ;;  %v2203_v18 = vpop.permute.xlu0 %2202  ;;  %2527 = vperm.xlu1 %4117, %v1529_v5   ;;  %v578_v3 = vld [vmem:[%s4427_s11 + $0x810] sm:$0xff]  ;;  %v579_v4 = vld [vmem:[%s4427_s11 + $0x818] sm:$0xff]  ;;  %v1537_v5 = vsub.f32 %v1281_v59, %v1025_v58  ;;  %v1033_v58 = vld [vmem:[%s4288_s4 + $0x648] sm:$0xff] }
 0x18f   : > { %v3120_v22 = vmul.f32 %v2203_v18, %v560_v8  ;;  %v3121_v23 = vmul.f32 %v2203_v18, %v561_v12  ;;  %2522 = vperm.xlu0 %4116, %v1528_v9   ;;  %v576_v8 = vld [vmem:[%s4427_s11 + $0x800] sm:$0xff]  ;;  %v1536_v9 = vsub.f32 %v1280_v62, %v1024_v61  ;;  %v577_v12 = vld [vmem:[%s4427_s11 + $0x808] sm:$0xff] }
 0x190   : > { %3634 = vst [vmem:[%s4449_s21 + $0x790] sm:$0xff] %v3122_v16  ;;  %3635 = vst [vmem:[%s4449_s21 + $0x798] sm:$0xff] %v3123_v17  ;;  %v1289_v59 = vld [vmem:[%s4293_s7 + $0x648] sm:$0xff]  ;;  %v1032_v61 = vld [vmem:[%s4288_s4 + $0x640] sm:$0xff] }
 0x191   : > { %3632 = vst [vmem:[%s4449_s21 + $0x780] sm:$0xff] %v3120_v22  ;;  %3633 = vst [vmem:[%s4449_s21 + $0x788] sm:$0xff] %v3121_v23  ;;  %v2218_v31 = vpop.permute.xlu1 %2217  ;;  %v1288_v62 = vld [vmem:[%s4293_s7 + $0x640] sm:$0xff] }
 0x192   : > { %v3126_v32 = vmul.f32 %v2218_v31, %v566_v19  ;;  %v3127_v33 = vmul.f32 %v2218_v31, %v567_v20  ;;  %v2213_v34 = vpop.permute.xlu0 %2212  ;;  %2537 = vperm.xlu1 %4117, %v1531_v21   ;;  %v582_v19 = vld [vmem:[%s4427_s11 + $0x830] sm:$0xff]  ;;  %v583_v20 = vld [vmem:[%s4427_s11 + $0x838] sm:$0xff]  ;;  %v1539_v21 = vsub.f32 %v1283_v11, %v1027_v10 }
 0x193   : > { %v3124_v38 = vmul.f32 %v2213_v34, %v564_v24  ;;  %v3125_v39 = vmul.f32 %v2213_v34, %v565_v28  ;;  %2532 = vperm.xlu0 %4116, %v1530_v25   ;;  %v580_v24 = vld [vmem:[%s4427_s11 + $0x820] sm:$0xff]  ;;  %v1538_v25 = vsub.f32 %v1282_v14, %v1026_v13  ;;  %v581_v28 = vld [vmem:[%s4427_s11 + $0x828] sm:$0xff]  ;;  %v1035_v10 = vld [vmem:[%s4288_s4 + $0x658] sm:$0xff] }
 0x194   : > { %3638 = vst [vmem:[%s4449_s21 + $0x7b0] sm:$0xff] %v3126_v32  ;;  %3639 = vst [vmem:[%s4449_s21 + $0x7b8] sm:$0xff] %v3127_v33  ;;  %v1291_v11 = vld [vmem:[%s4293_s7 + $0x658] sm:$0xff]  ;;  %v1034_v13 = vld [vmem:[%s4288_s4 + $0x650] sm:$0xff] }
 0x195   : > { %3636 = vst [vmem:[%s4449_s21 + $0x7a0] sm:$0xff] %v3124_v38  ;;  %3637 = vst [vmem:[%s4449_s21 + $0x7a8] sm:$0xff] %v3125_v39  ;;  %v2228_v47 = vpop.permute.xlu1 %2227  ;;  %v1290_v14 = vld [vmem:[%s4293_s7 + $0x650] sm:$0xff] }
 0x196   : > { %v3130_v48 = vmul.f32 %v2228_v47, %v570_v35  ;;  %v3131_v49 = vmul.f32 %v2228_v47, %v571_v36  ;;  %v2223_v50 = vpop.permute.xlu0 %2222  ;;  %2547 = vperm.xlu1 %4117, %v1533_v37   ;;  %v586_v35 = vld [vmem:[%s4427_s11 + $0x850] sm:$0xff]  ;;  %v587_v36 = vld [vmem:[%s4427_s11 + $0x858] sm:$0xff]  ;;  %v1541_v37 = vsub.f32 %v1285_v27, %v1029_v26  ;;  %v1037_v26 = vld [vmem:[%s4288_s4 + $0x668] sm:$0xff] }
 0x197   : > { %v3128_v54 = vmul.f32 %v2223_v50, %v568_v40  ;;  %v3129_v55 = vmul.f32 %v2223_v50, %v569_v44  ;;  %2542 = vperm.xlu0 %4116, %v1532_v41   ;;  %v584_v40 = vld [vmem:[%s4427_s11 + $0x840] sm:$0xff]  ;;  %v1540_v41 = vsub.f32 %v1284_v30, %v1028_v29  ;;  %v585_v44 = vld [vmem:[%s4427_s11 + $0x848] sm:$0xff] }
 0x198   : > { %3642 = vst [vmem:[%s4449_s21 + $0x7d0] sm:$0xff] %v3130_v48  ;;  %3643 = vst [vmem:[%s4449_s21 + $0x7d8] sm:$0xff] %v3131_v49  ;;  %v1293_v27 = vld [vmem:[%s4293_s7 + $0x668] sm:$0xff]  ;;  %v1036_v29 = vld [vmem:[%s4288_s4 + $0x660] sm:$0xff] }
 0x199   : > { %3640 = vst [vmem:[%s4449_s21 + $0x7c0] sm:$0xff] %v3128_v54  ;;  %3641 = vst [vmem:[%s4449_s21 + $0x7c8] sm:$0xff] %v3129_v55  ;;  %v2238_v63 = vpop.permute.xlu1 %2237  ;;  %v1292_v30 = vld [vmem:[%s4293_s7 + $0x660] sm:$0xff] }
 0x19a   : > { %v3134_v0 = vmul.f32 %v2238_v63, %v574_v51  ;;  %v3135_v1 = vmul.f32 %v2238_v63, %v575_v52  ;;  %v2233_v2 = vpop.permute.xlu0 %2232  ;;  %2557 = vperm.xlu1 %4117, %v1535_v53   ;;  %v590_v51 = vld [vmem:[%s4427_s11 + $0x870] sm:$0xff]  ;;  %v591_v52 = vld [vmem:[%s4427_s11 + $0x878] sm:$0xff]  ;;  %v1543_v53 = vsub.f32 %v1287_v43, %v1031_v42 }
 0x19b   : > { %v3132_v6 = vmul.f32 %v2233_v2, %v572_v56  ;;  %v3133_v7 = vmul.f32 %v2233_v2, %v573_v60  ;;  %2552 = vperm.xlu0 %4116, %v1534_v57   ;;  %v588_v56 = vld [vmem:[%s4427_s11 + $0x860] sm:$0xff]  ;;  %v1542_v57 = vsub.f32 %v1286_v46, %v1030_v45  ;;  %v589_v60 = vld [vmem:[%s4427_s11 + $0x868] sm:$0xff]  ;;  %v1039_v42 = vld [vmem:[%s4288_s4 + $0x678] sm:$0xff] }
 0x19c   : > { %3646 = vst [vmem:[%s4449_s21 + $0x7f0] sm:$0xff] %v3134_v0  ;;  %3647 = vst [vmem:[%s4449_s21 + $0x7f8] sm:$0xff] %v3135_v1  ;;  %v1295_v43 = vld [vmem:[%s4293_s7 + $0x678] sm:$0xff]  ;;  %v1038_v45 = vld [vmem:[%s4288_s4 + $0x670] sm:$0xff] }
 0x19d   : > { %3644 = vst [vmem:[%s4449_s21 + $0x7e0] sm:$0xff] %v3132_v6  ;;  %3645 = vst [vmem:[%s4449_s21 + $0x7e8] sm:$0xff] %v3133_v7  ;;  %v2248_v15 = vpop.permute.xlu1 %2247  ;;  %v1294_v46 = vld [vmem:[%s4293_s7 + $0x670] sm:$0xff] }
 0x19e   : > { %v3138_v16 = vmul.f32 %v2248_v15, %v578_v3  ;;  %v3139_v17 = vmul.f32 %v2248_v15, %v579_v4  ;;  %v2243_v18 = vpop.permute.xlu0 %2242  ;;  %2567 = vperm.xlu1 %4117, %v1537_v5   ;;  %v594_v3 = vld [vmem:[%s4427_s11 + $0x890] sm:$0xff]  ;;  %v595_v4 = vld [vmem:[%s4427_s11 + $0x898] sm:$0xff]  ;;  %v1545_v5 = vsub.f32 %v1289_v59, %v1033_v58  ;;  %v1041_v58 = vld [vmem:[%s4288_s4 + $0x688] sm:$0xff] }
 0x19f   : > { %v3136_v22 = vmul.f32 %v2243_v18, %v576_v8  ;;  %v3137_v23 = vmul.f32 %v2243_v18, %v577_v12  ;;  %2562 = vperm.xlu0 %4116, %v1536_v9   ;;  %v592_v8 = vld [vmem:[%s4427_s11 + $0x880] sm:$0xff]  ;;  %v1544_v9 = vsub.f32 %v1288_v62, %v1032_v61  ;;  %v593_v12 = vld [vmem:[%s4427_s11 + $0x888] sm:$0xff] }
 0x1a0   : > { %3650 = vst [vmem:[%s4449_s21 + $0x810] sm:$0xff] %v3138_v16  ;;  %3651 = vst [vmem:[%s4449_s21 + $0x818] sm:$0xff] %v3139_v17  ;;  %v1297_v59 = vld [vmem:[%s4293_s7 + $0x688] sm:$0xff]  ;;  %v1040_v61 = vld [vmem:[%s4288_s4 + $0x680] sm:$0xff] }
 0x1a1   : > { %3648 = vst [vmem:[%s4449_s21 + $0x800] sm:$0xff] %v3136_v22  ;;  %3649 = vst [vmem:[%s4449_s21 + $0x808] sm:$0xff] %v3137_v23  ;;  %v2258_v31 = vpop.permute.xlu1 %2257  ;;  %v1296_v62 = vld [vmem:[%s4293_s7 + $0x680] sm:$0xff] }
 0x1a2   : > { %v3142_v32 = vmul.f32 %v2258_v31, %v582_v19  ;;  %v3143_v33 = vmul.f32 %v2258_v31, %v583_v20  ;;  %v2253_v34 = vpop.permute.xlu0 %2252  ;;  %2577 = vperm.xlu1 %4117, %v1539_v21   ;;  %v598_v19 = vld [vmem:[%s4427_s11 + $0x8b0] sm:$0xff]  ;;  %v599_v20 = vld [vmem:[%s4427_s11 + $0x8b8] sm:$0xff]  ;;  %v1547_v21 = vsub.f32 %v1291_v11, %v1035_v10 }
 0x1a3   : > { %v3140_v38 = vmul.f32 %v2253_v34, %v580_v24  ;;  %v3141_v39 = vmul.f32 %v2253_v34, %v581_v28  ;;  %2572 = vperm.xlu0 %4116, %v1538_v25   ;;  %v596_v24 = vld [vmem:[%s4427_s11 + $0x8a0] sm:$0xff]  ;;  %v1546_v25 = vsub.f32 %v1290_v14, %v1034_v13  ;;  %v597_v28 = vld [vmem:[%s4427_s11 + $0x8a8] sm:$0xff]  ;;  %v1043_v10 = vld [vmem:[%s4288_s4 + $0x698] sm:$0xff] }
 0x1a4   : > { %3654 = vst [vmem:[%s4449_s21 + $0x830] sm:$0xff] %v3142_v32  ;;  %3655 = vst [vmem:[%s4449_s21 + $0x838] sm:$0xff] %v3143_v33  ;;  %v1299_v11 = vld [vmem:[%s4293_s7 + $0x698] sm:$0xff]  ;;  %v1042_v13 = vld [vmem:[%s4288_s4 + $0x690] sm:$0xff] }
 0x1a5   : > { %3652 = vst [vmem:[%s4449_s21 + $0x820] sm:$0xff] %v3140_v38  ;;  %3653 = vst [vmem:[%s4449_s21 + $0x828] sm:$0xff] %v3141_v39  ;;  %v2268_v47 = vpop.permute.xlu1 %2267  ;;  %v1298_v14 = vld [vmem:[%s4293_s7 + $0x690] sm:$0xff] }
 0x1a6   : > { %v3146_v48 = vmul.f32 %v2268_v47, %v586_v35  ;;  %v3147_v49 = vmul.f32 %v2268_v47, %v587_v36  ;;  %v2263_v50 = vpop.permute.xlu0 %2262  ;;  %2587 = vperm.xlu1 %4117, %v1541_v37   ;;  %v602_v35 = vld [vmem:[%s4427_s11 + $0x8d0] sm:$0xff]  ;;  %v603_v36 = vld [vmem:[%s4427_s11 + $0x8d8] sm:$0xff]  ;;  %v1549_v37 = vsub.f32 %v1293_v27, %v1037_v26  ;;  %v1045_v26 = vld [vmem:[%s4288_s4 + $0x6a8] sm:$0xff] }
 0x1a7   : > { %v3144_v54 = vmul.f32 %v2263_v50, %v584_v40  ;;  %v3145_v55 = vmul.f32 %v2263_v50, %v585_v44  ;;  %2582 = vperm.xlu0 %4116, %v1540_v41   ;;  %v600_v40 = vld [vmem:[%s4427_s11 + $0x8c0] sm:$0xff]  ;;  %v1548_v41 = vsub.f32 %v1292_v30, %v1036_v29  ;;  %v601_v44 = vld [vmem:[%s4427_s11 + $0x8c8] sm:$0xff] }
 0x1a8   : > { %3658 = vst [vmem:[%s4449_s21 + $0x850] sm:$0xff] %v3146_v48  ;;  %3659 = vst [vmem:[%s4449_s21 + $0x858] sm:$0xff] %v3147_v49  ;;  %v1301_v27 = vld [vmem:[%s4293_s7 + $0x6a8] sm:$0xff]  ;;  %v1044_v29 = vld [vmem:[%s4288_s4 + $0x6a0] sm:$0xff] }
 0x1a9   : > { %3656 = vst [vmem:[%s4449_s21 + $0x840] sm:$0xff] %v3144_v54  ;;  %3657 = vst [vmem:[%s4449_s21 + $0x848] sm:$0xff] %v3145_v55  ;;  %v2278_v63 = vpop.permute.xlu1 %2277  ;;  %v1300_v30 = vld [vmem:[%s4293_s7 + $0x6a0] sm:$0xff] }
 0x1aa   : > { %v3150_v0 = vmul.f32 %v2278_v63, %v590_v51  ;;  %v3151_v1 = vmul.f32 %v2278_v63, %v591_v52  ;;  %v2273_v2 = vpop.permute.xlu0 %2272  ;;  %2597 = vperm.xlu1 %4117, %v1543_v53   ;;  %v606_v51 = vld [vmem:[%s4427_s11 + $0x8f0] sm:$0xff]  ;;  %v607_v52 = vld [vmem:[%s4427_s11 + $0x8f8] sm:$0xff]  ;;  %v1551_v53 = vsub.f32 %v1295_v43, %v1039_v42 }
 0x1ab   : > { %v3148_v6 = vmul.f32 %v2273_v2, %v588_v56  ;;  %v3149_v7 = vmul.f32 %v2273_v2, %v589_v60  ;;  %2592 = vperm.xlu0 %4116, %v1542_v57   ;;  %v604_v56 = vld [vmem:[%s4427_s11 + $0x8e0] sm:$0xff]  ;;  %v1550_v57 = vsub.f32 %v1294_v46, %v1038_v45  ;;  %v605_v60 = vld [vmem:[%s4427_s11 + $0x8e8] sm:$0xff]  ;;  %v1047_v42 = vld [vmem:[%s4288_s4 + $0x6b8] sm:$0xff] }
 0x1ac   : > { %3662 = vst [vmem:[%s4449_s21 + $0x870] sm:$0xff] %v3150_v0  ;;  %3663 = vst [vmem:[%s4449_s21 + $0x878] sm:$0xff] %v3151_v1  ;;  %v1303_v43 = vld [vmem:[%s4293_s7 + $0x6b8] sm:$0xff]  ;;  %v1046_v45 = vld [vmem:[%s4288_s4 + $0x6b0] sm:$0xff] }
 0x1ad   : > { %3660 = vst [vmem:[%s4449_s21 + $0x860] sm:$0xff] %v3148_v6  ;;  %3661 = vst [vmem:[%s4449_s21 + $0x868] sm:$0xff] %v3149_v7  ;;  %v2288_v15 = vpop.permute.xlu1 %2287  ;;  %v1302_v46 = vld [vmem:[%s4293_s7 + $0x6b0] sm:$0xff] }
 0x1ae   : > { %v3154_v16 = vmul.f32 %v2288_v15, %v594_v3  ;;  %v3155_v17 = vmul.f32 %v2288_v15, %v595_v4  ;;  %v2283_v18 = vpop.permute.xlu0 %2282  ;;  %2607 = vperm.xlu1 %4117, %v1545_v5   ;;  %v610_v3 = vld [vmem:[%s4427_s11 + $0x910] sm:$0xff]  ;;  %v611_v4 = vld [vmem:[%s4427_s11 + $0x918] sm:$0xff]  ;;  %v1553_v5 = vsub.f32 %v1297_v59, %v1041_v58  ;;  %v1049_v58 = vld [vmem:[%s4288_s4 + $0x6c8] sm:$0xff] }
 0x1af   : > { %v3152_v22 = vmul.f32 %v2283_v18, %v592_v8  ;;  %v3153_v23 = vmul.f32 %v2283_v18, %v593_v12  ;;  %2602 = vperm.xlu0 %4116, %v1544_v9   ;;  %v608_v8 = vld [vmem:[%s4427_s11 + $0x900] sm:$0xff]  ;;  %v1552_v9 = vsub.f32 %v1296_v62, %v1040_v61  ;;  %v609_v12 = vld [vmem:[%s4427_s11 + $0x908] sm:$0xff] }
 0x1b0   : > { %3666 = vst [vmem:[%s4449_s21 + $0x890] sm:$0xff] %v3154_v16  ;;  %3667 = vst [vmem:[%s4449_s21 + $0x898] sm:$0xff] %v3155_v17  ;;  %v1305_v59 = vld [vmem:[%s4293_s7 + $0x6c8] sm:$0xff]  ;;  %v1048_v61 = vld [vmem:[%s4288_s4 + $0x6c0] sm:$0xff] }
 0x1b1   : > { %3664 = vst [vmem:[%s4449_s21 + $0x880] sm:$0xff] %v3152_v22  ;;  %3665 = vst [vmem:[%s4449_s21 + $0x888] sm:$0xff] %v3153_v23  ;;  %v2298_v31 = vpop.permute.xlu1 %2297  ;;  %v1304_v62 = vld [vmem:[%s4293_s7 + $0x6c0] sm:$0xff] }
 0x1b2   : > { %v3158_v32 = vmul.f32 %v2298_v31, %v598_v19  ;;  %v3159_v33 = vmul.f32 %v2298_v31, %v599_v20  ;;  %v2293_v34 = vpop.permute.xlu0 %2292  ;;  %2617 = vperm.xlu1 %4117, %v1547_v21   ;;  %v614_v19 = vld [vmem:[%s4427_s11 + $0x930] sm:$0xff]  ;;  %v615_v20 = vld [vmem:[%s4427_s11 + $0x938] sm:$0xff]  ;;  %v1555_v21 = vsub.f32 %v1299_v11, %v1043_v10 }
 0x1b3   : > { %v3156_v38 = vmul.f32 %v2293_v34, %v596_v24  ;;  %v3157_v39 = vmul.f32 %v2293_v34, %v597_v28  ;;  %2612 = vperm.xlu0 %4116, %v1546_v25   ;;  %v612_v24 = vld [vmem:[%s4427_s11 + $0x920] sm:$0xff]  ;;  %v1554_v25 = vsub.f32 %v1298_v14, %v1042_v13  ;;  %v613_v28 = vld [vmem:[%s4427_s11 + $0x928] sm:$0xff]  ;;  %v1051_v10 = vld [vmem:[%s4288_s4 + $0x6d8] sm:$0xff] }
 0x1b4   : > { %3670 = vst [vmem:[%s4449_s21 + $0x8b0] sm:$0xff] %v3158_v32  ;;  %3671 = vst [vmem:[%s4449_s21 + $0x8b8] sm:$0xff] %v3159_v33  ;;  %v1307_v11 = vld [vmem:[%s4293_s7 + $0x6d8] sm:$0xff]  ;;  %v1050_v13 = vld [vmem:[%s4288_s4 + $0x6d0] sm:$0xff] }
 0x1b5   : > { %3668 = vst [vmem:[%s4449_s21 + $0x8a0] sm:$0xff] %v3156_v38  ;;  %3669 = vst [vmem:[%s4449_s21 + $0x8a8] sm:$0xff] %v3157_v39  ;;  %v2308_v47 = vpop.permute.xlu1 %2307  ;;  %v1306_v14 = vld [vmem:[%s4293_s7 + $0x6d0] sm:$0xff] }
 0x1b6   : > { %v3162_v48 = vmul.f32 %v2308_v47, %v602_v35  ;;  %v3163_v49 = vmul.f32 %v2308_v47, %v603_v36  ;;  %v2303_v50 = vpop.permute.xlu0 %2302  ;;  %2627 = vperm.xlu1 %4117, %v1549_v37   ;;  %v618_v35 = vld [vmem:[%s4427_s11 + $0x950] sm:$0xff]  ;;  %v619_v36 = vld [vmem:[%s4427_s11 + $0x958] sm:$0xff]  ;;  %v1557_v37 = vsub.f32 %v1301_v27, %v1045_v26  ;;  %v1053_v26 = vld [vmem:[%s4288_s4 + $0x6e8] sm:$0xff] }
 0x1b7   : > { %v3160_v54 = vmul.f32 %v2303_v50, %v600_v40  ;;  %v3161_v55 = vmul.f32 %v2303_v50, %v601_v44  ;;  %2622 = vperm.xlu0 %4116, %v1548_v41   ;;  %v616_v40 = vld [vmem:[%s4427_s11 + $0x940] sm:$0xff]  ;;  %v1556_v41 = vsub.f32 %v1300_v30, %v1044_v29  ;;  %v617_v44 = vld [vmem:[%s4427_s11 + $0x948] sm:$0xff] }
 0x1b8   : > { %3674 = vst [vmem:[%s4449_s21 + $0x8d0] sm:$0xff] %v3162_v48  ;;  %3675 = vst [vmem:[%s4449_s21 + $0x8d8] sm:$0xff] %v3163_v49  ;;  %v1309_v27 = vld [vmem:[%s4293_s7 + $0x6e8] sm:$0xff]  ;;  %v1052_v29 = vld [vmem:[%s4288_s4 + $0x6e0] sm:$0xff] }
 0x1b9   : > { %3672 = vst [vmem:[%s4449_s21 + $0x8c0] sm:$0xff] %v3160_v54  ;;  %3673 = vst [vmem:[%s4449_s21 + $0x8c8] sm:$0xff] %v3161_v55  ;;  %v2318_v63 = vpop.permute.xlu1 %2317  ;;  %v1308_v30 = vld [vmem:[%s4293_s7 + $0x6e0] sm:$0xff] }
 0x1ba   : > { %v3166_v0 = vmul.f32 %v2318_v63, %v606_v51  ;;  %v3167_v1 = vmul.f32 %v2318_v63, %v607_v52  ;;  %v2313_v2 = vpop.permute.xlu0 %2312  ;;  %2637 = vperm.xlu1 %4117, %v1551_v53   ;;  %v622_v51 = vld [vmem:[%s4427_s11 + $0x970] sm:$0xff]  ;;  %v623_v52 = vld [vmem:[%s4427_s11 + $0x978] sm:$0xff]  ;;  %v1559_v53 = vsub.f32 %v1303_v43, %v1047_v42 }
 0x1bb   : > { %v3164_v6 = vmul.f32 %v2313_v2, %v604_v56  ;;  %v3165_v7 = vmul.f32 %v2313_v2, %v605_v60  ;;  %2632 = vperm.xlu0 %4116, %v1550_v57   ;;  %v620_v56 = vld [vmem:[%s4427_s11 + $0x960] sm:$0xff]  ;;  %v1558_v57 = vsub.f32 %v1302_v46, %v1046_v45  ;;  %v621_v60 = vld [vmem:[%s4427_s11 + $0x968] sm:$0xff]  ;;  %v1055_v42 = vld [vmem:[%s4288_s4 + $0x6f8] sm:$0xff] }
 0x1bc   : > { %3678 = vst [vmem:[%s4449_s21 + $0x8f0] sm:$0xff] %v3166_v0  ;;  %3679 = vst [vmem:[%s4449_s21 + $0x8f8] sm:$0xff] %v3167_v1  ;;  %v1311_v43 = vld [vmem:[%s4293_s7 + $0x6f8] sm:$0xff]  ;;  %v1054_v45 = vld [vmem:[%s4288_s4 + $0x6f0] sm:$0xff] }
 0x1bd   : > { %3676 = vst [vmem:[%s4449_s21 + $0x8e0] sm:$0xff] %v3164_v6  ;;  %3677 = vst [vmem:[%s4449_s21 + $0x8e8] sm:$0xff] %v3165_v7  ;;  %v2328_v15 = vpop.permute.xlu1 %2327  ;;  %v1310_v46 = vld [vmem:[%s4293_s7 + $0x6f0] sm:$0xff] }
 0x1be   : > { %v3170_v16 = vmul.f32 %v2328_v15, %v610_v3  ;;  %v3171_v17 = vmul.f32 %v2328_v15, %v611_v4  ;;  %v2323_v18 = vpop.permute.xlu0 %2322  ;;  %2647 = vperm.xlu1 %4117, %v1553_v5   ;;  %v626_v3 = vld [vmem:[%s4427_s11 + $0x990] sm:$0xff]  ;;  %v627_v4 = vld [vmem:[%s4427_s11 + $0x998] sm:$0xff]  ;;  %v1561_v5 = vsub.f32 %v1305_v59, %v1049_v58  ;;  %v1057_v58 = vld [vmem:[%s4288_s4 + $0x708] sm:$0xff] }
 0x1bf   : > { %v3168_v22 = vmul.f32 %v2323_v18, %v608_v8  ;;  %v3169_v23 = vmul.f32 %v2323_v18, %v609_v12  ;;  %2642 = vperm.xlu0 %4116, %v1552_v9   ;;  %v624_v8 = vld [vmem:[%s4427_s11 + $0x980] sm:$0xff]  ;;  %v1560_v9 = vsub.f32 %v1304_v62, %v1048_v61  ;;  %v625_v12 = vld [vmem:[%s4427_s11 + $0x988] sm:$0xff] }
 0x1c0   : > { %3682 = vst [vmem:[%s4449_s21 + $0x910] sm:$0xff] %v3170_v16  ;;  %3683 = vst [vmem:[%s4449_s21 + $0x918] sm:$0xff] %v3171_v17  ;;  %v1313_v59 = vld [vmem:[%s4293_s7 + $0x708] sm:$0xff]  ;;  %v1056_v61 = vld [vmem:[%s4288_s4 + $0x700] sm:$0xff] }
 0x1c1   : > { %3680 = vst [vmem:[%s4449_s21 + $0x900] sm:$0xff] %v3168_v22  ;;  %3681 = vst [vmem:[%s4449_s21 + $0x908] sm:$0xff] %v3169_v23  ;;  %v2338_v31 = vpop.permute.xlu1 %2337  ;;  %v1312_v62 = vld [vmem:[%s4293_s7 + $0x700] sm:$0xff] }
 0x1c2   : > { %v3174_v32 = vmul.f32 %v2338_v31, %v614_v19  ;;  %v3175_v33 = vmul.f32 %v2338_v31, %v615_v20  ;;  %v2333_v34 = vpop.permute.xlu0 %2332  ;;  %2657 = vperm.xlu1 %4117, %v1555_v21   ;;  %v630_v19 = vld [vmem:[%s4427_s11 + $0x9b0] sm:$0xff]  ;;  %v631_v20 = vld [vmem:[%s4427_s11 + $0x9b8] sm:$0xff]  ;;  %v1563_v21 = vsub.f32 %v1307_v11, %v1051_v10 }
 0x1c3   : > { %v3172_v38 = vmul.f32 %v2333_v34, %v612_v24  ;;  %v3173_v39 = vmul.f32 %v2333_v34, %v613_v28  ;;  %2652 = vperm.xlu0 %4116, %v1554_v25   ;;  %v628_v24 = vld [vmem:[%s4427_s11 + $0x9a0] sm:$0xff]  ;;  %v1562_v25 = vsub.f32 %v1306_v14, %v1050_v13  ;;  %v629_v28 = vld [vmem:[%s4427_s11 + $0x9a8] sm:$0xff]  ;;  %v1059_v10 = vld [vmem:[%s4288_s4 + $0x718] sm:$0xff] }
 0x1c4   : > { %3686 = vst [vmem:[%s4449_s21 + $0x930] sm:$0xff] %v3174_v32  ;;  %3687 = vst [vmem:[%s4449_s21 + $0x938] sm:$0xff] %v3175_v33  ;;  %v1315_v11 = vld [vmem:[%s4293_s7 + $0x718] sm:$0xff]  ;;  %v1058_v13 = vld [vmem:[%s4288_s4 + $0x710] sm:$0xff] }
 0x1c5   : > { %3684 = vst [vmem:[%s4449_s21 + $0x920] sm:$0xff] %v3172_v38  ;;  %3685 = vst [vmem:[%s4449_s21 + $0x928] sm:$0xff] %v3173_v39  ;;  %v2348_v47 = vpop.permute.xlu1 %2347  ;;  %v1314_v14 = vld [vmem:[%s4293_s7 + $0x710] sm:$0xff] }
 0x1c6   : > { %v3178_v48 = vmul.f32 %v2348_v47, %v618_v35  ;;  %v3179_v49 = vmul.f32 %v2348_v47, %v619_v36  ;;  %v2343_v50 = vpop.permute.xlu0 %2342  ;;  %2667 = vperm.xlu1 %4117, %v1557_v37   ;;  %v634_v35 = vld [vmem:[%s4427_s11 + $0x9d0] sm:$0xff]  ;;  %v635_v36 = vld [vmem:[%s4427_s11 + $0x9d8] sm:$0xff]  ;;  %v1565_v37 = vsub.f32 %v1309_v27, %v1053_v26  ;;  %v1061_v26 = vld [vmem:[%s4288_s4 + $0x728] sm:$0xff] }
 0x1c7   : > { %v3176_v54 = vmul.f32 %v2343_v50, %v616_v40  ;;  %v3177_v55 = vmul.f32 %v2343_v50, %v617_v44  ;;  %2662 = vperm.xlu0 %4116, %v1556_v41   ;;  %v632_v40 = vld [vmem:[%s4427_s11 + $0x9c0] sm:$0xff]  ;;  %v1564_v41 = vsub.f32 %v1308_v30, %v1052_v29  ;;  %v633_v44 = vld [vmem:[%s4427_s11 + $0x9c8] sm:$0xff] }
 0x1c8   : > { %3690 = vst [vmem:[%s4449_s21 + $0x950] sm:$0xff] %v3178_v48  ;;  %3691 = vst [vmem:[%s4449_s21 + $0x958] sm:$0xff] %v3179_v49  ;;  %v1317_v27 = vld [vmem:[%s4293_s7 + $0x728] sm:$0xff]  ;;  %v1060_v29 = vld [vmem:[%s4288_s4 + $0x720] sm:$0xff] }
 0x1c9   : > { %3688 = vst [vmem:[%s4449_s21 + $0x940] sm:$0xff] %v3176_v54  ;;  %3689 = vst [vmem:[%s4449_s21 + $0x948] sm:$0xff] %v3177_v55  ;;  %v2358_v63 = vpop.permute.xlu1 %2357  ;;  %v1316_v30 = vld [vmem:[%s4293_s7 + $0x720] sm:$0xff] }
 0x1ca   : > { %v3182_v0 = vmul.f32 %v2358_v63, %v622_v51  ;;  %v3183_v1 = vmul.f32 %v2358_v63, %v623_v52  ;;  %v2353_v2 = vpop.permute.xlu0 %2352  ;;  %2677 = vperm.xlu1 %4117, %v1559_v53   ;;  %v638_v51 = vld [vmem:[%s4427_s11 + $0x9f0] sm:$0xff]  ;;  %v639_v52 = vld [vmem:[%s4427_s11 + $0x9f8] sm:$0xff]  ;;  %v1567_v53 = vsub.f32 %v1311_v43, %v1055_v42 }
 0x1cb   : > { %v3180_v6 = vmul.f32 %v2353_v2, %v620_v56  ;;  %v3181_v7 = vmul.f32 %v2353_v2, %v621_v60  ;;  %2672 = vperm.xlu0 %4116, %v1558_v57   ;;  %v636_v56 = vld [vmem:[%s4427_s11 + $0x9e0] sm:$0xff]  ;;  %v1566_v57 = vsub.f32 %v1310_v46, %v1054_v45  ;;  %v637_v60 = vld [vmem:[%s4427_s11 + $0x9e8] sm:$0xff]  ;;  %v1063_v42 = vld [vmem:[%s4288_s4 + $0x738] sm:$0xff] }
 0x1cc   : > { %3694 = vst [vmem:[%s4449_s21 + $0x970] sm:$0xff] %v3182_v0  ;;  %3695 = vst [vmem:[%s4449_s21 + $0x978] sm:$0xff] %v3183_v1  ;;  %v1319_v43 = vld [vmem:[%s4293_s7 + $0x738] sm:$0xff]  ;;  %v1062_v45 = vld [vmem:[%s4288_s4 + $0x730] sm:$0xff] }
 0x1cd   : > { %3692 = vst [vmem:[%s4449_s21 + $0x960] sm:$0xff] %v3180_v6  ;;  %3693 = vst [vmem:[%s4449_s21 + $0x968] sm:$0xff] %v3181_v7  ;;  %v2368_v15 = vpop.permute.xlu1 %2367  ;;  %v1318_v46 = vld [vmem:[%s4293_s7 + $0x730] sm:$0xff] }
 0x1ce   : > { %v3186_v16 = vmul.f32 %v2368_v15, %v626_v3  ;;  %v3187_v17 = vmul.f32 %v2368_v15, %v627_v4  ;;  %v2363_v18 = vpop.permute.xlu0 %2362  ;;  %2687 = vperm.xlu1 %4117, %v1561_v5   ;;  %v642_v3 = vld [vmem:[%s4427_s11 + $0xa10] sm:$0xff]  ;;  %v643_v4 = vld [vmem:[%s4427_s11 + $0xa18] sm:$0xff]  ;;  %v1569_v5 = vsub.f32 %v1313_v59, %v1057_v58  ;;  %v1065_v58 = vld [vmem:[%s4288_s4 + $0x748] sm:$0xff] }
 0x1cf   : > { %v3184_v22 = vmul.f32 %v2363_v18, %v624_v8  ;;  %v3185_v23 = vmul.f32 %v2363_v18, %v625_v12  ;;  %2682 = vperm.xlu0 %4116, %v1560_v9   ;;  %v640_v8 = vld [vmem:[%s4427_s11 + $0xa00] sm:$0xff]  ;;  %v1568_v9 = vsub.f32 %v1312_v62, %v1056_v61  ;;  %v641_v12 = vld [vmem:[%s4427_s11 + $0xa08] sm:$0xff] }
 0x1d0   : > { %3698 = vst [vmem:[%s4449_s21 + $0x990] sm:$0xff] %v3186_v16  ;;  %3699 = vst [vmem:[%s4449_s21 + $0x998] sm:$0xff] %v3187_v17  ;;  %v1321_v59 = vld [vmem:[%s4293_s7 + $0x748] sm:$0xff]  ;;  %v1064_v61 = vld [vmem:[%s4288_s4 + $0x740] sm:$0xff] }
 0x1d1   : > { %3696 = vst [vmem:[%s4449_s21 + $0x980] sm:$0xff] %v3184_v22  ;;  %3697 = vst [vmem:[%s4449_s21 + $0x988] sm:$0xff] %v3185_v23  ;;  %v2378_v31 = vpop.permute.xlu1 %2377  ;;  %v1320_v62 = vld [vmem:[%s4293_s7 + $0x740] sm:$0xff] }
 0x1d2   : > { %v3190_v32 = vmul.f32 %v2378_v31, %v630_v19  ;;  %v3191_v33 = vmul.f32 %v2378_v31, %v631_v20  ;;  %v2373_v34 = vpop.permute.xlu0 %2372  ;;  %2697 = vperm.xlu1 %4117, %v1563_v21   ;;  %v646_v19 = vld [vmem:[%s4427_s11 + $0xa30] sm:$0xff]  ;;  %v647_v20 = vld [vmem:[%s4427_s11 + $0xa38] sm:$0xff]  ;;  %v1571_v21 = vsub.f32 %v1315_v11, %v1059_v10 }
 0x1d3   : > { %v3188_v38 = vmul.f32 %v2373_v34, %v628_v24  ;;  %v3189_v39 = vmul.f32 %v2373_v34, %v629_v28  ;;  %2692 = vperm.xlu0 %4116, %v1562_v25   ;;  %v644_v24 = vld [vmem:[%s4427_s11 + $0xa20] sm:$0xff]  ;;  %v1570_v25 = vsub.f32 %v1314_v14, %v1058_v13  ;;  %v645_v28 = vld [vmem:[%s4427_s11 + $0xa28] sm:$0xff]  ;;  %v1067_v10 = vld [vmem:[%s4288_s4 + $0x758] sm:$0xff] }
 0x1d4   : > { %3702 = vst [vmem:[%s4449_s21 + $0x9b0] sm:$0xff] %v3190_v32  ;;  %3703 = vst [vmem:[%s4449_s21 + $0x9b8] sm:$0xff] %v3191_v33  ;;  %v1323_v11 = vld [vmem:[%s4293_s7 + $0x758] sm:$0xff]  ;;  %v1066_v13 = vld [vmem:[%s4288_s4 + $0x750] sm:$0xff] }
 0x1d5   : > { %3700 = vst [vmem:[%s4449_s21 + $0x9a0] sm:$0xff] %v3188_v38  ;;  %3701 = vst [vmem:[%s4449_s21 + $0x9a8] sm:$0xff] %v3189_v39  ;;  %v2388_v47 = vpop.permute.xlu1 %2387  ;;  %v1322_v14 = vld [vmem:[%s4293_s7 + $0x750] sm:$0xff] }
 0x1d6   : > { %v3194_v48 = vmul.f32 %v2388_v47, %v634_v35  ;;  %v3195_v49 = vmul.f32 %v2388_v47, %v635_v36  ;;  %v2383_v50 = vpop.permute.xlu0 %2382  ;;  %2707 = vperm.xlu1 %4117, %v1565_v37   ;;  %v650_v35 = vld [vmem:[%s4427_s11 + $0xa50] sm:$0xff]  ;;  %v651_v36 = vld [vmem:[%s4427_s11 + $0xa58] sm:$0xff]  ;;  %v1573_v37 = vsub.f32 %v1317_v27, %v1061_v26  ;;  %v1069_v26 = vld [vmem:[%s4288_s4 + $0x768] sm:$0xff] }
 0x1d7   : > { %v3192_v54 = vmul.f32 %v2383_v50, %v632_v40  ;;  %v3193_v55 = vmul.f32 %v2383_v50, %v633_v44  ;;  %2702 = vperm.xlu0 %4116, %v1564_v41   ;;  %v648_v40 = vld [vmem:[%s4427_s11 + $0xa40] sm:$0xff]  ;;  %v1572_v41 = vsub.f32 %v1316_v30, %v1060_v29  ;;  %v649_v44 = vld [vmem:[%s4427_s11 + $0xa48] sm:$0xff] }
 0x1d8   : > { %3706 = vst [vmem:[%s4449_s21 + $0x9d0] sm:$0xff] %v3194_v48  ;;  %3707 = vst [vmem:[%s4449_s21 + $0x9d8] sm:$0xff] %v3195_v49  ;;  %v1325_v27 = vld [vmem:[%s4293_s7 + $0x768] sm:$0xff]  ;;  %v1068_v29 = vld [vmem:[%s4288_s4 + $0x760] sm:$0xff] }
 0x1d9   : > { %3704 = vst [vmem:[%s4449_s21 + $0x9c0] sm:$0xff] %v3192_v54  ;;  %3705 = vst [vmem:[%s4449_s21 + $0x9c8] sm:$0xff] %v3193_v55  ;;  %v2398_v63 = vpop.permute.xlu1 %2397  ;;  %v1324_v30 = vld [vmem:[%s4293_s7 + $0x760] sm:$0xff] }
 0x1da   : > { %v3198_v0 = vmul.f32 %v2398_v63, %v638_v51  ;;  %v3199_v1 = vmul.f32 %v2398_v63, %v639_v52  ;;  %v2393_v2 = vpop.permute.xlu0 %2392  ;;  %2717 = vperm.xlu1 %4117, %v1567_v53   ;;  %v654_v51 = vld [vmem:[%s4427_s11 + $0xa70] sm:$0xff]  ;;  %v655_v52 = vld [vmem:[%s4427_s11 + $0xa78] sm:$0xff]  ;;  %v1575_v53 = vsub.f32 %v1319_v43, %v1063_v42 }
 0x1db   : > { %v3196_v6 = vmul.f32 %v2393_v2, %v636_v56  ;;  %v3197_v7 = vmul.f32 %v2393_v2, %v637_v60  ;;  %2712 = vperm.xlu0 %4116, %v1566_v57   ;;  %v652_v56 = vld [vmem:[%s4427_s11 + $0xa60] sm:$0xff]  ;;  %v1574_v57 = vsub.f32 %v1318_v46, %v1062_v45  ;;  %v653_v60 = vld [vmem:[%s4427_s11 + $0xa68] sm:$0xff]  ;;  %v1071_v42 = vld [vmem:[%s4288_s4 + $0x778] sm:$0xff] }
 0x1dc   : > { %3710 = vst [vmem:[%s4449_s21 + $0x9f0] sm:$0xff] %v3198_v0  ;;  %3711 = vst [vmem:[%s4449_s21 + $0x9f8] sm:$0xff] %v3199_v1  ;;  %v1327_v43 = vld [vmem:[%s4293_s7 + $0x778] sm:$0xff]  ;;  %v1070_v45 = vld [vmem:[%s4288_s4 + $0x770] sm:$0xff] }
 0x1dd   : > { %3708 = vst [vmem:[%s4449_s21 + $0x9e0] sm:$0xff] %v3196_v6  ;;  %3709 = vst [vmem:[%s4449_s21 + $0x9e8] sm:$0xff] %v3197_v7  ;;  %v2408_v15 = vpop.permute.xlu1 %2407  ;;  %v1326_v46 = vld [vmem:[%s4293_s7 + $0x770] sm:$0xff] }
 0x1de   : > { %v3202_v16 = vmul.f32 %v2408_v15, %v642_v3  ;;  %v3203_v17 = vmul.f32 %v2408_v15, %v643_v4  ;;  %v2403_v18 = vpop.permute.xlu0 %2402  ;;  %2727 = vperm.xlu1 %4117, %v1569_v5   ;;  %v658_v3 = vld [vmem:[%s4427_s11 + $0xa90] sm:$0xff]  ;;  %v659_v4 = vld [vmem:[%s4427_s11 + $0xa98] sm:$0xff]  ;;  %v1577_v5 = vsub.f32 %v1321_v59, %v1065_v58  ;;  %v1073_v58 = vld [vmem:[%s4288_s4 + $0x788] sm:$0xff] }
 0x1df   : > { %v3200_v22 = vmul.f32 %v2403_v18, %v640_v8  ;;  %v3201_v23 = vmul.f32 %v2403_v18, %v641_v12  ;;  %2722 = vperm.xlu0 %4116, %v1568_v9   ;;  %v656_v8 = vld [vmem:[%s4427_s11 + $0xa80] sm:$0xff]  ;;  %v1576_v9 = vsub.f32 %v1320_v62, %v1064_v61  ;;  %v657_v12 = vld [vmem:[%s4427_s11 + $0xa88] sm:$0xff] }
 0x1e0   : > { %3714 = vst [vmem:[%s4449_s21 + $0xa10] sm:$0xff] %v3202_v16  ;;  %3715 = vst [vmem:[%s4449_s21 + $0xa18] sm:$0xff] %v3203_v17  ;;  %v1329_v59 = vld [vmem:[%s4293_s7 + $0x788] sm:$0xff]  ;;  %v1072_v61 = vld [vmem:[%s4288_s4 + $0x780] sm:$0xff] }
 0x1e1   : > { %3712 = vst [vmem:[%s4449_s21 + $0xa00] sm:$0xff] %v3200_v22  ;;  %3713 = vst [vmem:[%s4449_s21 + $0xa08] sm:$0xff] %v3201_v23  ;;  %v2418_v31 = vpop.permute.xlu1 %2417  ;;  %v1328_v62 = vld [vmem:[%s4293_s7 + $0x780] sm:$0xff] }
 0x1e2   : > { %v3206_v32 = vmul.f32 %v2418_v31, %v646_v19  ;;  %v3207_v33 = vmul.f32 %v2418_v31, %v647_v20  ;;  %v2413_v34 = vpop.permute.xlu0 %2412  ;;  %2737 = vperm.xlu1 %4117, %v1571_v21   ;;  %v662_v19 = vld [vmem:[%s4427_s11 + $0xab0] sm:$0xff]  ;;  %v663_v20 = vld [vmem:[%s4427_s11 + $0xab8] sm:$0xff]  ;;  %v1579_v21 = vsub.f32 %v1323_v11, %v1067_v10 }
 0x1e3   : > { %v3204_v38 = vmul.f32 %v2413_v34, %v644_v24  ;;  %v3205_v39 = vmul.f32 %v2413_v34, %v645_v28  ;;  %2732 = vperm.xlu0 %4116, %v1570_v25   ;;  %v660_v24 = vld [vmem:[%s4427_s11 + $0xaa0] sm:$0xff]  ;;  %v1578_v25 = vsub.f32 %v1322_v14, %v1066_v13  ;;  %v661_v28 = vld [vmem:[%s4427_s11 + $0xaa8] sm:$0xff]  ;;  %v1075_v10 = vld [vmem:[%s4288_s4 + $0x798] sm:$0xff] }
 0x1e4   : > { %3718 = vst [vmem:[%s4449_s21 + $0xa30] sm:$0xff] %v3206_v32  ;;  %3719 = vst [vmem:[%s4449_s21 + $0xa38] sm:$0xff] %v3207_v33  ;;  %v1331_v11 = vld [vmem:[%s4293_s7 + $0x798] sm:$0xff]  ;;  %v1074_v13 = vld [vmem:[%s4288_s4 + $0x790] sm:$0xff] }
 0x1e5   : > { %3716 = vst [vmem:[%s4449_s21 + $0xa20] sm:$0xff] %v3204_v38  ;;  %3717 = vst [vmem:[%s4449_s21 + $0xa28] sm:$0xff] %v3205_v39  ;;  %v2428_v47 = vpop.permute.xlu1 %2427  ;;  %v1330_v14 = vld [vmem:[%s4293_s7 + $0x790] sm:$0xff] }
 0x1e6   : > { %v3210_v48 = vmul.f32 %v2428_v47, %v650_v35  ;;  %v3211_v49 = vmul.f32 %v2428_v47, %v651_v36  ;;  %v2423_v50 = vpop.permute.xlu0 %2422  ;;  %2747 = vperm.xlu1 %4117, %v1573_v37   ;;  %v666_v35 = vld [vmem:[%s4427_s11 + $0xad0] sm:$0xff]  ;;  %v667_v36 = vld [vmem:[%s4427_s11 + $0xad8] sm:$0xff]  ;;  %v1581_v37 = vsub.f32 %v1325_v27, %v1069_v26  ;;  %v1077_v26 = vld [vmem:[%s4288_s4 + $0x7a8] sm:$0xff] }
 0x1e7   : > { %v3208_v54 = vmul.f32 %v2423_v50, %v648_v40  ;;  %v3209_v55 = vmul.f32 %v2423_v50, %v649_v44  ;;  %2742 = vperm.xlu0 %4116, %v1572_v41   ;;  %v664_v40 = vld [vmem:[%s4427_s11 + $0xac0] sm:$0xff]  ;;  %v1580_v41 = vsub.f32 %v1324_v30, %v1068_v29  ;;  %v665_v44 = vld [vmem:[%s4427_s11 + $0xac8] sm:$0xff] }
 0x1e8   : > { %3722 = vst [vmem:[%s4449_s21 + $0xa50] sm:$0xff] %v3210_v48  ;;  %3723 = vst [vmem:[%s4449_s21 + $0xa58] sm:$0xff] %v3211_v49  ;;  %v1333_v27 = vld [vmem:[%s4293_s7 + $0x7a8] sm:$0xff]  ;;  %v1076_v29 = vld [vmem:[%s4288_s4 + $0x7a0] sm:$0xff] }
 0x1e9   : > { %3720 = vst [vmem:[%s4449_s21 + $0xa40] sm:$0xff] %v3208_v54  ;;  %3721 = vst [vmem:[%s4449_s21 + $0xa48] sm:$0xff] %v3209_v55  ;;  %v2438_v63 = vpop.permute.xlu1 %2437  ;;  %v1332_v30 = vld [vmem:[%s4293_s7 + $0x7a0] sm:$0xff] }
 0x1ea   : > { %v3214_v0 = vmul.f32 %v2438_v63, %v654_v51  ;;  %v3215_v1 = vmul.f32 %v2438_v63, %v655_v52  ;;  %v2433_v2 = vpop.permute.xlu0 %2432  ;;  %2757 = vperm.xlu1 %4117, %v1575_v53   ;;  %v670_v51 = vld [vmem:[%s4427_s11 + $0xaf0] sm:$0xff]  ;;  %v671_v52 = vld [vmem:[%s4427_s11 + $0xaf8] sm:$0xff]  ;;  %v1583_v53 = vsub.f32 %v1327_v43, %v1071_v42 }
 0x1eb   : > { %v3212_v6 = vmul.f32 %v2433_v2, %v652_v56  ;;  %v3213_v7 = vmul.f32 %v2433_v2, %v653_v60  ;;  %2752 = vperm.xlu0 %4116, %v1574_v57   ;;  %v668_v56 = vld [vmem:[%s4427_s11 + $0xae0] sm:$0xff]  ;;  %v1582_v57 = vsub.f32 %v1326_v46, %v1070_v45  ;;  %v669_v60 = vld [vmem:[%s4427_s11 + $0xae8] sm:$0xff]  ;;  %v1079_v42 = vld [vmem:[%s4288_s4 + $0x7b8] sm:$0xff] }
 0x1ec   : > { %3726 = vst [vmem:[%s4449_s21 + $0xa70] sm:$0xff] %v3214_v0  ;;  %3727 = vst [vmem:[%s4449_s21 + $0xa78] sm:$0xff] %v3215_v1  ;;  %v1335_v43 = vld [vmem:[%s4293_s7 + $0x7b8] sm:$0xff]  ;;  %v1078_v45 = vld [vmem:[%s4288_s4 + $0x7b0] sm:$0xff] }
 0x1ed   : > { %3724 = vst [vmem:[%s4449_s21 + $0xa60] sm:$0xff] %v3212_v6  ;;  %3725 = vst [vmem:[%s4449_s21 + $0xa68] sm:$0xff] %v3213_v7  ;;  %v2448_v15 = vpop.permute.xlu1 %2447  ;;  %v1334_v46 = vld [vmem:[%s4293_s7 + $0x7b0] sm:$0xff] }
 0x1ee   : > { %v3218_v16 = vmul.f32 %v2448_v15, %v658_v3  ;;  %v3219_v17 = vmul.f32 %v2448_v15, %v659_v4  ;;  %v2443_v18 = vpop.permute.xlu0 %2442  ;;  %2767 = vperm.xlu1 %4117, %v1577_v5   ;;  %v674_v3 = vld [vmem:[%s4427_s11 + $0xb10] sm:$0xff]  ;;  %v675_v4 = vld [vmem:[%s4427_s11 + $0xb18] sm:$0xff]  ;;  %v1585_v5 = vsub.f32 %v1329_v59, %v1073_v58  ;;  %v1081_v58 = vld [vmem:[%s4288_s4 + $0x7c8] sm:$0xff] }
 0x1ef   : > { %v3216_v22 = vmul.f32 %v2443_v18, %v656_v8  ;;  %v3217_v23 = vmul.f32 %v2443_v18, %v657_v12  ;;  %2762 = vperm.xlu0 %4116, %v1576_v9   ;;  %v672_v8 = vld [vmem:[%s4427_s11 + $0xb00] sm:$0xff]  ;;  %v1584_v9 = vsub.f32 %v1328_v62, %v1072_v61  ;;  %v673_v12 = vld [vmem:[%s4427_s11 + $0xb08] sm:$0xff] }
 0x1f0   : > { %3730 = vst [vmem:[%s4449_s21 + $0xa90] sm:$0xff] %v3218_v16  ;;  %3731 = vst [vmem:[%s4449_s21 + $0xa98] sm:$0xff] %v3219_v17  ;;  %v1337_v59 = vld [vmem:[%s4293_s7 + $0x7c8] sm:$0xff]  ;;  %v1080_v61 = vld [vmem:[%s4288_s4 + $0x7c0] sm:$0xff] }
 0x1f1   : > { %3728 = vst [vmem:[%s4449_s21 + $0xa80] sm:$0xff] %v3216_v22  ;;  %3729 = vst [vmem:[%s4449_s21 + $0xa88] sm:$0xff] %v3217_v23  ;;  %v2458_v31 = vpop.permute.xlu1 %2457  ;;  %v1336_v62 = vld [vmem:[%s4293_s7 + $0x7c0] sm:$0xff] }
 0x1f2   : > { %v3222_v32 = vmul.f32 %v2458_v31, %v662_v19  ;;  %v3223_v33 = vmul.f32 %v2458_v31, %v663_v20  ;;  %v2453_v34 = vpop.permute.xlu0 %2452  ;;  %2777 = vperm.xlu1 %4117, %v1579_v21   ;;  %v678_v19 = vld [vmem:[%s4427_s11 + $0xb30] sm:$0xff]  ;;  %v679_v20 = vld [vmem:[%s4427_s11 + $0xb38] sm:$0xff]  ;;  %v1587_v21 = vsub.f32 %v1331_v11, %v1075_v10 }
 0x1f3   : > { %v3220_v38 = vmul.f32 %v2453_v34, %v660_v24  ;;  %v3221_v39 = vmul.f32 %v2453_v34, %v661_v28  ;;  %2772 = vperm.xlu0 %4116, %v1578_v25   ;;  %v676_v24 = vld [vmem:[%s4427_s11 + $0xb20] sm:$0xff]  ;;  %v1586_v25 = vsub.f32 %v1330_v14, %v1074_v13  ;;  %v677_v28 = vld [vmem:[%s4427_s11 + $0xb28] sm:$0xff]  ;;  %v1083_v10 = vld [vmem:[%s4288_s4 + $0x7d8] sm:$0xff] }
 0x1f4   : > { %3734 = vst [vmem:[%s4449_s21 + $0xab0] sm:$0xff] %v3222_v32  ;;  %3735 = vst [vmem:[%s4449_s21 + $0xab8] sm:$0xff] %v3223_v33  ;;  %v1339_v11 = vld [vmem:[%s4293_s7 + $0x7d8] sm:$0xff]  ;;  %v1082_v13 = vld [vmem:[%s4288_s4 + $0x7d0] sm:$0xff] }
 0x1f5   : > { %3732 = vst [vmem:[%s4449_s21 + $0xaa0] sm:$0xff] %v3220_v38  ;;  %3733 = vst [vmem:[%s4449_s21 + $0xaa8] sm:$0xff] %v3221_v39  ;;  %v2468_v47 = vpop.permute.xlu1 %2467  ;;  %v1338_v14 = vld [vmem:[%s4293_s7 + $0x7d0] sm:$0xff] }
 0x1f6   : > { %v3226_v48 = vmul.f32 %v2468_v47, %v666_v35  ;;  %v3227_v49 = vmul.f32 %v2468_v47, %v667_v36  ;;  %v2463_v50 = vpop.permute.xlu0 %2462  ;;  %2787 = vperm.xlu1 %4117, %v1581_v37   ;;  %v682_v35 = vld [vmem:[%s4427_s11 + $0xb50] sm:$0xff]  ;;  %v683_v36 = vld [vmem:[%s4427_s11 + $0xb58] sm:$0xff]  ;;  %v1589_v37 = vsub.f32 %v1333_v27, %v1077_v26  ;;  %v1085_v26 = vld [vmem:[%s4288_s4 + $0x7e8] sm:$0xff] }
 0x1f7   : > { %v3224_v54 = vmul.f32 %v2463_v50, %v664_v40  ;;  %v3225_v55 = vmul.f32 %v2463_v50, %v665_v44  ;;  %2782 = vperm.xlu0 %4116, %v1580_v41   ;;  %v680_v40 = vld [vmem:[%s4427_s11 + $0xb40] sm:$0xff]  ;;  %v1588_v41 = vsub.f32 %v1332_v30, %v1076_v29  ;;  %v681_v44 = vld [vmem:[%s4427_s11 + $0xb48] sm:$0xff] }
 0x1f8   : > { %3738 = vst [vmem:[%s4449_s21 + $0xad0] sm:$0xff] %v3226_v48  ;;  %3739 = vst [vmem:[%s4449_s21 + $0xad8] sm:$0xff] %v3227_v49  ;;  %v1341_v27 = vld [vmem:[%s4293_s7 + $0x7e8] sm:$0xff]  ;;  %v1084_v29 = vld [vmem:[%s4288_s4 + $0x7e0] sm:$0xff] }
 0x1f9   : > { %3736 = vst [vmem:[%s4449_s21 + $0xac0] sm:$0xff] %v3224_v54  ;;  %3737 = vst [vmem:[%s4449_s21 + $0xac8] sm:$0xff] %v3225_v55  ;;  %v2478_v63 = vpop.permute.xlu1 %2477  ;;  %v1340_v30 = vld [vmem:[%s4293_s7 + $0x7e0] sm:$0xff] }
 0x1fa   : > { %v3230_v0 = vmul.f32 %v2478_v63, %v670_v51  ;;  %v3231_v1 = vmul.f32 %v2478_v63, %v671_v52  ;;  %v2473_v2 = vpop.permute.xlu0 %2472  ;;  %2797 = vperm.xlu1 %4117, %v1583_v53   ;;  %v686_v51 = vld [vmem:[%s4427_s11 + $0xb70] sm:$0xff]  ;;  %v687_v52 = vld [vmem:[%s4427_s11 + $0xb78] sm:$0xff]  ;;  %v1591_v53 = vsub.f32 %v1335_v43, %v1079_v42 }
 0x1fb   : > { %v3228_v6 = vmul.f32 %v2473_v2, %v668_v56  ;;  %v3229_v7 = vmul.f32 %v2473_v2, %v669_v60  ;;  %2792 = vperm.xlu0 %4116, %v1582_v57   ;;  %v684_v56 = vld [vmem:[%s4427_s11 + $0xb60] sm:$0xff]  ;;  %v1590_v57 = vsub.f32 %v1334_v46, %v1078_v45  ;;  %v685_v60 = vld [vmem:[%s4427_s11 + $0xb68] sm:$0xff]  ;;  %v1087_v42 = vld [vmem:[%s4288_s4 + $0x7f8] sm:$0xff] }
 0x1fc   : > { %3742 = vst [vmem:[%s4449_s21 + $0xaf0] sm:$0xff] %v3230_v0  ;;  %3743 = vst [vmem:[%s4449_s21 + $0xaf8] sm:$0xff] %v3231_v1  ;;  %v1343_v43 = vld [vmem:[%s4293_s7 + $0x7f8] sm:$0xff]  ;;  %v1086_v45 = vld [vmem:[%s4288_s4 + $0x7f0] sm:$0xff] }
 0x1fd   : > { %3740 = vst [vmem:[%s4449_s21 + $0xae0] sm:$0xff] %v3228_v6  ;;  %3741 = vst [vmem:[%s4449_s21 + $0xae8] sm:$0xff] %v3229_v7  ;;  %v2488_v15 = vpop.permute.xlu1 %2487  ;;  %v1342_v46 = vld [vmem:[%s4293_s7 + $0x7f0] sm:$0xff] }
 0x1fe   : > { %v3234_v16 = vmul.f32 %v2488_v15, %v674_v3  ;;  %v3235_v17 = vmul.f32 %v2488_v15, %v675_v4  ;;  %v2483_v18 = vpop.permute.xlu0 %2482  ;;  %2807 = vperm.xlu1 %4117, %v1585_v5   ;;  %v690_v3 = vld [vmem:[%s4427_s11 + $0xb90] sm:$0xff]  ;;  %v691_v4 = vld [vmem:[%s4427_s11 + $0xb98] sm:$0xff]  ;;  %v1593_v5 = vsub.f32 %v1337_v59, %v1081_v58  ;;  %v701_v58 = vld [vmem:[%s4427_s11 + $0xbe8] sm:$0xff] }
 0x1ff   : > { %v3232_v22 = vmul.f32 %v2483_v18, %v672_v8  ;;  %v3233_v23 = vmul.f32 %v2483_v18, %v673_v12  ;;  %2802 = vperm.xlu0 %4116, %v1584_v9   ;;  %v688_v8 = vld [vmem:[%s4427_s11 + $0xb80] sm:$0xff]  ;;  %v1592_v9 = vsub.f32 %v1336_v62, %v1080_v61  ;;  %v689_v12 = vld [vmem:[%s4427_s11 + $0xb88] sm:$0xff] }
 0x200   : > { %3746 = vst [vmem:[%s4449_s21 + $0xb10] sm:$0xff] %v3234_v16  ;;  %3747 = vst [vmem:[%s4449_s21 + $0xb18] sm:$0xff] %v3235_v17 }
 0x201   : > { %3744 = vst [vmem:[%s4449_s21 + $0xb00] sm:$0xff] %v3232_v22  ;;  %3745 = vst [vmem:[%s4449_s21 + $0xb08] sm:$0xff] %v3233_v23  ;;  %v2498_v31 = vpop.permute.xlu1 %2497 }
 0x202   : > { %v3238_v32 = vmul.f32 %v2498_v31, %v678_v19  ;;  %v3239_v33 = vmul.f32 %v2498_v31, %v679_v20  ;;  %v2493_v34 = vpop.permute.xlu0 %2492  ;;  %2817 = vperm.xlu1 %4117, %v1587_v21   ;;  %v694_v19 = vld [vmem:[%s4427_s11 + $0xbb0] sm:$0xff]  ;;  %v695_v20 = vld [vmem:[%s4427_s11 + $0xbb8] sm:$0xff]  ;;  %v1595_v21 = vsub.f32 %v1339_v11, %v1083_v10 }
 0x203   : > { %v3236_v38 = vmul.f32 %v2493_v34, %v676_v24  ;;  %v3237_v39 = vmul.f32 %v2493_v34, %v677_v28  ;;  %2812 = vperm.xlu0 %4116, %v1586_v25   ;;  %v692_v24 = vld [vmem:[%s4427_s11 + $0xba0] sm:$0xff]  ;;  %v1594_v25 = vsub.f32 %v1338_v14, %v1082_v13  ;;  %v693_v28 = vld [vmem:[%s4427_s11 + $0xba8] sm:$0xff]  ;;  %v710_v11 = vld [vmem:[%s4427_s11 + $0xc30] sm:$0xff] }
 0x204   : > { %3750 = vst [vmem:[%s4449_s21 + $0xb30] sm:$0xff] %v3238_v32  ;;  %3751 = vst [vmem:[%s4449_s21 + $0xb38] sm:$0xff] %v3239_v33  ;;  %v708_v13 = vld [vmem:[%s4427_s11 + $0xc20] sm:$0xff]  ;;  %v709_v14 = vld [vmem:[%s4427_s11 + $0xc28] sm:$0xff] }
 0x205   : > { %3748 = vst [vmem:[%s4449_s21 + $0xb20] sm:$0xff] %v3236_v38  ;;  %3749 = vst [vmem:[%s4449_s21 + $0xb28] sm:$0xff] %v3237_v39  ;;  %v2508_v47 = vpop.permute.xlu1 %2507 }
 0x206   : > { %v3242_v48 = vmul.f32 %v2508_v47, %v682_v35  ;;  %v3243_v49 = vmul.f32 %v2508_v47, %v683_v36  ;;  %v2503_v50 = vpop.permute.xlu0 %2502  ;;  %2827 = vperm.xlu1 %4117, %v1589_v37   ;;  %v698_v35 = vld [vmem:[%s4427_s11 + $0xbd0] sm:$0xff]  ;;  %v699_v36 = vld [vmem:[%s4427_s11 + $0xbd8] sm:$0xff]  ;;  %v1597_v37 = vsub.f32 %v1341_v27, %v1085_v26 }
 0x207   : > { %v3240_v54 = vmul.f32 %v2503_v50, %v680_v40  ;;  %v3241_v55 = vmul.f32 %v2503_v50, %v681_v44  ;;  %2822 = vperm.xlu0 %4116, %v1588_v41   ;;  %v696_v40 = vld [vmem:[%s4427_s11 + $0xbc0] sm:$0xff]  ;;  %v1596_v41 = vsub.f32 %v1340_v30, %v1084_v29  ;;  %v697_v44 = vld [vmem:[%s4427_s11 + $0xbc8] sm:$0xff] }
 0x208   : > { %3754 = vst [vmem:[%s4449_s21 + $0xb50] sm:$0xff] %v3242_v48  ;;  %3755 = vst [vmem:[%s4449_s21 + $0xb58] sm:$0xff] %v3243_v49 }
 0x209   : > { %3752 = vst [vmem:[%s4449_s21 + $0xb40] sm:$0xff] %v3240_v54  ;;  %3753 = vst [vmem:[%s4449_s21 + $0xb48] sm:$0xff] %v3241_v55  ;;  %v2518_v63 = vpop.permute.xlu1 %2517  ;;  %v702_v54 = vld [vmem:[%s4427_s11 + $0xbf0] sm:$0xff]  ;;  %v703_v55 = vld [vmem:[%s4427_s11 + $0xbf8] sm:$0xff] }
 0x20a   : > { %v3246_v0 = vmul.f32 %v2518_v63, %v686_v51  ;;  %v3247_v1 = vmul.f32 %v2518_v63, %v687_v52  ;;  %v2513_v2 = vpop.permute.xlu0 %2512  ;;  %2837 = vperm.xlu1 %4117, %v1591_v53   ;;  %v1599_v51 = vsub.f32 %v1343_v43, %v1087_v42  ;;  %v723_v42 = vld [vmem:[%s4427_s11 + $0xc98] sm:$0xff]  ;;  %v720_v43 = vld [vmem:[%s4427_s11 + $0xc80] sm:$0xff] }
 0x20b   : > { %v3244_v6 = vmul.f32 %v2513_v2, %v684_v56  ;;  %v3245_v7 = vmul.f32 %v2513_v2, %v685_v60  ;;  %2832 = vperm.xlu0 %4116, %v1590_v57   ;;  %v1598_v56 = vsub.f32 %v1342_v46, %v1086_v45  ;;  %v700_v57 = vld [vmem:[%s4427_s11 + $0xbe0] sm:$0xff]  ;;  %v707_v2 = vld [vmem:[%s4427_s11 + $0xc18] sm:$0xff] }
 0x20c   : > { %3758 = vst [vmem:[%s4449_s21 + $0xb70] sm:$0xff] %v3246_v0  ;;  %3759 = vst [vmem:[%s4449_s21 + $0xb78] sm:$0xff] %v3247_v1  ;;  %v706_v1 = vld [vmem:[%s4427_s11 + $0xc10] sm:$0xff] }
 0x20d   : > { %3756 = vst [vmem:[%s4449_s21 + $0xb60] sm:$0xff] %v3244_v6  ;;  %3757 = vst [vmem:[%s4449_s21 + $0xb68] sm:$0xff] %v3245_v7  ;;  %v2528_v15 = vpop.permute.xlu1 %2527 }
 0x20e   : > { %v3250_v16 = vmul.f32 %v2528_v15, %v690_v3  ;;  %v3251_v17 = vmul.f32 %v2528_v15, %v691_v4  ;;  %v2523_v18 = vpop.permute.xlu0 %2522  ;;  %2847 = vperm.xlu1 %4117, %v1593_v5   ;;  %v704_v3 = vld [vmem:[%s4427_s11 + $0xc00] sm:$0xff]  ;;  %v705_v4 = vld [vmem:[%s4427_s11 + $0xc08] sm:$0xff] }
 0x20f   : > { %v3248_v22 = vmul.f32 %v2523_v18, %v688_v8  ;;  %v3249_v23 = vmul.f32 %v2523_v18, %v689_v12  ;;  %2842 = vperm.xlu0 %4116, %v1592_v9   ;;  %v711_v12 = vld [vmem:[%s4427_s11 + $0xc38] sm:$0xff] }
 0x210   : > { %3762 = vst [vmem:[%s4449_s21 + $0xb90] sm:$0xff] %v3250_v16  ;;  %3763 = vst [vmem:[%s4449_s21 + $0xb98] sm:$0xff] %v3251_v17 }
 0x211   : > { %3760 = vst [vmem:[%s4449_s21 + $0xb80] sm:$0xff] %v3248_v22  ;;  %3761 = vst [vmem:[%s4449_s21 + $0xb88] sm:$0xff] %v3249_v23  ;;  %v2538_v31 = vpop.permute.xlu1 %2537  ;;  %v715_v22 = vld [vmem:[%s4427_s11 + $0xc58] sm:$0xff]  ;;  %v712_v23 = vld [vmem:[%s4427_s11 + $0xc40] sm:$0xff] }
 0x212   : > { %v3254_v32 = vmul.f32 %v2538_v31, %v694_v19  ;;  %v3255_v33 = vmul.f32 %v2538_v31, %v695_v20  ;;  %v2533_v34 = vpop.permute.xlu0 %2532  ;;  %2857 = vperm.xlu1 %4117, %v1595_v21   ;;  %v714_v21 = vld [vmem:[%s4427_s11 + $0xc50] sm:$0xff] }
 0x213   : > { %v3252_v38 = vmul.f32 %v2533_v34, %v692_v24  ;;  %v3253_v39 = vmul.f32 %v2533_v34, %v693_v28  ;;  %2852 = vperm.xlu0 %4116, %v1594_v25   ;;  %v713_v24 = vld [vmem:[%s4427_s11 + $0xc48] sm:$0xff]  ;;  %v718_v31 = vld [vmem:[%s4427_s11 + $0xc70] sm:$0xff] }
 0x214   : > { %3766 = vst [vmem:[%s4449_s21 + $0xbb0] sm:$0xff] %v3254_v32  ;;  %3767 = vst [vmem:[%s4449_s21 + $0xbb8] sm:$0xff] %v3255_v33  ;;  %v719_v32 = vld [vmem:[%s4427_s11 + $0xc78] sm:$0xff]  ;;  %v716_v33 = vld [vmem:[%s4427_s11 + $0xc60] sm:$0xff] }
 0x215   : > { %3764 = vst [vmem:[%s4449_s21 + $0xba0] sm:$0xff] %v3252_v38  ;;  %3765 = vst [vmem:[%s4449_s21 + $0xba8] sm:$0xff] %v3253_v39  ;;  %v2548_v47 = vpop.permute.xlu1 %2547  ;;  %v717_v34 = vld [vmem:[%s4427_s11 + $0xc68] sm:$0xff] }
 0x216   : > { %v3258_v48 = vmul.f32 %v2548_v47, %v698_v35  ;;  %v3259_v49 = vmul.f32 %v2548_v47, %v699_v36  ;;  %v2543_v50 = vpop.permute.xlu0 %2542  ;;  %2867 = vperm.xlu1 %4117, %v1597_v37  }
 0x217   : > { %v3256_v52 = vmul.f32 %v2543_v50, %v696_v40  ;;  %v3257_v53 = vmul.f32 %v2543_v50, %v697_v44  ;;  %2862 = vperm.xlu0 %4116, %v1596_v41   ;;  %v722_v41 = vld [vmem:[%s4427_s11 + $0xc90] sm:$0xff]  ;;  %v721_v44 = vld [vmem:[%s4427_s11 + $0xc88] sm:$0xff] }
 0x218   : > { %3770 = vst [vmem:[%s4449_s21 + $0xbd0] sm:$0xff] %v3258_v48  ;;  %3771 = vst [vmem:[%s4449_s21 + $0xbd8] sm:$0xff] %v3259_v49 }
 0x219   : > { %3768 = vst [vmem:[%s4449_s21 + $0xbc0] sm:$0xff] %v3256_v52  ;;  %3769 = vst [vmem:[%s4449_s21 + $0xbc8] sm:$0xff] %v3257_v53  ;;  %v2558_v59 = vpop.permute.xlu1 %2557  ;;  %v727_v52 = vld [vmem:[%s4427_s11 + $0xcb8] sm:$0xff]  ;;  %v724_v53 = vld [vmem:[%s4427_s11 + $0xca0] sm:$0xff] }
 0x21a   : > { %v3262_v60 = vmul.f32 %v2558_v59, %v702_v54  ;;  %v3263_v61 = vmul.f32 %v2558_v59, %v703_v55  ;;  %v2553_v62 = vpop.permute.xlu0 %2552  ;;  %2877 = vperm.xlu1 %4117, %v1599_v51   ;;  %v726_v51 = vld [vmem:[%s4427_s11 + $0xcb0] sm:$0xff]  ;;  %v725_v54 = vld [vmem:[%s4427_s11 + $0xca8] sm:$0xff] }
 0x21b   : > { %v3260_v63 = vmul.f32 %v2553_v62, %v700_v57  ;;  %v3261_v0 = vmul.f32 %v2553_v62, %v701_v58  ;;  %2872 = vperm.xlu0 %4116, %v1598_v56   ;;  %v731_v62 = vld [vmem:[%s4427_s11 + $0xcd8] sm:$0xff] }
 0x21c   : > { %3774 = vst [vmem:[%s4449_s21 + $0xbf0] sm:$0xff] %v3262_v60  ;;  %3775 = vst [vmem:[%s4449_s21 + $0xbf8] sm:$0xff] %v3263_v61  ;;  %v730_v61 = vld [vmem:[%s4427_s11 + $0xcd0] sm:$0xff] }
 0x21d   : > { %3772 = vst [vmem:[%s4449_s21 + $0xbe0] sm:$0xff] %v3260_v63  ;;  %3773 = vst [vmem:[%s4449_s21 + $0xbe8] sm:$0xff] %v3261_v0  ;;  %v2568_v5 = vpop.permute.xlu1 %2567  ;;  %v728_v63 = vld [vmem:[%s4427_s11 + $0xcc0] sm:$0xff]  ;;  %v729_v0 = vld [vmem:[%s4427_s11 + $0xcc8] sm:$0xff] }
 0x21e   : > { %v3266_v6 = vmul.f32 %v2568_v5, %v706_v1  ;;  %v3267_v7 = vmul.f32 %v2568_v5, %v707_v2  ;;  %v2563_v8 = vpop.permute.xlu0 %2562 }
 0x21f   : > { %v3264_v9 = vmul.f32 %v2563_v8, %v704_v3  ;;  %v3265_v10 = vmul.f32 %v2563_v8, %v705_v4  ;;  %v735_v8 = vld [vmem:[%s4427_s11 + $0xcf8] sm:$0xff] }
 0x220   : > { %3778 = vst [vmem:[%s4449_s21 + $0xc10] sm:$0xff] %v3266_v6  ;;  %3779 = vst [vmem:[%s4449_s21 + $0xc18] sm:$0xff] %v3267_v7  ;;  %v734_v7 = vld [vmem:[%s4427_s11 + $0xcf0] sm:$0xff] }
 0x221   : > { %3776 = vst [vmem:[%s4449_s21 + $0xc00] sm:$0xff] %v3264_v9  ;;  %3777 = vst [vmem:[%s4449_s21 + $0xc08] sm:$0xff] %v3265_v10  ;;  %v2578_v15 = vpop.permute.xlu1 %2577  ;;  %v732_v9 = vld [vmem:[%s4427_s11 + $0xce0] sm:$0xff]  ;;  %v733_v10 = vld [vmem:[%s4427_s11 + $0xce8] sm:$0xff] }
 0x222   : > { %v3270_v16 = vmul.f32 %v2578_v15, %v710_v11  ;;  %v3271_v17 = vmul.f32 %v2578_v15, %v711_v12  ;;  %v2573_v18 = vpop.permute.xlu0 %2572 }
 0x223   : > { %v3268_v19 = vmul.f32 %v2573_v18, %v708_v13  ;;  %v3269_v20 = vmul.f32 %v2573_v18, %v709_v14  ;;  %v739_v18 = vld [vmem:[%s4427_s11 + $0xd18] sm:$0xff] }
 0x224   : > { %3782 = vst [vmem:[%s4449_s21 + $0xc30] sm:$0xff] %v3270_v16  ;;  %3783 = vst [vmem:[%s4449_s21 + $0xc38] sm:$0xff] %v3271_v17  ;;  %v738_v17 = vld [vmem:[%s4427_s11 + $0xd10] sm:$0xff] }
 0x225   : > { %3780 = vst [vmem:[%s4449_s21 + $0xc20] sm:$0xff] %v3268_v19  ;;  %3781 = vst [vmem:[%s4449_s21 + $0xc28] sm:$0xff] %v3269_v20  ;;  %v2588_v25 = vpop.permute.xlu1 %2587  ;;  %v736_v19 = vld [vmem:[%s4427_s11 + $0xd00] sm:$0xff]  ;;  %v737_v20 = vld [vmem:[%s4427_s11 + $0xd08] sm:$0xff] }
 0x226   : > { %v3274_v26 = vmul.f32 %v2588_v25, %v714_v21  ;;  %v3275_v27 = vmul.f32 %v2588_v25, %v715_v22  ;;  %v2583_v28 = vpop.permute.xlu0 %2582 }
 0x227   : > { %v3272_v29 = vmul.f32 %v2583_v28, %v712_v23  ;;  %v3273_v30 = vmul.f32 %v2583_v28, %v713_v24  ;;  %v743_v28 = vld [vmem:[%s4427_s11 + $0xd38] sm:$0xff] }
 0x228   : > { %3786 = vst [vmem:[%s4449_s21 + $0xc50] sm:$0xff] %v3274_v26  ;;  %3787 = vst [vmem:[%s4449_s21 + $0xc58] sm:$0xff] %v3275_v27  ;;  %v742_v27 = vld [vmem:[%s4427_s11 + $0xd30] sm:$0xff] }
 0x229   : > { %3784 = vst [vmem:[%s4449_s21 + $0xc40] sm:$0xff] %v3272_v29  ;;  %3785 = vst [vmem:[%s4449_s21 + $0xc48] sm:$0xff] %v3273_v30  ;;  %v2598_v35 = vpop.permute.xlu1 %2597  ;;  %v740_v29 = vld [vmem:[%s4427_s11 + $0xd20] sm:$0xff]  ;;  %v741_v30 = vld [vmem:[%s4427_s11 + $0xd28] sm:$0xff] }
 0x22a   : > { %v3278_v36 = vmul.f32 %v2598_v35, %v718_v31  ;;  %v3279_v37 = vmul.f32 %v2598_v35, %v719_v32  ;;  %v2593_v38 = vpop.permute.xlu0 %2592 }
 0x22b   : > { %v3276_v39 = vmul.f32 %v2593_v38, %v716_v33  ;;  %v3277_v40 = vmul.f32 %v2593_v38, %v717_v34  ;;  %v747_v38 = vld [vmem:[%s4427_s11 + $0xd58] sm:$0xff] }
 0x22c   : > { %3790 = vst [vmem:[%s4449_s21 + $0xc70] sm:$0xff] %v3278_v36  ;;  %3791 = vst [vmem:[%s4449_s21 + $0xc78] sm:$0xff] %v3279_v37  ;;  %v746_v37 = vld [vmem:[%s4427_s11 + $0xd50] sm:$0xff] }
 0x22d   : > { %3788 = vst [vmem:[%s4449_s21 + $0xc60] sm:$0xff] %v3276_v39  ;;  %3789 = vst [vmem:[%s4449_s21 + $0xc68] sm:$0xff] %v3277_v40  ;;  %v2608_v45 = vpop.permute.xlu1 %2607  ;;  %v744_v39 = vld [vmem:[%s4427_s11 + $0xd40] sm:$0xff]  ;;  %v745_v40 = vld [vmem:[%s4427_s11 + $0xd48] sm:$0xff] }
 0x22e   : > { %v3282_v46 = vmul.f32 %v2608_v45, %v722_v41  ;;  %v3283_v47 = vmul.f32 %v2608_v45, %v723_v42  ;;  %v2603_v48 = vpop.permute.xlu0 %2602 }
 0x22f   : > { %v3280_v49 = vmul.f32 %v2603_v48, %v720_v43  ;;  %v3281_v50 = vmul.f32 %v2603_v48, %v721_v44  ;;  %v751_v48 = vld [vmem:[%s4427_s11 + $0xd78] sm:$0xff] }
 0x230   : > { %3794 = vst [vmem:[%s4449_s21 + $0xc90] sm:$0xff] %v3282_v46  ;;  %3795 = vst [vmem:[%s4449_s21 + $0xc98] sm:$0xff] %v3283_v47  ;;  %v750_v47 = vld [vmem:[%s4427_s11 + $0xd70] sm:$0xff] }
 0x231   : > { %3792 = vst [vmem:[%s4449_s21 + $0xc80] sm:$0xff] %v3280_v49  ;;  %3793 = vst [vmem:[%s4449_s21 + $0xc88] sm:$0xff] %v3281_v50  ;;  %v2618_v55 = vpop.permute.xlu1 %2617  ;;  %v748_v49 = vld [vmem:[%s4427_s11 + $0xd60] sm:$0xff]  ;;  %v749_v50 = vld [vmem:[%s4427_s11 + $0xd68] sm:$0xff] }
 0x232   : > { %v3286_v56 = vmul.f32 %v2618_v55, %v726_v51  ;;  %v3287_v57 = vmul.f32 %v2618_v55, %v727_v52  ;;  %v2613_v58 = vpop.permute.xlu0 %2612 }
 0x233   : > { %v3284_v59 = vmul.f32 %v2613_v58, %v724_v53  ;;  %v3285_v60 = vmul.f32 %v2613_v58, %v725_v54  ;;  %v755_v58 = vld [vmem:[%s4427_s11 + $0xd98] sm:$0xff] }
 0x234   : > { %3798 = vst [vmem:[%s4449_s21 + $0xcb0] sm:$0xff] %v3286_v56  ;;  %3799 = vst [vmem:[%s4449_s21 + $0xcb8] sm:$0xff] %v3287_v57  ;;  %v754_v57 = vld [vmem:[%s4427_s11 + $0xd90] sm:$0xff] }
 0x235   : > { %3796 = vst [vmem:[%s4449_s21 + $0xca0] sm:$0xff] %v3284_v59  ;;  %3797 = vst [vmem:[%s4449_s21 + $0xca8] sm:$0xff] %v3285_v60  ;;  %v2628_v1 = vpop.permute.xlu1 %2627  ;;  %v752_v59 = vld [vmem:[%s4427_s11 + $0xd80] sm:$0xff]  ;;  %v753_v60 = vld [vmem:[%s4427_s11 + $0xd88] sm:$0xff] }
 0x236   : > { %v3290_v2 = vmul.f32 %v2628_v1, %v730_v61  ;;  %v3291_v3 = vmul.f32 %v2628_v1, %v731_v62  ;;  %v2623_v4 = vpop.permute.xlu0 %2622 }
 0x237   : > { %v3288_v5 = vmul.f32 %v2623_v4, %v728_v63  ;;  %v3289_v6 = vmul.f32 %v2623_v4, %v729_v0  ;;  %v759_v4 = vld [vmem:[%s4427_s11 + $0xdb8] sm:$0xff] }
 0x238   : > { %3802 = vst [vmem:[%s4449_s21 + $0xcd0] sm:$0xff] %v3290_v2  ;;  %3803 = vst [vmem:[%s4449_s21 + $0xcd8] sm:$0xff] %v3291_v3  ;;  %v758_v3 = vld [vmem:[%s4427_s11 + $0xdb0] sm:$0xff] }
 0x239   : > { %3800 = vst [vmem:[%s4449_s21 + $0xcc0] sm:$0xff] %v3288_v5  ;;  %3801 = vst [vmem:[%s4449_s21 + $0xcc8] sm:$0xff] %v3289_v6  ;;  %v2638_v11 = vpop.permute.xlu1 %2637  ;;  %v756_v5 = vld [vmem:[%s4427_s11 + $0xda0] sm:$0xff]  ;;  %v757_v6 = vld [vmem:[%s4427_s11 + $0xda8] sm:$0xff] }
 0x23a   : > { %v3294_v12 = vmul.f32 %v2638_v11, %v734_v7  ;;  %v3295_v13 = vmul.f32 %v2638_v11, %v735_v8  ;;  %v2633_v14 = vpop.permute.xlu0 %2632 }
 0x23b   : > { %v3292_v15 = vmul.f32 %v2633_v14, %v732_v9  ;;  %v3293_v16 = vmul.f32 %v2633_v14, %v733_v10  ;;  %v763_v14 = vld [vmem:[%s4427_s11 + $0xdd8] sm:$0xff] }
 0x23c   : > { %3806 = vst [vmem:[%s4449_s21 + $0xcf0] sm:$0xff] %v3294_v12  ;;  %3807 = vst [vmem:[%s4449_s21 + $0xcf8] sm:$0xff] %v3295_v13  ;;  %v762_v13 = vld [vmem:[%s4427_s11 + $0xdd0] sm:$0xff] }
 0x23d   : > { %3804 = vst [vmem:[%s4449_s21 + $0xce0] sm:$0xff] %v3292_v15  ;;  %3805 = vst [vmem:[%s4449_s21 + $0xce8] sm:$0xff] %v3293_v16  ;;  %v2648_v21 = vpop.permute.xlu1 %2647  ;;  %v760_v15 = vld [vmem:[%s4427_s11 + $0xdc0] sm:$0xff]  ;;  %v761_v16 = vld [vmem:[%s4427_s11 + $0xdc8] sm:$0xff] }
 0x23e   : > { %v3298_v22 = vmul.f32 %v2648_v21, %v738_v17  ;;  %v3299_v23 = vmul.f32 %v2648_v21, %v739_v18  ;;  %v2643_v24 = vpop.permute.xlu0 %2642 }
 0x23f   : > { %v3296_v25 = vmul.f32 %v2643_v24, %v736_v19  ;;  %v3297_v26 = vmul.f32 %v2643_v24, %v737_v20  ;;  %v767_v24 = vld [vmem:[%s4427_s11 + $0xdf8] sm:$0xff] }
 0x240   : > { %3810 = vst [vmem:[%s4449_s21 + $0xd10] sm:$0xff] %v3298_v22  ;;  %3811 = vst [vmem:[%s4449_s21 + $0xd18] sm:$0xff] %v3299_v23  ;;  %v766_v23 = vld [vmem:[%s4427_s11 + $0xdf0] sm:$0xff] }
 0x241   : > { %3808 = vst [vmem:[%s4449_s21 + $0xd00] sm:$0xff] %v3296_v25  ;;  %3809 = vst [vmem:[%s4449_s21 + $0xd08] sm:$0xff] %v3297_v26  ;;  %v2658_v31 = vpop.permute.xlu1 %2657  ;;  %v764_v25 = vld [vmem:[%s4427_s11 + $0xde0] sm:$0xff]  ;;  %v765_v26 = vld [vmem:[%s4427_s11 + $0xde8] sm:$0xff] }
 0x242   : > { %v3302_v32 = vmul.f32 %v2658_v31, %v742_v27  ;;  %v3303_v33 = vmul.f32 %v2658_v31, %v743_v28  ;;  %v2653_v34 = vpop.permute.xlu0 %2652 }
 0x243   : > { %v3300_v35 = vmul.f32 %v2653_v34, %v740_v29  ;;  %v3301_v36 = vmul.f32 %v2653_v34, %v741_v30  ;;  %v771_v34 = vld [vmem:[%s4427_s11 + $0xe18] sm:$0xff] }
 0x244   : > { %3814 = vst [vmem:[%s4449_s21 + $0xd30] sm:$0xff] %v3302_v32  ;;  %3815 = vst [vmem:[%s4449_s21 + $0xd38] sm:$0xff] %v3303_v33  ;;  %v770_v33 = vld [vmem:[%s4427_s11 + $0xe10] sm:$0xff] }
 0x245   : > { %3812 = vst [vmem:[%s4449_s21 + $0xd20] sm:$0xff] %v3300_v35  ;;  %3813 = vst [vmem:[%s4449_s21 + $0xd28] sm:$0xff] %v3301_v36  ;;  %v2668_v41 = vpop.permute.xlu1 %2667  ;;  %v768_v35 = vld [vmem:[%s4427_s11 + $0xe00] sm:$0xff]  ;;  %v769_v36 = vld [vmem:[%s4427_s11 + $0xe08] sm:$0xff] }
 0x246   : > { %v3306_v42 = vmul.f32 %v2668_v41, %v746_v37  ;;  %v3307_v43 = vmul.f32 %v2668_v41, %v747_v38  ;;  %v2663_v44 = vpop.permute.xlu0 %2662 }
 0x247   : > { %v3304_v45 = vmul.f32 %v2663_v44, %v744_v39  ;;  %v3305_v46 = vmul.f32 %v2663_v44, %v745_v40  ;;  %v775_v44 = vld [vmem:[%s4427_s11 + $0xe38] sm:$0xff] }
 0x248   : > { %3818 = vst [vmem:[%s4449_s21 + $0xd50] sm:$0xff] %v3306_v42  ;;  %3819 = vst [vmem:[%s4449_s21 + $0xd58] sm:$0xff] %v3307_v43  ;;  %v774_v43 = vld [vmem:[%s4427_s11 + $0xe30] sm:$0xff] }
 0x249   : > { %3816 = vst [vmem:[%s4449_s21 + $0xd40] sm:$0xff] %v3304_v45  ;;  %3817 = vst [vmem:[%s4449_s21 + $0xd48] sm:$0xff] %v3305_v46  ;;  %v2678_v51 = vpop.permute.xlu1 %2677  ;;  %v772_v45 = vld [vmem:[%s4427_s11 + $0xe20] sm:$0xff]  ;;  %v773_v46 = vld [vmem:[%s4427_s11 + $0xe28] sm:$0xff] }
 0x24a   : > { %v3310_v52 = vmul.f32 %v2678_v51, %v750_v47  ;;  %v3311_v53 = vmul.f32 %v2678_v51, %v751_v48  ;;  %v2673_v54 = vpop.permute.xlu0 %2672 }
 0x24b   : > { %v3308_v55 = vmul.f32 %v2673_v54, %v748_v49  ;;  %v3309_v56 = vmul.f32 %v2673_v54, %v749_v50  ;;  %v779_v54 = vld [vmem:[%s4427_s11 + $0xe58] sm:$0xff] }
 0x24c   : > { %3822 = vst [vmem:[%s4449_s21 + $0xd70] sm:$0xff] %v3310_v52  ;;  %3823 = vst [vmem:[%s4449_s21 + $0xd78] sm:$0xff] %v3311_v53  ;;  %v778_v53 = vld [vmem:[%s4427_s11 + $0xe50] sm:$0xff] }
 0x24d   : > { %3820 = vst [vmem:[%s4449_s21 + $0xd60] sm:$0xff] %v3308_v55  ;;  %3821 = vst [vmem:[%s4449_s21 + $0xd68] sm:$0xff] %v3309_v56  ;;  %v2688_v61 = vpop.permute.xlu1 %2687  ;;  %v776_v55 = vld [vmem:[%s4427_s11 + $0xe40] sm:$0xff]  ;;  %v777_v56 = vld [vmem:[%s4427_s11 + $0xe48] sm:$0xff] }
 0x24e   : > { %v3314_v62 = vmul.f32 %v2688_v61, %v754_v57  ;;  %v3315_v63 = vmul.f32 %v2688_v61, %v755_v58  ;;  %v2683_v0 = vpop.permute.xlu0 %2682 }
 0x24f   : > { %v3312_v1 = vmul.f32 %v2683_v0, %v752_v59  ;;  %v3313_v2 = vmul.f32 %v2683_v0, %v753_v60  ;;  %v783_v0 = vld [vmem:[%s4427_s11 + $0xe78] sm:$0xff] }
 0x250   : > { %3826 = vst [vmem:[%s4449_s21 + $0xd90] sm:$0xff] %v3314_v62  ;;  %3827 = vst [vmem:[%s4449_s21 + $0xd98] sm:$0xff] %v3315_v63  ;;  %v782_v63 = vld [vmem:[%s4427_s11 + $0xe70] sm:$0xff] }
 0x251   : > { %3824 = vst [vmem:[%s4449_s21 + $0xd80] sm:$0xff] %v3312_v1  ;;  %3825 = vst [vmem:[%s4449_s21 + $0xd88] sm:$0xff] %v3313_v2  ;;  %v2698_v7 = vpop.permute.xlu1 %2697  ;;  %v780_v1 = vld [vmem:[%s4427_s11 + $0xe60] sm:$0xff]  ;;  %v781_v2 = vld [vmem:[%s4427_s11 + $0xe68] sm:$0xff] }
 0x252   : > { %v3318_v8 = vmul.f32 %v2698_v7, %v758_v3  ;;  %v3319_v9 = vmul.f32 %v2698_v7, %v759_v4  ;;  %v2693_v10 = vpop.permute.xlu0 %2692 }
 0x253   : > { %v3316_v11 = vmul.f32 %v2693_v10, %v756_v5  ;;  %v3317_v12 = vmul.f32 %v2693_v10, %v757_v6  ;;  %v787_v10 = vld [vmem:[%s4427_s11 + $0xe98] sm:$0xff] }
 0x254   : > { %3830 = vst [vmem:[%s4449_s21 + $0xdb0] sm:$0xff] %v3318_v8  ;;  %3831 = vst [vmem:[%s4449_s21 + $0xdb8] sm:$0xff] %v3319_v9  ;;  %v786_v9 = vld [vmem:[%s4427_s11 + $0xe90] sm:$0xff] }
 0x255   : > { %3828 = vst [vmem:[%s4449_s21 + $0xda0] sm:$0xff] %v3316_v11  ;;  %3829 = vst [vmem:[%s4449_s21 + $0xda8] sm:$0xff] %v3317_v12  ;;  %v2708_v17 = vpop.permute.xlu1 %2707  ;;  %v784_v11 = vld [vmem:[%s4427_s11 + $0xe80] sm:$0xff]  ;;  %v785_v12 = vld [vmem:[%s4427_s11 + $0xe88] sm:$0xff] }
 0x256   : > { %v3322_v18 = vmul.f32 %v2708_v17, %v762_v13  ;;  %v3323_v19 = vmul.f32 %v2708_v17, %v763_v14  ;;  %v2703_v20 = vpop.permute.xlu0 %2702 }
 0x257   : > { %v3320_v21 = vmul.f32 %v2703_v20, %v760_v15  ;;  %v3321_v22 = vmul.f32 %v2703_v20, %v761_v16  ;;  %v791_v20 = vld [vmem:[%s4427_s11 + $0xeb8] sm:$0xff] }
 0x258   : > { %3834 = vst [vmem:[%s4449_s21 + $0xdd0] sm:$0xff] %v3322_v18  ;;  %3835 = vst [vmem:[%s4449_s21 + $0xdd8] sm:$0xff] %v3323_v19  ;;  %v790_v19 = vld [vmem:[%s4427_s11 + $0xeb0] sm:$0xff] }
 0x259   : > { %3832 = vst [vmem:[%s4449_s21 + $0xdc0] sm:$0xff] %v3320_v21  ;;  %3833 = vst [vmem:[%s4449_s21 + $0xdc8] sm:$0xff] %v3321_v22  ;;  %v2718_v27 = vpop.permute.xlu1 %2717  ;;  %v788_v21 = vld [vmem:[%s4427_s11 + $0xea0] sm:$0xff]  ;;  %v789_v22 = vld [vmem:[%s4427_s11 + $0xea8] sm:$0xff] }
 0x25a   : > { %v3326_v28 = vmul.f32 %v2718_v27, %v766_v23  ;;  %v3327_v29 = vmul.f32 %v2718_v27, %v767_v24  ;;  %v2713_v30 = vpop.permute.xlu0 %2712 }
 0x25b   : > { %v3324_v31 = vmul.f32 %v2713_v30, %v764_v25  ;;  %v3325_v32 = vmul.f32 %v2713_v30, %v765_v26  ;;  %v795_v30 = vld [vmem:[%s4427_s11 + $0xed8] sm:$0xff] }
 0x25c   : > { %3838 = vst [vmem:[%s4449_s21 + $0xdf0] sm:$0xff] %v3326_v28  ;;  %3839 = vst [vmem:[%s4449_s21 + $0xdf8] sm:$0xff] %v3327_v29  ;;  %v794_v29 = vld [vmem:[%s4427_s11 + $0xed0] sm:$0xff] }
 0x25d   : > { %3836 = vst [vmem:[%s4449_s21 + $0xde0] sm:$0xff] %v3324_v31  ;;  %3837 = vst [vmem:[%s4449_s21 + $0xde8] sm:$0xff] %v3325_v32  ;;  %v2728_v37 = vpop.permute.xlu1 %2727  ;;  %v792_v31 = vld [vmem:[%s4427_s11 + $0xec0] sm:$0xff]  ;;  %v793_v32 = vld [vmem:[%s4427_s11 + $0xec8] sm:$0xff] }
 0x25e   : > { %v3330_v38 = vmul.f32 %v2728_v37, %v770_v33  ;;  %v3331_v39 = vmul.f32 %v2728_v37, %v771_v34  ;;  %v2723_v40 = vpop.permute.xlu0 %2722 }
 0x25f   : > { %v3328_v41 = vmul.f32 %v2723_v40, %v768_v35  ;;  %v3329_v42 = vmul.f32 %v2723_v40, %v769_v36  ;;  %v799_v40 = vld [vmem:[%s4427_s11 + $0xef8] sm:$0xff] }
 0x260   : > { %3842 = vst [vmem:[%s4449_s21 + $0xe10] sm:$0xff] %v3330_v38  ;;  %3843 = vst [vmem:[%s4449_s21 + $0xe18] sm:$0xff] %v3331_v39  ;;  %v798_v39 = vld [vmem:[%s4427_s11 + $0xef0] sm:$0xff] }
 0x261   : > { %3840 = vst [vmem:[%s4449_s21 + $0xe00] sm:$0xff] %v3328_v41  ;;  %3841 = vst [vmem:[%s4449_s21 + $0xe08] sm:$0xff] %v3329_v42  ;;  %v2738_v47 = vpop.permute.xlu1 %2737  ;;  %v796_v41 = vld [vmem:[%s4427_s11 + $0xee0] sm:$0xff]  ;;  %v797_v42 = vld [vmem:[%s4427_s11 + $0xee8] sm:$0xff] }
 0x262   : > { %v3334_v48 = vmul.f32 %v2738_v47, %v774_v43  ;;  %v3335_v49 = vmul.f32 %v2738_v47, %v775_v44  ;;  %v2733_v50 = vpop.permute.xlu0 %2732 }
 0x263   : > { %v3332_v51 = vmul.f32 %v2733_v50, %v772_v45  ;;  %v3333_v52 = vmul.f32 %v2733_v50, %v773_v46  ;;  %v803_v50 = vld [vmem:[%s4427_s11 + $0xf18] sm:$0xff] }
 0x264   : > { %3846 = vst [vmem:[%s4449_s21 + $0xe30] sm:$0xff] %v3334_v48  ;;  %3847 = vst [vmem:[%s4449_s21 + $0xe38] sm:$0xff] %v3335_v49  ;;  %v802_v49 = vld [vmem:[%s4427_s11 + $0xf10] sm:$0xff] }
 0x265   : > { %3844 = vst [vmem:[%s4449_s21 + $0xe20] sm:$0xff] %v3332_v51  ;;  %3845 = vst [vmem:[%s4449_s21 + $0xe28] sm:$0xff] %v3333_v52  ;;  %v2748_v57 = vpop.permute.xlu1 %2747  ;;  %v800_v51 = vld [vmem:[%s4427_s11 + $0xf00] sm:$0xff]  ;;  %v801_v52 = vld [vmem:[%s4427_s11 + $0xf08] sm:$0xff] }
 0x266   : > { %v3338_v58 = vmul.f32 %v2748_v57, %v778_v53  ;;  %v3339_v59 = vmul.f32 %v2748_v57, %v779_v54  ;;  %v2743_v60 = vpop.permute.xlu0 %2742 }
 0x267   : > { %v3336_v61 = vmul.f32 %v2743_v60, %v776_v55  ;;  %v3337_v62 = vmul.f32 %v2743_v60, %v777_v56  ;;  %v807_v60 = vld [vmem:[%s4427_s11 + $0xf38] sm:$0xff] }
 0x268   : > { %3850 = vst [vmem:[%s4449_s21 + $0xe50] sm:$0xff] %v3338_v58  ;;  %3851 = vst [vmem:[%s4449_s21 + $0xe58] sm:$0xff] %v3339_v59  ;;  %v806_v59 = vld [vmem:[%s4427_s11 + $0xf30] sm:$0xff] }
 0x269   : > { %3848 = vst [vmem:[%s4449_s21 + $0xe40] sm:$0xff] %v3336_v61  ;;  %3849 = vst [vmem:[%s4449_s21 + $0xe48] sm:$0xff] %v3337_v62  ;;  %v2758_v3 = vpop.permute.xlu1 %2757  ;;  %v804_v61 = vld [vmem:[%s4427_s11 + $0xf20] sm:$0xff]  ;;  %v805_v62 = vld [vmem:[%s4427_s11 + $0xf28] sm:$0xff] }
 0x26a   : > { %v3342_v4 = vmul.f32 %v2758_v3, %v782_v63  ;;  %v3343_v5 = vmul.f32 %v2758_v3, %v783_v0  ;;  %v2753_v6 = vpop.permute.xlu0 %2752 }
 0x26b   : > { %v3340_v7 = vmul.f32 %v2753_v6, %v780_v1  ;;  %v3341_v8 = vmul.f32 %v2753_v6, %v781_v2  ;;  %v811_v6 = vld [vmem:[%s4427_s11 + $0xf58] sm:$0xff] }
 0x26c   : > { %3854 = vst [vmem:[%s4449_s21 + $0xe70] sm:$0xff] %v3342_v4  ;;  %3855 = vst [vmem:[%s4449_s21 + $0xe78] sm:$0xff] %v3343_v5  ;;  %v810_v5 = vld [vmem:[%s4427_s11 + $0xf50] sm:$0xff] }
 0x26d   : > { %3852 = vst [vmem:[%s4449_s21 + $0xe60] sm:$0xff] %v3340_v7  ;;  %3853 = vst [vmem:[%s4449_s21 + $0xe68] sm:$0xff] %v3341_v8  ;;  %v2768_v13 = vpop.permute.xlu1 %2767  ;;  %v808_v7 = vld [vmem:[%s4427_s11 + $0xf40] sm:$0xff]  ;;  %v809_v8 = vld [vmem:[%s4427_s11 + $0xf48] sm:$0xff] }
 0x26e   : > { %v3346_v14 = vmul.f32 %v2768_v13, %v786_v9  ;;  %v3347_v15 = vmul.f32 %v2768_v13, %v787_v10  ;;  %v2763_v16 = vpop.permute.xlu0 %2762 }
 0x26f   : > { %v3344_v17 = vmul.f32 %v2763_v16, %v784_v11  ;;  %v3345_v18 = vmul.f32 %v2763_v16, %v785_v12  ;;  %v815_v16 = vld [vmem:[%s4427_s11 + $0xf78] sm:$0xff] }
 0x270   : > { %3858 = vst [vmem:[%s4449_s21 + $0xe90] sm:$0xff] %v3346_v14  ;;  %3859 = vst [vmem:[%s4449_s21 + $0xe98] sm:$0xff] %v3347_v15  ;;  %v814_v15 = vld [vmem:[%s4427_s11 + $0xf70] sm:$0xff] }
 0x271   : > { %3856 = vst [vmem:[%s4449_s21 + $0xe80] sm:$0xff] %v3344_v17  ;;  %3857 = vst [vmem:[%s4449_s21 + $0xe88] sm:$0xff] %v3345_v18  ;;  %v2778_v23 = vpop.permute.xlu1 %2777  ;;  %v812_v17 = vld [vmem:[%s4427_s11 + $0xf60] sm:$0xff]  ;;  %v813_v18 = vld [vmem:[%s4427_s11 + $0xf68] sm:$0xff] }
 0x272   : > { %v3350_v24 = vmul.f32 %v2778_v23, %v790_v19  ;;  %v3351_v25 = vmul.f32 %v2778_v23, %v791_v20  ;;  %v2773_v26 = vpop.permute.xlu0 %2772 }
 0x273   : > { %v3348_v27 = vmul.f32 %v2773_v26, %v788_v21  ;;  %v3349_v28 = vmul.f32 %v2773_v26, %v789_v22  ;;  %v819_v26 = vld [vmem:[%s4427_s11 + $0xf98] sm:$0xff] }
 0x274   : > { %3862 = vst [vmem:[%s4449_s21 + $0xeb0] sm:$0xff] %v3350_v24  ;;  %3863 = vst [vmem:[%s4449_s21 + $0xeb8] sm:$0xff] %v3351_v25  ;;  %v818_v25 = vld [vmem:[%s4427_s11 + $0xf90] sm:$0xff] }
 0x275   : > { %3860 = vst [vmem:[%s4449_s21 + $0xea0] sm:$0xff] %v3348_v27  ;;  %3861 = vst [vmem:[%s4449_s21 + $0xea8] sm:$0xff] %v3349_v28  ;;  %v2788_v33 = vpop.permute.xlu1 %2787  ;;  %v816_v27 = vld [vmem:[%s4427_s11 + $0xf80] sm:$0xff]  ;;  %v817_v28 = vld [vmem:[%s4427_s11 + $0xf88] sm:$0xff] }
 0x276   : > { %v3354_v34 = vmul.f32 %v2788_v33, %v794_v29  ;;  %v3355_v35 = vmul.f32 %v2788_v33, %v795_v30  ;;  %v2783_v36 = vpop.permute.xlu0 %2782 }
 0x277   : > { %v3352_v37 = vmul.f32 %v2783_v36, %v792_v31  ;;  %v3353_v38 = vmul.f32 %v2783_v36, %v793_v32  ;;  %v823_v36 = vld [vmem:[%s4427_s11 + $0xfb8] sm:$0xff] }
 0x278   : > { %3866 = vst [vmem:[%s4449_s21 + $0xed0] sm:$0xff] %v3354_v34  ;;  %3867 = vst [vmem:[%s4449_s21 + $0xed8] sm:$0xff] %v3355_v35  ;;  %v822_v35 = vld [vmem:[%s4427_s11 + $0xfb0] sm:$0xff] }
 0x279   : > { %3864 = vst [vmem:[%s4449_s21 + $0xec0] sm:$0xff] %v3352_v37  ;;  %3865 = vst [vmem:[%s4449_s21 + $0xec8] sm:$0xff] %v3353_v38  ;;  %v2798_v43 = vpop.permute.xlu1 %2797  ;;  %v820_v37 = vld [vmem:[%s4427_s11 + $0xfa0] sm:$0xff]  ;;  %v821_v38 = vld [vmem:[%s4427_s11 + $0xfa8] sm:$0xff] }
 0x27a   : > { %v3358_v44 = vmul.f32 %v2798_v43, %v798_v39  ;;  %v3359_v45 = vmul.f32 %v2798_v43, %v799_v40  ;;  %v2793_v46 = vpop.permute.xlu0 %2792 }
 0x27b   : > { %v3356_v47 = vmul.f32 %v2793_v46, %v796_v41  ;;  %v3357_v48 = vmul.f32 %v2793_v46, %v797_v42  ;;  %v827_v46 = vld [vmem:[%s4427_s11 + $0xfd8] sm:$0xff] }
 0x27c   : > { %3870 = vst [vmem:[%s4449_s21 + $0xef0] sm:$0xff] %v3358_v44  ;;  %3871 = vst [vmem:[%s4449_s21 + $0xef8] sm:$0xff] %v3359_v45  ;;  %v826_v45 = vld [vmem:[%s4427_s11 + $0xfd0] sm:$0xff] }
 0x27d   : > { %3868 = vst [vmem:[%s4449_s21 + $0xee0] sm:$0xff] %v3356_v47  ;;  %3869 = vst [vmem:[%s4449_s21 + $0xee8] sm:$0xff] %v3357_v48  ;;  %v2808_v53 = vpop.permute.xlu1 %2807  ;;  %v824_v47 = vld [vmem:[%s4427_s11 + $0xfc0] sm:$0xff]  ;;  %v825_v48 = vld [vmem:[%s4427_s11 + $0xfc8] sm:$0xff] }
 0x27e   : > { %v3362_v54 = vmul.f32 %v2808_v53, %v802_v49  ;;  %v3363_v55 = vmul.f32 %v2808_v53, %v803_v50  ;;  %v2803_v56 = vpop.permute.xlu0 %2802 }
 0x27f   : > { %v3360_v57 = vmul.f32 %v2803_v56, %v800_v51  ;;  %v3361_v58 = vmul.f32 %v2803_v56, %v801_v52  ;;  %v831_v56 = vld [vmem:[%s4427_s11 + $0xff8] sm:$0xff] }
 0x280   : > { %3874 = vst [vmem:[%s4449_s21 + $0xf10] sm:$0xff] %v3362_v54  ;;  %3875 = vst [vmem:[%s4449_s21 + $0xf18] sm:$0xff] %v3363_v55  ;;  %v830_v55 = vld [vmem:[%s4427_s11 + $0xff0] sm:$0xff] }
 0x281   : > { %3872 = vst [vmem:[%s4449_s21 + $0xf00] sm:$0xff] %v3360_v57  ;;  %3873 = vst [vmem:[%s4449_s21 + $0xf08] sm:$0xff] %v3361_v58  ;;  %v2818_v63 = vpop.permute.xlu1 %2817  ;;  %v828_v57 = vld [vmem:[%s4427_s11 + $0xfe0] sm:$0xff]  ;;  %v829_v58 = vld [vmem:[%s4427_s11 + $0xfe8] sm:$0xff] }
 0x282   : > { %v3366_v0 = vmul.f32 %v2818_v63, %v806_v59  ;;  %v3367_v1 = vmul.f32 %v2818_v63, %v807_v60  ;;  %v2813_v2 = vpop.permute.xlu0 %2812 }
 0x283   : > { %v3364_v3 = vmul.f32 %v2813_v2, %v804_v61  ;;  %v3365_v4 = vmul.f32 %v2813_v2, %v805_v62 }
 0x284   : > { %3878 = vst [vmem:[%s4449_s21 + $0xf30] sm:$0xff] %v3366_v0  ;;  %3879 = vst [vmem:[%s4449_s21 + $0xf38] sm:$0xff] %v3367_v1 }
 0x285   : > { %3876 = vst [vmem:[%s4449_s21 + $0xf20] sm:$0xff] %v3364_v3  ;;  %3877 = vst [vmem:[%s4449_s21 + $0xf28] sm:$0xff] %v3365_v4  ;;  %v2828_v9 = vpop.permute.xlu1 %2827 }
 0x286   : > { %v3370_v10 = vmul.f32 %v2828_v9, %v810_v5  ;;  %v3371_v11 = vmul.f32 %v2828_v9, %v811_v6  ;;  %v2823_v12 = vpop.permute.xlu0 %2822 }
 0x287   : > { %v3368_v13 = vmul.f32 %v2823_v12, %v808_v7  ;;  %v3369_v14 = vmul.f32 %v2823_v12, %v809_v8 }
 0x288   : > { %3882 = vst [vmem:[%s4449_s21 + $0xf50] sm:$0xff] %v3370_v10  ;;  %3883 = vst [vmem:[%s4449_s21 + $0xf58] sm:$0xff] %v3371_v11 }
 0x289   : > { %3880 = vst [vmem:[%s4449_s21 + $0xf40] sm:$0xff] %v3368_v13  ;;  %3881 = vst [vmem:[%s4449_s21 + $0xf48] sm:$0xff] %v3369_v14  ;;  %v2838_v19 = vpop.permute.xlu1 %2837 }
 0x28a   : > { %v3374_v20 = vmul.f32 %v2838_v19, %v814_v15  ;;  %v3375_v21 = vmul.f32 %v2838_v19, %v815_v16  ;;  %v2833_v22 = vpop.permute.xlu0 %2832 }
 0x28b   : > { %v3372_v23 = vmul.f32 %v2833_v22, %v812_v17  ;;  %v3373_v24 = vmul.f32 %v2833_v22, %v813_v18 }
 0x28c   : > { %3886 = vst [vmem:[%s4449_s21 + $0xf70] sm:$0xff] %v3374_v20  ;;  %3887 = vst [vmem:[%s4449_s21 + $0xf78] sm:$0xff] %v3375_v21 }
 0x28d   : > { %3884 = vst [vmem:[%s4449_s21 + $0xf60] sm:$0xff] %v3372_v23  ;;  %3885 = vst [vmem:[%s4449_s21 + $0xf68] sm:$0xff] %v3373_v24  ;;  %v2848_v29 = vpop.permute.xlu1 %2847 }
 0x28e   : > { %v3378_v30 = vmul.f32 %v2848_v29, %v818_v25  ;;  %v3379_v31 = vmul.f32 %v2848_v29, %v819_v26  ;;  %v2843_v32 = vpop.permute.xlu0 %2842 }
 0x28f   : > { %v3376_v33 = vmul.f32 %v2843_v32, %v816_v27  ;;  %v3377_v34 = vmul.f32 %v2843_v32, %v817_v28 }
 0x290   : > { %3890 = vst [vmem:[%s4449_s21 + $0xf90] sm:$0xff] %v3378_v30  ;;  %3891 = vst [vmem:[%s4449_s21 + $0xf98] sm:$0xff] %v3379_v31 }
 0x291   : > { %3888 = vst [vmem:[%s4449_s21 + $0xf80] sm:$0xff] %v3376_v33  ;;  %3889 = vst [vmem:[%s4449_s21 + $0xf88] sm:$0xff] %v3377_v34  ;;  %v2858_v39 = vpop.permute.xlu1 %2857 }
 0x292   : > { %v3382_v40 = vmul.f32 %v2858_v39, %v822_v35  ;;  %v3383_v41 = vmul.f32 %v2858_v39, %v823_v36  ;;  %v2853_v42 = vpop.permute.xlu0 %2852 }
 0x293   : > { %v3380_v43 = vmul.f32 %v2853_v42, %v820_v37  ;;  %v3381_v44 = vmul.f32 %v2853_v42, %v821_v38 }
 0x294   : > { %3894 = vst [vmem:[%s4449_s21 + $0xfb0] sm:$0xff] %v3382_v40  ;;  %3895 = vst [vmem:[%s4449_s21 + $0xfb8] sm:$0xff] %v3383_v41 }
 0x295   : > { %3892 = vst [vmem:[%s4449_s21 + $0xfa0] sm:$0xff] %v3380_v43  ;;  %3893 = vst [vmem:[%s4449_s21 + $0xfa8] sm:$0xff] %v3381_v44  ;;  %v2868_v49 = vpop.permute.xlu1 %2867 }
 0x296   : > { %v3386_v50 = vmul.f32 %v2868_v49, %v826_v45  ;;  %v3387_v51 = vmul.f32 %v2868_v49, %v827_v46  ;;  %v2863_v52 = vpop.permute.xlu0 %2862 }
 0x297   : > { %v3384_v53 = vmul.f32 %v2863_v52, %v824_v47  ;;  %v3385_v54 = vmul.f32 %v2863_v52, %v825_v48  ;;  %3911 = sbr.rel (!%p4262_p4) target bundleno = 698 (0x2ba), region = 36 }
 0x298   : > { %3898 = vst [vmem:[%s4449_s21 + $0xfd0] sm:$0xff] %v3386_v50  ;;  %3899 = vst [vmem:[%s4449_s21 + $0xfd8] sm:$0xff] %v3387_v51 }
 0x299   : > { %3896 = vst [vmem:[%s4449_s21 + $0xfc0] sm:$0xff] %v3384_v53  ;;  %3897 = vst [vmem:[%s4449_s21 + $0xfc8] sm:$0xff] %v3385_v54  ;;  %v2878_v59 = vpop.permute.xlu1 %2877 }
 0x29a   : > { %v3390_v60 = vmul.f32 %v2878_v59, %v830_v55  ;;  %v3391_v61 = vmul.f32 %v2878_v59, %v831_v56  ;;  %v2873_v62 = vpop.permute.xlu0 %2872 }
 0x29b   : > { %v3388_v63 = vmul.f32 %v2873_v62, %v828_v57  ;;  %v3389_v0 = vmul.f32 %v2873_v62, %v829_v58 }
 0x29c   : > { %3902 = vst [vmem:[%s4449_s21 + $0xff0] sm:$0xff] %v3390_v60  ;;  %3903 = vst [vmem:[%s4449_s21 + $0xff8] sm:$0xff] %v3391_v61 }
 0x29d   : > { %3900 = vst [vmem:[%s4449_s21 + $0xfe0] sm:$0xff] %v3388_v63  ;;  %3901 = vst [vmem:[%s4449_s21 + $0xfe8] sm:$0xff] %v3389_v0 }
 0x29e   : > { %s5924_s27 = smov (!%p3915_p12, %s3914_s27), 256 }
 0x29f   : > { %s5849_s28 = sshll.u32 %s5924_s27, 8 }
 0x2a0   : > { %s3920_s29 = ssub.s32 65536, %s5849_s28 }
 0x2a1   : > { %3921 = vsyncadd %s5844_s23, %s3920_s29  ;;  %p4048_p13 = scmp.ne.s32.totalorder %s5849_s28, 0  ;;  %s4058_s30 = sshll.u32 %s4188_s15, 16 }
 0x2a2   : > { %s5858_s5 = scalar_lea.hbm %s5913_s3, %s4058_s30  ;;  %s3928_s26 = sshll.u32 %s4449_s21, 4  ;;  %s5861_s26 = int_to_ptr.vmem [resolvable:$true] %s3928_s26 }
 0x2a3   : > { %s4118_s6 = scalar_lea.vmem %s5861_s26, %s5849_s28  ;;  %s4199_s7 = smov [#allocation2]  }
 0x2a4   : > { %p4119_p0 = scmp.ne.s32.totalorder %s5861_s26, %s4118_s6  ;;  %s4122_s8 = sshll.u32 %s4199_s7, 4  ;;  %s4123_s8 = int_to_ptr.vmem [resolvable:$false] %s4122_s8 }
 0x2a5   : > { %s4124_s15 = scalar_lea.vmem %s4123_s8, 131072  ;;  %p4125_p3 = scmp.lt.s32.totalorder %s5861_s26, %s4123_s8 }
 0x2a6   : > { %p4120_p1 = pnand %p4119_p0, %p4048_p13  ;;  %p4126_p4 = scmp.lt.s32.totalorder %s4124_s15, %s4118_s6 }
 0x2a8   : > { %p4121_p2 = pneg %p4120_p1  ;;  %p4127_p5 = por %p4126_p4, %p4125_p3 }
 0x2aa   : > { %p4128_p6 = pnand %p4127_p5, %p4121_p2 }
 0x2ac   : > { %4131 = shalt.err (!%p4128_p6)
}
 0x2ad   : > { %s4132_s9 = scalar_lea.hbm %s5858_s5, %s5849_s28  ;;  %s4136_s18 = scalar_lea.hbm %s5913_s3, 131328 }
 0x2ae   : > { %p4133_p7 = scmp.ne.s32.totalorder %s5858_s5, %s4132_s9  ;;  %p4137_p11 = scmp.lt.u32.totalorder %s5858_s5, %s5913_s3 }
 0x2af   : > { %p4138_p12 = scmp.lt.u32.totalorder %s4136_s18, %s4132_s9  ;;  %p4140_p1 = scmp.lt.u32.totalorder %s4132_s9, %s5858_s5 }
 0x2b0   : > { %p4134_p9 = pnand %p4133_p7, %p4048_p13 }
 0x2b1   : > { %p4139_p0 = por %p4138_p12, %p4137_p11 }
 0x2b2   : > { %p4135_p10 = pneg %p4134_p9 }
 0x2b3   : > { %p4141_p2 = por %p4140_p1, %p4139_p0 }
 0x2b5   : > { %p4142_p3 = pnand %p4141_p2, %p4135_p10 }
 0x2b7   : > { %4145 = shalt.err (!%p4142_p3)
}
 0x2b8   : > { %s4200_s27 = smov 256   ;;  %s4201_s29 = smov 16  }
 0x2b9   : > { %3934 = dma.vmem_to_hbm [thread:$0]  (%p4048_p13), %s5861_s26, %s5849_s28, %s5858_s5, %s5844_s23, %s4200_s27, %s4200_s27, %s4201_s29  }
 0x2ba PF: > { %p4064_p4 = scmp.ge.s32.totalorder %s4196_s17, 2  ;;  %s3943_s30 = sand.u32 1, %s4176_s12  }
 0x2bb   : > { %s3944_s4 = scalar_lea.sflag [#allocation3], %s3943_s30 }
 0x2bc   : > { %p4061_p5 = pnand %p4064_p4, %p4269_p8 }
 0x2be   : > { %4171 = dma.done.wait (!%p4061_p5), %s3944_s4, 65536  }
 0x2bf   : > { %4173 = vsyncadd (!%p4061_p5), %s3944_s4, 4294901760  ;;  %s16_s17 = sadd.s32 1, %s4196_s17   ;;  %s5916_s12 = smov %s4180_s13 }
 0x2c0   : > { %p13_p6 = scmp.ge.s32.totalorder %s16_s17, 5   ;;  %s5917_s13 = smov %s4184_s14 }
 0x2c1   : > { %s5918_s14 = smov %s4275_s25  ;;  %s5919_s15 = smov %s4192_s16 }
 0x2c2   : > { %s5920_s16 = smov %s5922_s20  ;;  %15 = sbr.rel (!%p13_p6) target bundleno = 4 (0x4), region = 73 }
 0x2c9   :  { %3949 = vsyncpa [#allocation3], 1 }
 0x2ca   :  { %3951 = vsyncpa [#allocation3 + $0x1], 1 }

</bundles_post_ra>
